<compile_context>
chip_gen: v5e
topology: v5e:2x2
jax: 0.10.0
libtpu: 0.0.40
codegen_flags: <defaults>
</compile_context>

<pallas_src>
import math

import jax
import jax.numpy as jnp
from jax import lax
from jax.experimental import pallas as pl
from jax.experimental.pallas import tpu as pltpu


_BIG = 1e30          # diag mask value for the nn-distance min (>> any distance)
_EPS = 1e-12         # matches torch _TwowaydivergenceLoss EPS
_TWO_PI = 2.0 * math.pi


def _cal_gamma(v):
    # gamma((v+1)/2) / (sqrt(v*pi) * gamma(v/2))  -- via lgamma, no scipy.
    return math.exp(math.lgamma((v + 1.0) / 2.0) - math.lgamma(v / 2.0)) / math.sqrt(
        v * math.pi
    )


def _num_row_programs():
    """2 on multi-TensorCore chips (v7x) so each core takes one row-half;
    1 elsewhere (a grid of 2 would just be a serial loop redoing the Gram)."""
    try:
        kind = jax.devices()[0].device_kind.lower()
    except Exception:
        return 1
    if "v7" in kind or "tpu7" in kind:
        return 2
    return 1


def _make_kernel(B, D_lat, halves_per_program, v_input, v_latent, sigmaP, sigmaQ,
                 aug_near_rate):
    N = 2 * B
    gamma_in = _cal_gamma(v_input)
    gamma_lat = _cal_gamma(v_latent)

    # Pre-folded similarity constants (rho = 0, so the <0 clamp is a no-op on
    # distances that are already clamped >= 0).
    pref_p = gamma_in * _TWO_PI
    c2_p = -(v_input + 1.0) / 2.0
    inv_vs_p = 1.0 / (sigmaP * v_input)

    log_pref_q = math.log(gamma_lat * _TWO_PI)
    c2_q = -(v_latent + 1.0) / 2.0
    inv_vs_q = 1.0 / (sigmaQ * v_latent)

    inv_aug = 1.0 / aug_near_rate

    def kernel(x_ref, lat_row_ref, lat_col_ref, loss_ref, psum_ref):
        # ---- BxB masks (built once per program) ------------------------------
        rid = lax.broadcasted_iota(jnp.int32, (B, B), 0)
        cid = lax.broadcasted_iota(jnp.int32, (B, B), 1)
        eye_b = rid == cid

        # ---- metaDistance (B x B) from ONE BxB Gram matmul -------------------
        x = x_ref[...]
        gram = lax.dot_general(
            x, x, (((1,), (1,)), ((), ())), preferred_element_type=jnp.float32
        )
        diag = jnp.where(eye_b, gram, 0.0)
        sq_col = jnp.sum(diag, axis=1, keepdims=True)        # (B,1) = |x_i|^2
        sq_row = jnp.sum(diag, axis=0, keepdims=True)        # (1,B) = |x_j|^2
        meta = jnp.maximum(sq_col + sq_row - 2.0 * gram, 0.0)

        # ---- nndistance: diag-masked min (symmetric, so both layouts exact) --
        masked = jnp.where(eye_b, _BIG, meta)
        nn_row = jnp.min(masked, axis=0, keepdims=True) * inv_aug   # (1,B)
        nn_col = jnp.min(masked, axis=1, keepdims=True) * inv_aug   # (B,1)

        # disInput column structure, independent of the row half:
        # left block = meta, right block = meta + nn_row  -> (B, 2B)
        dis_base = jnp.concatenate([meta, meta + nn_row], axis=1)

        # ---- latent column operand (full 2B stack), computed once ------------
        lat_col = lat_col_ref[...]                                   # (2B, D_lat)
        ones_row = jnp.ones((1, D_lat), jnp.float32)
        col_sq = lax.dot_general(                                    # (1, 2B)
            ones_row, lat_col * lat_col, (((1,), (1,)), ((), ())),
            preferred_element_type=jnp.float32,
        )

        row2 = lax.broadcasted_iota(jnp.int32, (B, N), 0)
        col2 = lax.broadcasted_iota(jnp.int32, (B, N), 1)

        total = jnp.float32(0.0)
        for h in range(halves_per_program):
            if halves_per_program == 1:
                # grid=(2,) "parallel": this program owns one row-half.
                half_id = pl.program_id(0)                           # dynamic
                row_sel = lax.convert_element_type(half_id, jnp.float32)
                row_lat = lat_row_ref[...]                           # (B, D_lat)
                dis = dis_base + nn_col * row_sel
            else:
                # grid=(1,): both halves in one program, meta/nn reused.
                half_id = h                                          # static
                row_lat = lat_row_ref[pl.ds(h * B, B), :]            # (B, D_lat)
                dis = dis_base if h == 0 else dis_base + nn_col

            # ---- latent squared distances for this (B, 2B) slab --------------
            row_sq = jnp.sum(row_lat * row_lat, axis=1, keepdims=True)  # (B,1)
            cross = lax.dot_general(                                     # (B,2B)
                row_lat, lat_col, (((1,), (1,)), ((), ())),
                preferred_element_type=jnp.float32,
            )
            dlat = jnp.maximum(row_sq + col_sq - 2.0 * cross, 0.0)

            # ---- similarities + two-way divergence ---------------------------
            p = pref_p * jnp.exp(c2_p * jnp.log(1.0 + dis * inv_vs_p))
            # log(Q + EPS) ~= log(Q); Q >> EPS for any realistic latent distance
            # (relative error <= EPS/Q ~ 1e-6, checked against the reference).
            logq = log_pref_q + c2_q * jnp.log(1.0 + dlat * inv_vs_q)
            q = jnp.exp(logq)
            loss = -(p * logq + (1.0 - p) * jnp.log(1.0 - q + _EPS))

            # zero the global (2B,2B) diagonal: global row = half_id*B + row2.
            diag_mask = col2 == (row2 + half_id * B)
            loss = jnp.where(diag_mask, 0.0, loss)

            loss_ref[pl.ds(h * B, B), :] = loss          # lane-dense (B,2B) store
            total = total + jnp.sum(loss)

        psum_ref[0, 0] = total                           # fused-mean partial sum

    return kernel


def my_loss_intro_forward(
    input_data,
    input_data_aug,
    latent_data,
    latent_data_aug,
    rho=0.0,
    sigma=1.0,
    *,
    v_input=100.0,
    v_latent=0.01,
    sigmaP=1.0,
    sigmaQ=1.0,
    aug_near_rate=100000.0,
):
    # input_data_aug / rho / sigma match the torch signature but, exactly like
    # the reference forward, they are never used.
    del input_data_aug, rho, sigma
    B, D_in = input_data.shape
    _, D_lat = latent_data.shape
    N = 2 * B
    assert B >= 2 and B % 8 == 0, "batch must be >=2 and a multiple of 8 (sublane tiling)"
    # (For lane-dense output stores prefer 2B % 128 == 0; not required.)

    x = input_data.astype(jnp.float32)
    lat_full = jnp.concatenate(                               # host-stacked (2B, D_lat)
        [latent_data.astype(jnp.float32), latent_data_aug.astype(jnp.float32)], axis=0
    )

    num_programs = _num_row_programs()        # 2 only on v7x (2 TensorCores)
    halves_per_program = 2 // num_programs

    kernel = _make_kernel(
        B, D_lat, halves_per_program, v_input, v_latent, sigmaP, sigmaQ, aug_near_rate
    )

    if num_programs == 2:
        lat_row_spec = pl.BlockSpec((B, D_lat), lambda r: (r, 0))
        out_loss_spec = pl.BlockSpec((B, N), lambda r: (r, 0))
        dim_sem = ("parallel",)
    else:
        lat_row_spec = pl.BlockSpec((N, D_lat), lambda r: (0, 0))
        out_loss_spec = pl.BlockSpec((N, N), lambda r: (0, 0))
        dim_sem = ("arbitrary",)

    # VMEM footprint at the reference sizes is a few MiB, far under every
    # chip's scoped default (incl. v7x's 64 MiB physical); no explicit
    # vmem_limit_bytes needed unless B/D_in grow substantially.
    loss_mat, psum = pl.pallas_call(
        kernel,
        out_shape=(
            jax.ShapeDtypeStruct((N, N), jnp.float32),
            jax.ShapeDtypeStruct((num_programs, 1), jnp.float32),
        ),
        grid=(num_programs,),
        in_specs=[
            pl.BlockSpec((B, D_in), lambda r: (0, 0)),
            lat_row_spec,
            pl.BlockSpec((N, D_lat), lambda r: (0, 0)),
        ],
        out_specs=(
            out_loss_spec,
            pl.BlockSpec((1, 1), lambda r: (r, 0), memory_space=pltpu.SMEM),
        ),
        compiler_params=pltpu.CompilerParams(dimension_semantics=dim_sem),
    )(x, lat_full, lat_full)

    # Mean over all N*N entries (diag zeroed but included), from the fused
    # per-program partial sums (<=2 scalars).
    loss_mean = jnp.sum(psum) / float(N * N)

    # TODO(synk): the reference forward also reads 'lab_intro.csv', logs a
    # positive/negative ratio to wandb and calls pdb.set_trace(); these side
    # effects have no Pallas equivalent and do not affect the returned value.
    return loss_mean, loss_mat


def _reference_forward(input_data, latent_data, latent_data_aug, *, v_input, v_latent,
                       sigmaP, sigmaQ, aug_near_rate):
    """Pure-JAX transcription of the torch forward (for validation)."""
    x = input_data.astype(jnp.float32)
    B = x.shape[0]

    def dist2(a, b):
        d = a[:, None, :] - b[None, :, :]
        return jnp.sum(d * d, axis=-1)

    meta = dist2(x, x)
    masked = jnp.where(jnp.eye(B, dtype=bool), jnp.max(meta) + 1.0, meta)
    nn = jnp.min(masked, axis=0) / aug_near_rate
    top = jnp.concatenate([meta, meta + nn[None, :]], axis=1)
    bot = jnp.concatenate([meta + nn[:, None], meta + nn[None, :] + nn[:, None]], axis=1)
    dis = jnp.concatenate([top, bot], axis=0)

    lat = jnp.concatenate(
        [latent_data.astype(jnp.float32), latent_data_aug.astype(jnp.float32)], axis=0
    )
    dlat = dist2(lat, lat)

    def sim(dist, sigma, v):
        g = _cal_gamma(v)
        dr = jnp.maximum(dist / sigma, 0.0)
        return g * _TWO_PI * (1.0 + dr / v) ** (-(v + 1.0) / 2.0)

    P = sim(dis, sigmaP, v_input)
    Q = sim(dlat, sigmaQ, v_latent)
    loss = -(P * jnp.log(Q + _EPS) + (1.0 - P) * jnp.log(1.0 - Q + _EPS))
    loss = jnp.where(jnp.eye(2 * B, dtype=bool), 0.0, loss)
    return jnp.mean(loss), loss


if __name__ == "__main__":
    key = jax.random.PRNGKey(0)
    k1, k2, k3, k4 = jax.random.split(key, 4)
    # lane-aligned stand-ins for the real [128, 2048] / [128, 256]
    B, D_in, D_lat = 128, 256, 128

    input_data = jax.random.normal(k1, (B, D_in), dtype=jnp.float32)
    input_data_aug = input_data + 0.01 * jax.random.normal(k2, (B, D_in), jnp.float32)
    latent_data = jax.random.normal(k3, (B, D_lat), dtype=jnp.float32)
    latent_data_aug = latent_data + 0.01 * jax.random.normal(k4, (B, D_lat), jnp.float32)

    loss_mean, loss_mat = my_loss_intro_forward(
        input_data, input_data_aug, latent_data, latent_data_aug, rho=0.0, sigma=1.0
    )
    jax.block_until_ready((loss_mean, loss_mat))

    assert loss_mat.shape == (2 * B, 2 * B)
    assert bool(jnp.isfinite(loss_mean))

    # Validate against the pure-JAX transcription of the torch forward.
    ref_mean, ref_mat = _reference_forward(
        input_data, latent_data, latent_data_aug,
        v_input=100.0, v_latent=0.01, sigmaP=1.0, sigmaQ=1.0, aug_near_rate=100000.0,
    )
    jax.block_until_ready((ref_mean, ref_mat))
    assert bool(jnp.allclose(loss_mat, ref_mat, rtol=5e-2, atol=1e-3))
    assert bool(jnp.allclose(loss_mean, ref_mean, rtol=5e-2, atol=1e-4))

    print("KERNEL_OK")
</pallas_src>

<mosaic_0001>
module attributes {stable_mosaic.version = 11 : i64} {
  func.func @kernel(%arg0: i32, %arg1: memref<128x256xf32, #tpu.memory_space<vmem>>, %arg2: memref<256x128xf32, #tpu.memory_space<vmem>>, %arg3: memref<256x128xf32, #tpu.memory_space<vmem>>, %arg4: memref<256x256xf32, #tpu.memory_space<vmem>>, %arg5: memref<1x1xf32, #tpu.memory_space<smem>>) attributes {dimension_semantics = [#tpu.dimension_semantics<arbitrary>], iteration_bounds = array<i64: 1>, scalar_prefetch = 0 : i64, scratch_operands = 0 : i64, tpu.core_type = #tpu.core_type<tc>, window_params = [{pipeline_mode = #tpu.pipeline_mode<synchronous>, transform_indices = @transform_0, window_bounds = array<i64: 128, 256>}, {pipeline_mode = #tpu.pipeline_mode<synchronous>, transform_indices = @transform_1, window_bounds = array<i64: 256, 128>}, {pipeline_mode = #tpu.pipeline_mode<synchronous>, transform_indices = @transform_2, window_bounds = array<i64: 256, 128>}, {pipeline_mode = #tpu.pipeline_mode<synchronous>, transform_indices = @transform_3, window_bounds = array<i64: 256, 256>}, {transform_indices = @transform_4, window_bounds = array<i64: 1, 1>}]} {
    %0 = tpu.iota {dimensions = array<i32: 0>} : vector<128x128xi32>
    %1 = tpu.iota {dimensions = array<i32: 1>} : vector<128x128xi32>
    %2 = arith.cmpi eq, %0, %1 : vector<128x128xi32>
    %c0 = arith.constant 0 : index
    %c0_0 = arith.constant 0 : index
    %3 = vector.load %arg1[%c0, %c0_0] : memref<128x256xf32, #tpu.memory_space<vmem>>, vector<128x256xf32>
    %cst = arith.constant dense<0.000000e+00> : vector<128x128xf32>
    %4 = tpu.matmul %3, %3, %cst {dimension_numbers = #tpu.dot_dimension_numbers<[1], [1], [0], [0], [0, 0, 1, 0], [], []>} : vector<128x256xf32>, vector<128x256xf32>, vector<128x128xf32> -> vector<128x128xf32>
    %cst_1 = arith.constant 0.000000e+00 : f32
    %5 = vector.broadcast %cst_1 : f32 to vector<128x128xf32>
    %6 = arith.select %2, %4, %5 : vector<128x128xi1>, vector<128x128xf32>
    %cst_2 = arith.constant dense<0.000000e+00> : vector<128xf32>
    %7 = vector.multi_reduction <add>, %6, %cst_2 [1] : vector<128x128xf32> to vector<128xf32>
    %8 = vector.shape_cast %7 : vector<128xf32> to vector<128x1xf32>
    %cst_3 = arith.constant dense<0.000000e+00> : vector<128xf32>
    %9 = vector.multi_reduction <add>, %6, %cst_3 [0] : vector<128x128xf32> to vector<128xf32>
    %10 = vector.shape_cast %9 : vector<128xf32> to vector<1x128xf32>
    %11 = vector.broadcast %8 : vector<128x1xf32> to vector<128x128xf32>
    %12 = vector.broadcast %10 : vector<1x128xf32> to vector<128x128xf32>
    %13 = arith.addf %11, %12 : vector<128x128xf32>
    %cst_4 = arith.constant 2.000000e+00 : f32
    %14 = vector.broadcast %cst_4 : f32 to vector<128x128xf32>
    %15 = arith.mulf %14, %4 : vector<128x128xf32>
    %16 = arith.subf %13, %15 : vector<128x128xf32>
    %cst_5 = arith.constant 0.000000e+00 : f32
    %17 = vector.broadcast %cst_5 : f32 to vector<128x128xf32>
    %18 = arith.maximumf %16, %17 : vector<128x128xf32>
    %cst_6 = arith.constant 1.000000e+30 : f32
    %19 = vector.broadcast %cst_6 : f32 to vector<128x128xf32>
    %20 = arith.select %2, %19, %18 : vector<128x128xi1>, vector<128x128xf32>
    %cst_7 = arith.constant dense<0x7F800000> : vector<128xf32>
    %21 = vector.multi_reduction <minimumf>, %20, %cst_7 [0] : vector<128x128xf32> to vector<128xf32>
    %22 = vector.shape_cast %21 : vector<128xf32> to vector<1x128xf32>
    %cst_8 = arith.constant 9.99999974E-6 : f32
    %23 = vector.broadcast %cst_8 : f32 to vector<1x128xf32>
    %24 = arith.mulf %22, %23 : vector<1x128xf32>
    %cst_9 = arith.constant dense<0x7F800000> : vector<128xf32>
    %25 = vector.multi_reduction <minimumf>, %20, %cst_9 [1] : vector<128x128xf32> to vector<128xf32>
    %26 = vector.shape_cast %25 : vector<128xf32> to vector<128x1xf32>
    %cst_10 = arith.constant 9.99999974E-6 : f32
    %27 = vector.broadcast %cst_10 : f32 to vector<128x1xf32>
    %28 = arith.mulf %26, %27 : vector<128x1xf32>
    %29 = vector.broadcast %24 : vector<1x128xf32> to vector<128x128xf32>
    %30 = arith.addf %18, %29 : vector<128x128xf32>
    %31 = tpu.concatenate %18, %30 in 1 : vector<128x128xf32>, vector<128x128xf32> -> vector<128x256xf32>
    %c0_11 = arith.constant 0 : index
    %c0_12 = arith.constant 0 : index
    %32 = vector.load %arg3[%c0_11, %c0_12] : memref<256x128xf32, #tpu.memory_space<vmem>>, vector<256x128xf32>
    %cst_13 = arith.constant 1.000000e+00 : f32
    %33 = vector.broadcast %cst_13 : f32 to vector<1x128xf32>
    %34 = arith.mulf %32, %32 : vector<256x128xf32>
    %cst_14 = arith.constant dense<0.000000e+00> : vector<1x256xf32>
    %35 = tpu.matmul %33, %34, %cst_14 {dimension_numbers = #tpu.dot_dimension_numbers<[1], [1], [0], [0], [0, 0, 1, 0], [], []>} : vector<1x128xf32>, vector<256x128xf32>, vector<1x256xf32> -> vector<1x256xf32>
    %36 = tpu.iota {dimensions = array<i32: 0>} : vector<128x256xi32>
    %37 = tpu.iota {dimensions = array<i32: 1>} : vector<128x256xi32>
    %c0_15 = arith.constant 0 : index
    %c0_16 = arith.constant 0 : index
    %38 = vector.load %arg2[%c0_15, %c0_16] : memref<256x128xf32, #tpu.memory_space<vmem>>, vector<128x128xf32>
    %39 = arith.mulf %38, %38 : vector<128x128xf32>
    %cst_17 = arith.constant dense<0.000000e+00> : vector<128xf32>
    %40 = vector.multi_reduction <add>, %39, %cst_17 [1] : vector<128x128xf32> to vector<128xf32>
    %41 = vector.shape_cast %40 : vector<128xf32> to vector<128x1xf32>
    %cst_18 = arith.constant dense<0.000000e+00> : vector<128x256xf32>
    %42 = tpu.matmul %38, %32, %cst_18 {dimension_numbers = #tpu.dot_dimension_numbers<[1], [1], [0], [0], [0, 0, 1, 0], [], []>} : vector<128x128xf32>, vector<256x128xf32>, vector<128x256xf32> -> vector<128x256xf32>
    %43 = vector.broadcast %41 : vector<128x1xf32> to vector<128x256xf32>
    %44 = vector.broadcast %35 : vector<1x256xf32> to vector<128x256xf32>
    %45 = arith.addf %43, %44 : vector<128x256xf32>
    %cst_19 = arith.constant 2.000000e+00 : f32
    %46 = vector.broadcast %cst_19 : f32 to vector<128x256xf32>
    %47 = arith.mulf %46, %42 : vector<128x256xf32>
    %48 = arith.subf %45, %47 : vector<128x256xf32>
    %cst_20 = arith.constant 0.000000e+00 : f32
    %49 = vector.broadcast %cst_20 : f32 to vector<128x256xf32>
    %50 = arith.maximumf %48, %49 : vector<128x256xf32>
    %cst_21 = arith.constant 0.00999999977 : f32
    %51 = vector.broadcast %cst_21 : f32 to vector<128x256xf32>
    %52 = arith.mulf %31, %51 : vector<128x256xf32>
    %cst_22 = arith.constant 1.000000e+00 : f32
    %53 = vector.broadcast %cst_22 : f32 to vector<128x256xf32>
    %54 = arith.addf %53, %52 : vector<128x256xf32>
    %55 = math.log %54 : vector<128x256xf32>
    %cst_23 = arith.constant -5.050000e+01 : f32
    %56 = vector.broadcast %cst_23 : f32 to vector<128x256xf32>
    %57 = arith.mulf %56, %55 : vector<128x256xf32>
    %58 = math.exp %57 : vector<128x256xf32>
    %cst_24 = arith.constant 2.50036955 : f32
    %59 = vector.broadcast %cst_24 : f32 to vector<128x256xf32>
    %60 = arith.mulf %59, %58 : vector<128x256xf32>
    %cst_25 = arith.constant 1.000000e+02 : f32
    %61 = vector.broadcast %cst_25 : f32 to vector<128x256xf32>
    %62 = arith.mulf %50, %61 : vector<128x256xf32>
    %cst_26 = arith.constant 1.000000e+00 : f32
    %63 = vector.broadcast %cst_26 : f32 to vector<128x256xf32>
    %64 = arith.addf %63, %62 : vector<128x256xf32>
    %65 = math.log %64 : vector<128x256xf32>
    %cst_27 = arith.constant -5.050000e-01 : f32
    %66 = vector.broadcast %cst_27 : f32 to vector<128x256xf32>
    %67 = arith.mulf %66, %65 : vector<128x256xf32>
    %cst_28 = arith.constant -1.16474581 : f32
    %68 = vector.broadcast %cst_28 : f32 to vector<128x256xf32>
    %69 = arith.addf %68, %67 : vector<128x256xf32>
    %70 = math.exp %69 : vector<128x256xf32>
    %71 = arith.mulf %60, %69 : vector<128x256xf32>
    %cst_29 = arith.constant 1.000000e+00 : f32
    %72 = vector.broadcast %cst_29 : f32 to vector<128x256xf32>
    %73 = arith.subf %72, %60 : vector<128x256xf32>
    %cst_30 = arith.constant 1.000000e+00 : f32
    %74 = vector.broadcast %cst_30 : f32 to vector<128x256xf32>
    %75 = arith.subf %74, %70 : vector<128x256xf32>
    %cst_31 = arith.constant 9.99999996E-13 : f32
    %76 = vector.broadcast %cst_31 : f32 to vector<128x256xf32>
    %77 = arith.addf %75, %76 : vector<128x256xf32>
    %78 = math.log %77 : vector<128x256xf32>
    %79 = arith.mulf %73, %78 : vector<128x256xf32>
    %80 = arith.addf %71, %79 : vector<128x256xf32>
    %cst_32 = arith.constant 0.000000e+00 : f32
    %81 = vector.broadcast %cst_32 : f32 to vector<128x256xf32>
    %82 = arith.subf %81, %80 : vector<128x256xf32>
    %c0_i32 = arith.constant 0 : i32
    %83 = vector.broadcast %c0_i32 : i32 to vector<128x256xi32>
    %84 = arith.addi %36, %83 : vector<128x256xi32>
    %85 = arith.cmpi eq, %37, %84 : vector<128x256xi32>
    %cst_33 = arith.constant 0.000000e+00 : f32
    %86 = vector.broadcast %cst_33 : f32 to vector<128x256xf32>
    %87 = arith.select %85, %86, %82 : vector<128x256xi1>, vector<128x256xf32>
    %c0_34 = arith.constant 0 : index
    %c0_35 = arith.constant 0 : index
    %88 = vector.load %arg4[%c0_34, %c0_35] : memref<256x256xf32, #tpu.memory_space<vmem>>, vector<128x256xf32>
    tpu.vector_store %arg4[%c0_34, %c0_35], %87 {strides = array<i32>} : memref<256x256xf32, #tpu.memory_space<vmem>>, vector<128x256xf32>,
    %89 = vector.shape_cast %87 : vector<128x256xf32> to vector<1x128x256xf32>
    %cst_36 = arith.constant dense<0.000000e+00> : vector<1xf32>
    %90 = vector.multi_reduction <add>, %89, %cst_36 [1, 2] : vector<1x128x256xf32> to vector<1xf32>
    %91 = vector.shape_cast %90 : vector<1xf32> to vector<1x1x1xf32>
    %92 = vector.extract %91[0, 0, 0] : f32 from vector<1x1x1xf32>
    %cst_37 = arith.constant 0.000000e+00 : f32
    %93 = arith.addf %cst_37, %92 : f32
    %c128 = arith.constant 128 : index
    %c0_38 = arith.constant 0 : index
    %94 = vector.load %arg2[%c128, %c0_38] : memref<256x128xf32, #tpu.memory_space<vmem>>, vector<128x128xf32>
    %95 = vector.broadcast %28 : vector<128x1xf32> to vector<128x256xf32>
    %96 = arith.addf %31, %95 : vector<128x256xf32>
    %97 = arith.mulf %94, %94 : vector<128x128xf32>
    %cst_39 = arith.constant dense<0.000000e+00> : vector<128xf32>
    %98 = vector.multi_reduction <add>, %97, %cst_39 [1] : vector<128x128xf32> to vector<128xf32>
    %99 = vector.shape_cast %98 : vector<128xf32> to vector<128x1xf32>
    %cst_40 = arith.constant dense<0.000000e+00> : vector<128x256xf32>
    %100 = tpu.matmul %94, %32, %cst_40 {dimension_numbers = #tpu.dot_dimension_numbers<[1], [1], [0], [0], [0, 0, 1, 0], [], []>} : vector<128x128xf32>, vector<256x128xf32>, vector<128x256xf32> -> vector<128x256xf32>
    %101 = vector.broadcast %99 : vector<128x1xf32> to vector<128x256xf32>
    %102 = vector.broadcast %35 : vector<1x256xf32> to vector<128x256xf32>
    %103 = arith.addf %101, %102 : vector<128x256xf32>
    %cst_41 = arith.constant 2.000000e+00 : f32
    %104 = vector.broadcast %cst_41 : f32 to vector<128x256xf32>
    %105 = arith.mulf %104, %100 : vector<128x256xf32>
    %106 = arith.subf %103, %105 : vector<128x256xf32>
    %cst_42 = arith.constant 0.000000e+00 : f32
    %107 = vector.broadcast %cst_42 : f32 to vector<128x256xf32>
    %108 = arith.maximumf %106, %107 : vector<128x256xf32>
    %cst_43 = arith.constant 0.00999999977 : f32
    %109 = vector.broadcast %cst_43 : f32 to vector<128x256xf32>
    %110 = arith.mulf %96, %109 : vector<128x256xf32>
    %cst_44 = arith.constant 1.000000e+00 : f32
    %111 = vector.broadcast %cst_44 : f32 to vector<128x256xf32>
    %112 = arith.addf %111, %110 : vector<128x256xf32>
    %113 = math.log %112 : vector<128x256xf32>
    %cst_45 = arith.constant -5.050000e+01 : f32
    %114 = vector.broadcast %cst_45 : f32 to vector<128x256xf32>
    %115 = arith.mulf %114, %113 : vector<128x256xf32>
    %116 = math.exp %115 : vector<128x256xf32>
    %cst_46 = arith.constant 2.50036955 : f32
    %117 = vector.broadcast %cst_46 : f32 to vector<128x256xf32>
    %118 = arith.mulf %117, %116 : vector<128x256xf32>
    %cst_47 = arith.constant 1.000000e+02 : f32
    %119 = vector.broadcast %cst_47 : f32 to vector<128x256xf32>
    %120 = arith.mulf %108, %119 : vector<128x256xf32>
    %cst_48 = arith.constant 1.000000e+00 : f32
    %121 = vector.broadcast %cst_48 : f32 to vector<128x256xf32>
    %122 = arith.addf %121, %120 : vector<128x256xf32>
    %123 = math.log %122 : vector<128x256xf32>
    %cst_49 = arith.constant -5.050000e-01 : f32
    %124 = vector.broadcast %cst_49 : f32 to vector<128x256xf32>
    %125 = arith.mulf %124, %123 : vector<128x256xf32>
    %cst_50 = arith.constant -1.16474581 : f32
    %126 = vector.broadcast %cst_50 : f32 to vector<128x256xf32>
    %127 = arith.addf %126, %125 : vector<128x256xf32>
    %128 = math.exp %127 : vector<128x256xf32>
    %129 = arith.mulf %118, %127 : vector<128x256xf32>
    %cst_51 = arith.constant 1.000000e+00 : f32
    %130 = vector.broadcast %cst_51 : f32 to vector<128x256xf32>
    %131 = arith.subf %130, %118 : vector<128x256xf32>
    %cst_52 = arith.constant 1.000000e+00 : f32
    %132 = vector.broadcast %cst_52 : f32 to vector<128x256xf32>
    %133 = arith.subf %132, %128 : vector<128x256xf32>
    %cst_53 = arith.constant 9.99999996E-13 : f32
    %134 = vector.broadcast %cst_53 : f32 to vector<128x256xf32>
    %135 = arith.addf %133, %134 : vector<128x256xf32>
    %136 = math.log %135 : vector<128x256xf32>
    %137 = arith.mulf %131, %136 : vector<128x256xf32>
    %138 = arith.addf %129, %137 : vector<128x256xf32>
    %cst_54 = arith.constant 0.000000e+00 : f32
    %139 = vector.broadcast %cst_54 : f32 to vector<128x256xf32>
    %140 = arith.subf %139, %138 : vector<128x256xf32>
    %c128_i32 = arith.constant 128 : i32
    %141 = vector.broadcast %c128_i32 : i32 to vector<128x256xi32>
    %142 = arith.addi %36, %141 : vector<128x256xi32>
    %143 = arith.cmpi eq, %37, %142 : vector<128x256xi32>
    %cst_55 = arith.constant 0.000000e+00 : f32
    %144 = vector.broadcast %cst_55 : f32 to vector<128x256xf32>
    %145 = arith.select %143, %144, %140 : vector<128x256xi1>, vector<128x256xf32>
    %c128_56 = arith.constant 128 : index
    %c0_57 = arith.constant 0 : index
    %146 = vector.load %arg4[%c128_56, %c0_57] : memref<256x256xf32, #tpu.memory_space<vmem>>, vector<128x256xf32>
    tpu.vector_store %arg4[%c128_56, %c0_57], %145 {strides = array<i32>} : memref<256x256xf32, #tpu.memory_space<vmem>>, vector<128x256xf32>,
    %147 = vector.shape_cast %145 : vector<128x256xf32> to vector<1x128x256xf32>
    %cst_58 = arith.constant dense<0.000000e+00> : vector<1xf32>
    %148 = vector.multi_reduction <add>, %147, %cst_58 [1, 2] : vector<1x128x256xf32> to vector<1xf32>
    %149 = vector.shape_cast %148 : vector<1xf32> to vector<1x1x1xf32>
    %150 = vector.extract %149[0, 0, 0] : f32 from vector<1x1x1xf32>
    %151 = arith.addf %93, %150 : f32
    %c0_59 = arith.constant 0 : index
    %c0_60 = arith.constant 0 : index
    %152 = memref.load %arg5[%c0_59, %c0_60] : memref<1x1xf32, #tpu.memory_space<smem>>
    memref.store %151, %arg5[%c0_59, %c0_60] : memref<1x1xf32, #tpu.memory_space<smem>>
    return
  }
  func.func @transform_0(%arg0: i32) -> (i32, i32) {
    %c0_i32 = arith.constant 0 : i32
    %c0_i32_0 = arith.constant 0 : i32
    %c0_i32_1 = arith.constant 0 : i32
    return %c0_i32, %c0_i32_0 : i32, i32
  }
  func.func @transform_1(%arg0: i32) -> (i32, i32) {
    %c0_i32 = arith.constant 0 : i32
    %c0_i32_0 = arith.constant 0 : i32
    %c0_i32_1 = arith.constant 0 : i32
    return %c0_i32, %c0_i32_0 : i32, i32
  }
  func.func @transform_2(%arg0: i32) -> (i32, i32) {
    %c0_i32 = arith.constant 0 : i32
    %c0_i32_0 = arith.constant 0 : i32
    %c0_i32_1 = arith.constant 0 : i32
    return %c0_i32, %c0_i32_0 : i32, i32
  }
  func.func @transform_3(%arg0: i32) -> (i32, i32) {
    %c0_i32 = arith.constant 0 : i32
    %c0_i32_0 = arith.constant 0 : i32
    %c0_i32_1 = arith.constant 0 : i32
    return %c0_i32, %c0_i32_0 : i32, i32
  }
  func.func @transform_4(%arg0: i32) -> (i32, i32) {
    %c0_i32 = arith.constant 0 : i32
    %c0_i32_0 = arith.constant 0 : i32
    return %arg0, %c0_i32 : i32, i32
  }
}

</mosaic_0001>

<bundles_post_ra>
// kernel: tpu_custom_call.1
= control target key start
LH: loop header
LB: loop body
LE: loop exit
PB: predicated region body
PF: predicated region fallthrough
CT: control target
= control target key end

     0   :  { %10 = vsyncpa [#allocation3], 0  ;;  %s6221_s0 = inlined_call_operand.hbm [shape: f32[128,256], index: 0, kind: input, shape index: {}]   ;;  %s6222_s1 = inlined_call_operand.hbm [shape: f32[256,128], index: 1, kind: input, shape index: {}]   ;;  %s6223_s2 = inlined_call_operand.hbm [shape: f32[256,128], index: 2, kind: input, shape index: {}]   ;;  %s6224_s3 = inlined_call_operand.hbm [shape: f32[256,256], index: 3, kind: output, shape index: {0}]   ;;  %s6225_s4 = inlined_call_operand.hbm [shape: f32[1,1], index: 4, kind: output, shape index: {1}]  }
   0x1   :  { %11 = vsyncpa [#allocation7], 0 }
   0x2   :  { %12 = vsyncpa [#allocation4], 0  ;;  %s31_s17 = sshll.u32 %s6222_s1, 4  ;;  %s32_s17 = int_to_ptr.hbm [resolvable:$true] %s31_s17 }
   0x3   :  { %13 = vsyncpa [#allocation5], 0  ;;  %s4023_s18 = smov [#allocation6]   ;;  %s18_s22 = sshll.u32 %s6221_s0, 4  ;;  %s19_s22 = int_to_ptr.hbm [resolvable:$true] %s18_s22 }
   0x4   :  { %s33_s19 = sshll.u32 %s4023_s18, 4  ;;  %s4024_s23 = smov 128   ;;  %s34_s19 = int_to_ptr.vmem [resolvable:$true] %s33_s19 }
   0x5   :  { %s4025_s24 = smov 8   ;;  %s4026_s25 = smov [#allocation2]  }
   0x6   :  { %39 = dma.hbm_to_vmem [thread:$0]  %s32_s17, 4096, %s34_s19, [#allocation7], %s4024_s23, %s4024_s23, %s4025_s24  }
   0x7   :  { %s20_s26 = sshll.u32 %s4026_s25, 4  ;;  %s4027_s27 = smov 256   ;;  %s21_s26 = int_to_ptr.vmem [resolvable:$true] %s20_s26 }
   0x8   :  { %s4028_s28 = smov 16   ;;  %s44_s30 = sshll.u32 %s6223_s2, 4  ;;  %s45_s30 = int_to_ptr.hbm [resolvable:$true] %s44_s30 }
   0x9   :  { %26 = dma.hbm_to_vmem [thread:$0]  %s19_s22, 4096, %s21_s26, [#allocation3], %s4027_s27, %s4027_s27, %s4028_s28  }
   0xa   :  { %s4029_s5 = smov [#allocation8]  }
   0xb   :  { %s46_s0 = sshll.u32 %s4029_s5, 4  ;;  %s47_s0 = int_to_ptr.vmem [resolvable:$true] %s46_s0 }
   0xc   :  { %52 = dma.hbm_to_vmem [thread:$0]  %s45_s30, 4096, %s47_s0, [#allocation7], %s4024_s23, %s4024_s23, %s4025_s24  }
   0xd   :  { %4015 = dma.done.wait [#allocation3], 4096  }
   0xe   :  { %4016 = vsyncadd [#allocation3], 4294963200 }
   0xf   :  { %4017 = dma.done.wait [#allocation7], 8192  }
  0x10   :  { %4018 = vsyncadd [#allocation7], 4294959104  ;;  %v4070_v0 = vld [vmem:[#allocation2 + $0xf0] sm:$0xff]  ;;  %v4072_v1 = vld [vmem:[#allocation2 + $0xf8] sm:$0xff]  ;;  %s3178_s7 = sshll.u32 %s6224_s3, 4  ;;  %s4031_s8 = smov [#allocation9]   ;;  %s3179_s7 = int_to_ptr.hbm [resolvable:$true] %s3178_s7 }
  0x11   :  { %6339 = vst [vmem:[#allocation15_spill] sm:$0xff] %v4070_v0  ;;  %132 = vmatpush.xpose.msra.mxu0 %v4070_v0  ;;  %197 = vmatpush.xpose.msra.mxu1 %v4072_v1  ;;  %v4076_v2 = vld [vmem:[#allocation2 + $0xe0] sm:$0xff]  ;;  %v4078_v3 = vld [vmem:[#allocation2 + $0xe8] sm:$0xff]  ;;  %v4082_v4 = vld [vmem:[#allocation8 + $0x78] sm:$0xff]  ;;  %s3176_s9 = sshll.u32 %s4031_s8, 4  ;;  %s3190_s11 = sshll.u32 %s6225_s4, 4  ;;  %s3177_s9 = int_to_ptr.vmem [resolvable:$true] %s3176_s9  ;;  %s3191_s11 = int_to_ptr.hbm [resolvable:$true] %s3190_s11 }
  0x12   :  { %6340 = vst [vmem:[#allocation16_spill] sm:$0xff] %v4072_v1  ;;  %v4084_v5 = vld [vmem:[#allocation8 + $0xf8] sm:$0xff]  ;;  %v4086_v6 = vld [vmem:[#allocation2 + $0xd0] sm:$0xff]  ;;  %v544_v8 = vmul.f32 %v4082_v4, %v4082_v4  ;;  %v4104_v14 = vld [vmem:[#allocation8 + $0x68] sm:$0xff]  ;;  %s4032_s15 = smov [#allocation10]  }
  0x13   :  { %6341 = vst [vmem:[#allocation17_spill] sm:$0xff] %v4076_v2  ;;  %v4088_v7 = vld [vmem:[#allocation2 + $0xd8] sm:$0xff]  ;;  %v560_v9 = vmul.f32 %v4084_v5, %v4084_v5  ;;  %v4094_v10 = vld [vmem:[#allocation8 + $0x70] sm:$0xff]  ;;  %v4106_v15 = vld [vmem:[#allocation8 + $0xe8] sm:$0xff]  ;;  %v542_v18 = vmul.f32 %v4104_v14, %v4104_v14 }
  0x14   :  { %6342 = vst [vmem:[#allocation18_spill] sm:$0xff] %v4078_v3  ;;  %v4096_v11 = vld [vmem:[#allocation8 + $0xf0] sm:$0xff]  ;;  %561 = vmatpush.xpose.msra.mxu2 %v544_v8  ;;  %v543_v12 = vmul.f32 %v4094_v10, %v4094_v10  ;;  %v4108_v16 = vld [vmem:[#allocation2 + $0xc0] sm:$0xff]  ;;  %v4110_v17 = vld [vmem:[#allocation2 + $0xc8] sm:$0xff]  ;;  %v558_v19 = vmul.f32 %v4106_v15, %v4106_v15 }
  0x15   :  { %133 = vmatpush.xpose.msra.mxu0 %v4076_v2  ;;  %198 = vmatpush.xpose.msra.mxu1 %v4078_v3  ;;  %v559_v13 = vmul.f32 %v4096_v11, %v4096_v11  ;;  %v4118_v20 = vld [vmem:[#allocation8 + $0x60] sm:$0xff]  ;;  %v4122_v22 = vld [vmem:[#allocation2 + $0xb0] sm:$0xff]  ;;  %v4124_v23 = vld [vmem:[#allocation2 + $0xb8] sm:$0xff] }
  0x16   :  { %581 = vmatpush.xpose.msra.mxu3 %v560_v9  ;;  %v4120_v21 = vld [vmem:[#allocation8 + $0xe0] sm:$0xff]  ;;  %v541_v24 = vmul.f32 %v4118_v20, %v4118_v20  ;;  %v4132_v26 = vld [vmem:[#allocation8 + $0x58] sm:$0xff]  ;;  %v4138_v29 = vld [vmem:[#allocation2 + $0xa8] sm:$0xff] }
  0x17   :  { %v557_v25 = vmul.f32 %v4120_v21, %v4120_v21  ;;  %v4134_v27 = vld [vmem:[#allocation8 + $0xd8] sm:$0xff]  ;;  %v4136_v28 = vld [vmem:[#allocation2 + $0xa0] sm:$0xff]  ;;  %v540_v30 = vmul.f32 %v4132_v26, %v4132_v26  ;;  %v4146_v32 = vld [vmem:[#allocation8 + $0x50] sm:$0xff] }
  0x18   :  { %562 = vmatpush.xpose.msra.mxu2 %v543_v12  ;;  %v556_v31 = vmul.f32 %v4134_v27, %v4134_v27  ;;  %v4148_v33 = vld [vmem:[#allocation8 + $0xd0] sm:$0xff]  ;;  %v4152_v35 = vld [vmem:[#allocation2 + $0x98] sm:$0xff]  ;;  %v539_v36 = vmul.f32 %v4146_v32, %v4146_v32  ;;  %v4160_v38 = vld [vmem:[#allocation8 + $0x48] sm:$0xff] }
  0x19   :  { %134 = vmatpush.xpose.msra.mxu0 %v4086_v6  ;;  %199 = vmatpush.xpose.msra.mxu1 %v4088_v7  ;;  %v4150_v34 = vld [vmem:[#allocation2 + $0x90] sm:$0xff]  ;;  %v555_v37 = vmul.f32 %v4148_v33, %v4148_v33  ;;  %v4162_v39 = vld [vmem:[#allocation8 + $0xc8] sm:$0xff]  ;;  %v4164_v40 = vld [vmem:[#allocation2 + $0x80] sm:$0xff]  ;;  %v538_v42 = vmul.f32 %v4160_v38, %v4160_v38 }
  0x1a   :  { %582 = vmatpush.xpose.msra.mxu3 %v559_v13  ;;  %v4166_v41 = vld [vmem:[#allocation2 + $0x88] sm:$0xff]  ;;  %v554_v43 = vmul.f32 %v4162_v39, %v4162_v39  ;;  %v4174_v44 = vld [vmem:[#allocation8 + $0x40] sm:$0xff]  ;;  %v4178_v46 = vld [vmem:[#allocation2 + $0x70] sm:$0xff] }
  0x1b   :  { %v4176_v45 = vld [vmem:[#allocation8 + $0xc0] sm:$0xff]  ;;  %v4180_v47 = vld [vmem:[#allocation2 + $0x78] sm:$0xff]  ;;  %v537_v48 = vmul.f32 %v4174_v44, %v4174_v44  ;;  %v4194_v53 = vld [vmem:[#allocation2 + $0x68] sm:$0xff] }
  0x1c   :  { %563 = vmatpush.xpose.msra.mxu2 %v542_v18  ;;  %v553_v49 = vmul.f32 %v4176_v45, %v4176_v45  ;;  %v4188_v50 = vld [vmem:[#allocation8 + $0x38] sm:$0xff]  ;;  %v4192_v52 = vld [vmem:[#allocation2 + $0x60] sm:$0xff]  ;;  %v4202_v56 = vld [vmem:[#allocation8 + $0x30] sm:$0xff] }
  0x1d   :  { %135 = vmatpush.xpose.msra.mxu0 %v4108_v16  ;;  %200 = vmatpush.xpose.msra.mxu1 %v4110_v17  ;;  %v4190_v51 = vld [vmem:[#allocation8 + $0xb8] sm:$0xff]  ;;  %v536_v54 = vmul.f32 %v4188_v50, %v4188_v50  ;;  %v4204_v57 = vld [vmem:[#allocation8 + $0xb0] sm:$0xff]  ;;  %v535_v60 = vmul.f32 %v4202_v56, %v4202_v56  ;;  %v4216_v62 = vld [vmem:[#allocation8 + $0x28] sm:$0xff] }
  0x1e   :  { %583 = vmatpush.xpose.msra.mxu3 %v558_v19  ;;  %v552_v55 = vmul.f32 %v4190_v51, %v4190_v51  ;;  %v4206_v58 = vld [vmem:[#allocation2 + $0x50] sm:$0xff]  ;;  %v4208_v59 = vld [vmem:[#allocation2 + $0x58] sm:$0xff]  ;;  %v551_v61 = vmul.f32 %v4204_v57, %v4204_v57  ;;  %v4218_v63 = vld [vmem:[#allocation8 + $0xa8] sm:$0xff]  ;;  %v534_v12 = vmul.f32 %v4216_v62, %v4216_v62 }
  0x1f   :  { %v4220_v8 = vld [vmem:[#allocation2 + $0x40] sm:$0xff]  ;;  %v4222_v9 = vld [vmem:[#allocation2 + $0x48] sm:$0xff]  ;;  %v550_v13 = vmul.f32 %v4218_v63, %v4218_v63 }
  0x20   :  { %564 = vmatpush.xpose.msra.mxu2 %v541_v24  ;;  %v4230_v18 = vld [vmem:[#allocation8 + $0x20] sm:$0xff]  ;;  %v4234_v24 = vld [vmem:[#allocation2 + $0x30] sm:$0xff]  ;;  %v4260_v1 = vld [vmem:[#allocation8 + $0x8] sm:$0xff] }
  0x21   :  { %136 = vmatpush.xpose.msra.mxu0 %v4122_v22  ;;  %201 = vmatpush.xpose.msra.mxu1 %v4124_v23  ;;  %v4232_v19 = vld [vmem:[#allocation8 + $0xa0] sm:$0xff]  ;;  %v4262_v0 = vld [vmem:[#allocation8 + $0x88] sm:$0xff] }
  0x22   :  { %584 = vmatpush.xpose.msra.mxu3 %v557_v25  ;;  %v4236_v25 = vld [vmem:[#allocation2 + $0x38] sm:$0xff]  ;;  %v4268_v3 = vld [vmem:[#allocation8] sm:$0xff] }
  0x23   :  { %v4270_v2 = vld [vmem:[#allocation8 + $0x80] sm:$0xff] }
  0x24   :  { %565 = vmatpush.xpose.msra.mxu2 %v540_v30  ;;  %v533_v30 = vmul.f32 %v4230_v18, %v4230_v18 }
  0x25   :  { %137 = vmatpush.xpose.msra.mxu0 %v4136_v28  ;;  %202 = vmatpush.xpose.msra.mxu1 %v4138_v29 }
  0x26   :  { %585 = vmatpush.xpose.msra.mxu3 %v556_v31  ;;  %v549_v31 = vmul.f32 %v4232_v19, %v4232_v19 }
  0x28   :  { %566 = vmatpush.xpose.msra.mxu2 %v539_v36  ;;  %v4244_v36 = vld [vmem:[#allocation8 + $0x18] sm:$0xff] }
  0x29   :  { %138 = vmatpush.xpose.msra.mxu0 %v4150_v34  ;;  %203 = vmatpush.xpose.msra.mxu1 %v4152_v35 }
  0x2a   :  { %586 = vmatpush.xpose.msra.mxu3 %v555_v37  ;;  %v4246_v37 = vld [vmem:[#allocation8 + $0x98] sm:$0xff] }
  0x2c   :  { %567 = vmatpush.xpose.msra.mxu2 %v538_v42  ;;  %v104_v42 = vld [vmem:[#allocation2 + $0x20] sm:$0xff] }
  0x2d   :  { %139 = vmatpush.xpose.msra.mxu0 %v4164_v40  ;;  %204 = vmatpush.xpose.msra.mxu1 %v4166_v41 }
  0x2e   :  { %587 = vmatpush.xpose.msra.mxu3 %v554_v43  ;;  %v105_v43 = vld [vmem:[#allocation2 + $0x28] sm:$0xff] }
  0x30   :  { %568 = vmatpush.xpose.msra.mxu2 %v537_v48  ;;  %v532_v48 = vmul.f32 %v4244_v36, %v4244_v36 }
  0x31   :  { %140 = vmatpush.xpose.msra.mxu0 %v4178_v46  ;;  %205 = vmatpush.xpose.msra.mxu1 %v4180_v47 }
  0x32   :  { %588 = vmatpush.xpose.msra.mxu3 %v553_v49  ;;  %v548_v49 = vmul.f32 %v4246_v37, %v4246_v37 }
  0x34   :  { %569 = vmatpush.xpose.msra.mxu2 %v536_v54  ;;  %v4252_v54 = vld [vmem:[#allocation8 + $0x10] sm:$0xff] }
  0x35   :  { %141 = vmatpush.xpose.msra.mxu0 %v4192_v52  ;;  %206 = vmatpush.xpose.msra.mxu1 %v4194_v53 }
  0x36   :  { %589 = vmatpush.xpose.msra.mxu3 %v552_v55  ;;  %v4254_v55 = vld [vmem:[#allocation8 + $0x90] sm:$0xff] }
  0x38   :  { %570 = vmatpush.xpose.msra.mxu2 %v535_v60  ;;  %v102_v60 = vld [vmem:[#allocation2 + $0x10] sm:$0xff] }
  0x39   :  { %142 = vmatpush.xpose.msra.mxu0 %v4206_v58  ;;  %207 = vmatpush.xpose.msra.mxu1 %v4208_v59 }
  0x3a   :  { %590 = vmatpush.xpose.msra.mxu3 %v551_v61  ;;  %v103_v61 = vld [vmem:[#allocation2 + $0x18] sm:$0xff] }
  0x3c   :  { %571 = vmatpush.xpose.msra.mxu2 %v534_v12  ;;  %v531_v12 = vmul.f32 %v4252_v54, %v4252_v54 }
  0x3d   :  { %143 = vmatpush.xpose.msra.mxu0 %v4220_v8  ;;  %208 = vmatpush.xpose.msra.mxu1 %v4222_v9 }
  0x3e   :  { %591 = vmatpush.xpose.msra.mxu3 %v550_v13  ;;  %v547_v13 = vmul.f32 %v4254_v55, %v4254_v55 }
  0x40   :  { %572 = vmatpush.xpose.msra.mxu2 %v533_v30  ;;  %v100_v30 = vld [vmem:[#allocation2] sm:$0xff] }
  0x41   :  { %144 = vmatpush.xpose.msra.mxu0 %v4234_v24  ;;  %209 = vmatpush.xpose.msra.mxu1 %v4236_v25 }
  0x42   :  { %592 = vmatpush.xpose.msra.mxu3 %v549_v31  ;;  %v101_v31 = vld [vmem:[#allocation2 + $0x8] sm:$0xff] }
  0x44   :  { %573 = vmatpush.xpose.msra.mxu2 %v532_v48  ;;  %v530_v48 = vmul.f32 %v4260_v1, %v4260_v1 }
  0x45   :  { %145 = vmatpush.xpose.msra.mxu0 %v104_v42  ;;  %210 = vmatpush.xpose.msra.mxu1 %v105_v43 }
  0x46   :  { %593 = vmatpush.xpose.msra.mxu3 %v548_v49  ;;  %v546_v49 = vmul.f32 %v4262_v0, %v4262_v0 }
  0x48   :  { %574 = vmatpush.xpose.msra.mxu2 %v531_v12  ;;  %v529_v12 = vmul.f32 %v4268_v3, %v4268_v3 }
  0x49   :  { %146 = vmatpush.xpose.msra.mxu0 %v102_v60  ;;  %211 = vmatpush.xpose.msra.mxu1 %v103_v61 }
  0x4a   :  { %594 = vmatpush.xpose.msra.mxu3 %v547_v13  ;;  %v545_v13 = vmul.f32 %v4270_v2, %v4270_v2 }
  0x4c   :  { %575 = vmatpush.xpose.msra.mxu2 %v530_v48 }
  0x4d   :  { %147 = vmatpush.xpose.msra.mxu0 %v100_v30  ;;  %212 = vmatpush.xpose.msra.mxu1 %v101_v31 }
  0x4e   :  { %595 = vmatpush.xpose.msra.mxu3 %v546_v49 }
  0x50   :  { %148 = vmatmul.f32.vlgmr.msra.gmra.mxu0 %v100_v30  ;;  %213 = vmatmul.f32.vlgmr.msra.gmra.mxu1 %v101_v31 }
  0x51   :  { %1959 = vmatpush.xpose.msrb.mxu0 %v4082_v4  ;;  %2024 = vmatpush.xpose.msrb.mxu1 %v4084_v5 }
  0x52   :  { %576 = vmatpush.xpose.msra.mxu2 %v529_v12  ;;  %596 = vmatpush.xpose.msra.mxu3 %v545_v13 }
  0x55   :  { %1960 = vmatpush.xpose.msrb.mxu0 %v4094_v10  ;;  %2025 = vmatpush.xpose.msrb.mxu1 %v4096_v11 }
  0x56   :  { %666 = vmatpush.xpose.msrb.mxu2 %v4082_v4  ;;  %731 = vmatpush.xpose.msrb.mxu3 %v4084_v5 }
  0x58   :  { %151 = vmatmul.f32.gmra.mxu0 %v102_v60  ;;  %216 = vmatmul.f32.gmra.mxu1 %v103_v61 }
  0x59   :  { %1961 = vmatpush.xpose.msrb.mxu0 %v4104_v14  ;;  %2026 = vmatpush.xpose.msrb.mxu1 %v4106_v15 }
  0x5a   :  { %667 = vmatpush.xpose.msrb.mxu2 %v4094_v10  ;;  %732 = vmatpush.xpose.msrb.mxu3 %v4096_v11 }
  0x5d   :  { %1962 = vmatpush.xpose.msrb.mxu0 %v4118_v20  ;;  %2027 = vmatpush.xpose.msrb.mxu1 %v4120_v21 }
  0x5e   :  { %668 = vmatpush.xpose.msrb.mxu2 %v4104_v14  ;;  %733 = vmatpush.xpose.msrb.mxu3 %v4106_v15 }
  0x60   :  { %154 = vmatmul.f32.gmra.mxu0 %v104_v42  ;;  %219 = vmatmul.f32.gmra.mxu1 %v105_v43 }
  0x61   :  { %1963 = vmatpush.xpose.msrb.mxu0 %v4132_v26  ;;  %2028 = vmatpush.xpose.msrb.mxu1 %v4134_v27 }
  0x62   :  { %669 = vmatpush.xpose.msrb.mxu2 %v4118_v20  ;;  %734 = vmatpush.xpose.msrb.mxu3 %v4120_v21 }
  0x65   :  { %1964 = vmatpush.xpose.msrb.mxu0 %v4146_v32  ;;  %2029 = vmatpush.xpose.msrb.mxu1 %v4148_v33 }
  0x66   :  { %670 = vmatpush.xpose.msrb.mxu2 %v4132_v26  ;;  %735 = vmatpush.xpose.msrb.mxu3 %v4134_v27 }
  0x68   :  { %157 = vmatmul.f32.gmra.mxu0 %v4234_v24  ;;  %222 = vmatmul.f32.gmra.mxu1 %v4236_v25 }
  0x69   :  { %1965 = vmatpush.xpose.msrb.mxu0 %v4160_v38  ;;  %2030 = vmatpush.xpose.msrb.mxu1 %v4162_v39 }
  0x6a   :  { %671 = vmatpush.xpose.msrb.mxu2 %v4146_v32  ;;  %736 = vmatpush.xpose.msrb.mxu3 %v4148_v33 }
  0x6d   :  { %1966 = vmatpush.xpose.msrb.mxu0 %v4174_v44  ;;  %2031 = vmatpush.xpose.msrb.mxu1 %v4176_v45 }
  0x6e   :  { %672 = vmatpush.xpose.msrb.mxu2 %v4160_v38  ;;  %737 = vmatpush.xpose.msrb.mxu3 %v4162_v39 }
  0x70   :  { %160 = vmatmul.f32.gmra.mxu0 %v4220_v8  ;;  %225 = vmatmul.f32.gmra.mxu1 %v4222_v9 }
  0x71   :  { %1967 = vmatpush.xpose.msrb.mxu0 %v4188_v50  ;;  %2032 = vmatpush.xpose.msrb.mxu1 %v4190_v51 }
  0x72   :  { %673 = vmatpush.xpose.msrb.mxu2 %v4174_v44  ;;  %738 = vmatpush.xpose.msrb.mxu3 %v4176_v45 }
  0x75   :  { %1968 = vmatpush.xpose.msrb.mxu0 %v4202_v56  ;;  %2033 = vmatpush.xpose.msrb.mxu1 %v4204_v57 }
  0x76   :  { %674 = vmatpush.xpose.msrb.mxu2 %v4188_v50  ;;  %739 = vmatpush.xpose.msrb.mxu3 %v4190_v51 }
  0x78   :  { %163 = vmatmul.f32.gmra.mxu0 %v4206_v58  ;;  %228 = vmatmul.f32.gmra.mxu1 %v4208_v59  ;;  %v4030_v58 = vmov 1.0  }
  0x79   :  { %1969 = vmatpush.xpose.msrb.mxu0 %v4216_v62  ;;  %2034 = vmatpush.xpose.msrb.mxu1 %v4218_v63 }
  0x7a   :  { %675 = vmatpush.xpose.msrb.mxu2 %v4202_v56  ;;  %740 = vmatpush.xpose.msrb.mxu3 %v4204_v57 }
  0x7b   :  { %577 = vmatmul.f32.vlgmr.msra.gmra.mxu2 %v4030_v58  ;;  %597 = vmatmul.f32.vlgmr.msra.gmra.mxu3 %v4030_v58 }
  0x7d   :  { %1970 = vmatpush.xpose.msrb.mxu0 %v4230_v18  ;;  %2035 = vmatpush.xpose.msrb.mxu1 %v4232_v19 }
  0x7e   :  { %676 = vmatpush.xpose.msrb.mxu2 %v4216_v62  ;;  %741 = vmatpush.xpose.msrb.mxu3 %v4218_v63 }
  0x80   :  { %166 = vmatmul.f32.gmra.mxu0 %v4192_v52  ;;  %231 = vmatmul.f32.gmra.mxu1 %v4194_v53  ;;  %v602_v52 = vld [vmem:[#allocation6] sm:$0xff] }
  0x81   :  { %1971 = vmatpush.xpose.msrb.mxu0 %v4244_v36  ;;  %2036 = vmatpush.xpose.msrb.mxu1 %v4246_v37  ;;  %v618_v53 = vmul.f32 %v602_v52, %v602_v52 }
  0x82   :  { %677 = vmatpush.xpose.msrb.mxu2 %v4230_v18  ;;  %742 = vmatpush.xpose.msrb.mxu3 %v4232_v19 }
  0x83   :  { %634 = vadd.xlane.f32.xlu1 %v618_v53 }
  0x85   :  { %1972 = vmatpush.xpose.msrb.mxu0 %v4252_v54  ;;  %2037 = vmatpush.xpose.msrb.mxu1 %v4254_v55 }
  0x86   :  { %678 = vmatpush.xpose.msrb.mxu2 %v4244_v36  ;;  %743 = vmatpush.xpose.msrb.mxu3 %v4246_v37 }
  0x88   :  { %169 = vmatmul.f32.gmra.mxu0 %v4178_v46  ;;  %234 = vmatmul.f32.gmra.mxu1 %v4180_v47  ;;  %v4354_v46 = vld [vmem:[#allocation6 + $0x88] sm:$0xff] }
  0x89   :  { %1973 = vmatpush.xpose.msrb.mxu0 %v4260_v1  ;;  %2038 = vmatpush.xpose.msrb.mxu1 %v4262_v0  ;;  %v1912_v47 = vmul.f32 %v4354_v46, %v4354_v46 }
  0x8a   :  { %679 = vmatpush.xpose.msrb.mxu2 %v4252_v54  ;;  %744 = vmatpush.xpose.msrb.mxu3 %v4254_v55 }
  0x8b   :  { %1929 = vadd.xlane.f32.xlu1 %v1912_v47 }
  0x8d   :  { %1974 = vmatpush.xpose.msrb.mxu0 %v4268_v3  ;;  %2039 = vmatpush.xpose.msrb.mxu1 %v4270_v2 }
  0x8e   :  { %680 = vmatpush.xpose.msrb.mxu2 %v4260_v1  ;;  %745 = vmatpush.xpose.msrb.mxu3 %v4262_v0 }
  0x90   :  { %172 = vmatmul.f32.gmra.mxu0 %v4164_v40  ;;  %237 = vmatmul.f32.gmra.mxu1 %v4166_v41  ;;  %v603_v40 = vld [vmem:[#allocation6 + $0x8] sm:$0xff] }
  0x92   :  { %681 = vmatpush.xpose.msrb.mxu2 %v4268_v3  ;;  %746 = vmatpush.xpose.msrb.mxu3 %v4270_v2 }
  0x95   :  { %682 = vmatmul.f32.vlgmr.msrb.gmra.mxu2 %v602_v52  ;;  %747 = vmatmul.f32.vlgmr.msrb.gmra.mxu3 %v602_v52 }
  0x96   :  { %3207 = vmatpush.xpose.msra.mxu2 %v4082_v4  ;;  %3223 = vmatpush.xpose.msra.mxu3 %v4084_v5  ;;  %v605_v4 = vld [vmem:[#allocation6 + $0x18] sm:$0xff]  ;;  %v619_v5 = vmul.f32 %v603_v40, %v603_v40 }
  0x97   :  { %v621_v41 = vmul.f32 %v605_v4, %v605_v4 }
  0x98   :  { %175 = vmatmul.f32.gmra.mxu0 %v4150_v34  ;;  %240 = vmatmul.f32.gmra.mxu1 %v4152_v35  ;;  %v65_v34 = vlaneseq  ;;  %v4410_v35 = vld [vmem:[#allocation6 + $0xa8] sm:$0xff] }
  0x99   :  { %636 = vadd.xlane.f32.xlu0 %v619_v5  ;;  %640 = vadd.xlane.f32.xlu1 %v621_v41 }
  0x9a   :  { %3208 = vmatpush.xpose.msra.mxu2 %v4094_v10  ;;  %3224 = vmatpush.xpose.msra.mxu3 %v4096_v11  ;;  %v604_v10 = vld [vmem:[#allocation6 + $0x10] sm:$0xff]  ;;  %v4370_v11 = vld [vmem:[#allocation6 + $0x80] sm:$0xff] }
  0x9d   :  { %685 = vmatmul.f32.gmra.mxu2 %v603_v40  ;;  %750 = vmatmul.f32.gmra.mxu3 %v603_v40 }
  0x9e   :  { %3209 = vmatpush.xpose.msra.mxu2 %v4104_v14  ;;  %3225 = vmatpush.xpose.msra.mxu3 %v4106_v15  ;;  %v4372_v14 = vld [vmem:[#allocation6 + $0x90] sm:$0xff]  ;;  %v606_v15 = vld [vmem:[#allocation6 + $0x20] sm:$0xff] }
  0xa0   :  { %178 = vmatmul.f32.gmra.mxu0 %v4136_v28  ;;  %243 = vmatmul.f32.gmra.mxu1 %v4138_v29  ;;  %v622_v28 = vmul.f32 %v606_v15, %v606_v15 }
  0xa2   :  { %3210 = vmatpush.xpose.msra.mxu2 %v4118_v20  ;;  %3226 = vmatpush.xpose.msra.mxu3 %v4120_v21  ;;  %v1911_v20 = vmul.f32 %v4370_v11, %v4370_v11  ;;  %v1913_v21 = vmul.f32 %v4372_v14, %v4372_v14 }
  0xa3   :  { %642 = vadd.xlane.f32.xlu1 %v622_v28 }
  0xa4   :  { %1927 = vadd.xlane.f32.xlu2 %v1911_v20  ;;  %1931 = vadd.xlane.f32.xlu0 %v1913_v21 }
  0xa5   :  { %688 = vmatmul.f32.gmra.mxu2 %v604_v10  ;;  %753 = vmatmul.f32.gmra.mxu3 %v604_v10 }
  0xa6   :  { %3211 = vmatpush.xpose.msra.mxu2 %v4132_v26  ;;  %3227 = vmatpush.xpose.msra.mxu3 %v4134_v27  ;;  %v607_v26 = vld [vmem:[#allocation6 + $0x28] sm:$0xff]  ;;  %v620_v27 = vmul.f32 %v604_v10, %v604_v10  ;;  %v4512_v10 = vld [vmem:[#allocation6 + $0x38] sm:$0xff] }
  0xa7   :  { %v623_v29 = vmul.f32 %v607_v26, %v607_v26 }
  0xa8   :  { %181 = vmatmul.f32.gmra.mxu0 %v4122_v22  ;;  %246 = vmatmul.f32.gmra.mxu1 %v4124_v23  ;;  %v4390_v22 = vld [vmem:[#allocation6 + $0x98] sm:$0xff]  ;;  %v608_v23 = vld [vmem:[#allocation6 + $0x30] sm:$0xff] }
  0xaa   :  { %3212 = vmatpush.xpose.msra.mxu2 %v4146_v32  ;;  %3228 = vmatpush.xpose.msra.mxu3 %v4148_v33  ;;  %v1914_v32 = vmul.f32 %v4390_v22, %v4390_v22  ;;  %v624_v33 = vmul.f32 %v608_v23, %v608_v23 }
  0xab   :  { %644 = vadd.xlane.f32.xlu1 %v623_v29 }
  0xac   :  { %638 = vadd.xlane.f32.xlu2 %v620_v27 }
  0xad   :  { %691 = vmatmul.f32.gmra.mxu2 %v605_v4  ;;  %756 = vmatmul.f32.gmra.mxu3 %v605_v4 }
  0xae   :  { %3213 = vmatpush.xpose.msra.mxu2 %v4160_v38  ;;  %3229 = vmatpush.xpose.msra.mxu3 %v4162_v39  ;;  %v1916_v38 = vmul.f32 %v4410_v35, %v4410_v35  ;;  %v6345_v39 = vld [vmem:[#allocation15_spill] sm:$0xff] }
  0xb0   :  { %184 = vmatmul.f32.gmra.mxu0 %v4108_v16  ;;  %249 = vmatmul.f32.gmra.mxu1 %v4110_v17  ;;  %v4400_v16 = vld [vmem:[#allocation6 + $0xa0] sm:$0xff] }
  0xb1   :  { %v1915_v17 = vmul.f32 %v4400_v16, %v4400_v16 }
  0xb2   :  { %3214 = vmatpush.xpose.msra.mxu2 %v4174_v44  ;;  %3230 = vmatpush.xpose.msra.mxu3 %v4176_v45  ;;  %v6346_v44 = vld [vmem:[#allocation16_spill] sm:$0xff]  ;;  %v4418_v45 = vshrl.u32 %v65_v34, 7 }
  0xb3   :  { %646 = vadd.xlane.f32.xlu1 %v624_v33 }
  0xb4   :  { %1933 = vadd.xlane.f32.xlu2 %v1914_v32  ;;  %v4450_v8 = vadd.s32 16, %v4418_v45  ;;  %v4476_v60 = vadd.s32 32, %v4418_v45  ;;  %v4489_v12 = vadd.s32 40, %v4418_v45  ;;  %v4502_v47 = vadd.s32 48, %v4418_v45 }
  0xb5   :  { %694 = vmatmul.f32.gmra.mxu2 %v606_v15  ;;  %759 = vmatmul.f32.gmra.mxu3 %v606_v15  ;;  %v4530_v29 = vadd.s32 64, %v4418_v45 }
  0xb6   :  { %3215 = vmatpush.xpose.msra.mxu2 %v4188_v50  ;;  %3231 = vmatpush.xpose.msra.mxu3 %v4190_v51  ;;  %v4420_v50 = vand.u32 127, %v65_v34  ;;  %6349 = vst [vmem:[#allocation15_spill] sm:$0xff] %v4502_v47  ;;  %v4545_v34 = vadd.s32 72, %v4418_v45 }
  0xb7   :  { %6351 = vst [vmem:[#allocation19_spill] sm:$0xff] %v4530_v29 }
  0xb8   :  { %187 = vmatmul.f32.gmra.mxu0 %v4086_v6  ;;  %252 = vmatmul.f32.gmra.mxu1 %v4088_v7  ;;  %v6343_v6 = vld [vmem:[#allocation17_spill] sm:$0xff]  ;;  %v6344_v7 = vld [vmem:[#allocation18_spill] sm:$0xff]  ;;  %vm84_vm0 = vcmp.eq.s32.totalorder %v4418_v45, %v4420_v50  ;;  %vm86_vm2 = vcmp.eq.s32.totalorder %v4450_v8, %v4420_v50  ;;  %vm88_vm4 = vcmp.eq.s32.totalorder %v4476_v60, %v4420_v50 }
  0xb9   :  { %6347 = vst [vmem:[#allocation17_spill] sm:$0xff] %v4420_v50  ;;  %vm89_vm5 = vcmp.eq.s32.totalorder %v4489_v12, %v4420_v50  ;;  %vm90_vm6 = vcmp.eq.s32.totalorder %v4502_v47, %v4420_v50  ;;  %vm92_vm8 = vcmp.eq.s32.totalorder %v4530_v29, %v4420_v50  ;;  %vm93_vm9 = vcmp.eq.s32.totalorder %v4545_v34, %v4420_v50 }
  0xba   :  { %3216 = vmatpush.xpose.msra.mxu2 %v4202_v56  ;;  %3232 = vmatpush.xpose.msra.mxu3 %v4204_v57  ;;  %6348 = vst [vmem:[#allocation18_spill] sm:$0xff] %v4489_v12 }
  0xbb   :  { %6352 = vst [vmem:[#allocation20_spill] sm:$0xff] %v4545_v34 }
  0xbc   :  { %1935 = vadd.xlane.f32.xlu2 %v1915_v17 }
  0xbd   :  { %697 = vmatmul.f32.gmra.mxu2 %v607_v26  ;;  %762 = vmatmul.f32.gmra.mxu3 %v607_v26  ;;  %v4527_v26 = vld [vmem:[#allocation6 + $0x40] sm:$0xff] }
  0xbe   :  { %3217 = vmatpush.xpose.msra.mxu2 %v4216_v62  ;;  %3233 = vmatpush.xpose.msra.mxu3 %v4218_v63 }
  0xc0   :  { %190 = vmatmul.f32.gmra.mxu0 %v6343_v6  ;;  %255 = vmatmul.f32.gmra.mxu1 %v6344_v7  ;;  %v4542_v6 = vld [vmem:[#allocation6 + $0x48] sm:$0xff] }
  0xc2   :  { %3218 = vmatpush.xpose.msra.mxu2 %v4230_v18  ;;  %3234 = vmatpush.xpose.msra.mxu3 %v4232_v19 }
  0xc4   :  { %1937 = vadd.xlane.f32.xlu2 %v1916_v38 }
  0xc5   :  { %700 = vmatmul.f32.gmra.mxu2 %v608_v23  ;;  %765 = vmatmul.f32.gmra.mxu3 %v608_v23 }
  0xc6   :  { %3219 = vmatpush.xpose.msra.mxu2 %v4244_v36  ;;  %3235 = vmatpush.xpose.msra.mxu3 %v4246_v37  ;;  %v4463_v36 = vadd.s32 24, %v4418_v45 }
  0xc8   :  { %193 = vmatmul.f32.gmra.mxu0 %v6345_v39  ;;  %258 = vmatmul.f32.gmra.mxu1 %v6346_v44  ;;  %vm87_vm3 = vcmp.eq.s32.totalorder %v4463_v36, %v4420_v50 }
  0xca   :  { %3220 = vmatpush.xpose.msra.mxu2 %v4252_v54  ;;  %3236 = vmatpush.xpose.msra.mxu3 %v4254_v55 }
  0xcd   :  { %v149_v51 = vpop.f32.mrf.mxu0  ;;  %v214_v56 = vpop.f32.mrf.mxu1  ;;  %703 = vmatmul.f32.gmra.mxu2 %v4512_v10  ;;  %768 = vmatmul.f32.gmra.mxu3 %v4512_v10 }
  0xce   :  { %3221 = vmatpush.xpose.msra.mxu2 %v4260_v1  ;;  %3237 = vmatpush.xpose.msra.mxu3 %v4262_v0  ;;  %v4426_v57 = vadd.f32 %v214_v56, %v149_v51  ;;  %v4437_v1 = vadd.s32 8, %v4418_v45 }
  0xd0   :  { %1975 = vmatmul.f32.vlgmr.msrb.gmra.mxu0 %v4370_v11  ;;  %2040 = vmatmul.f32.vlgmr.msrb.gmra.mxu1 %v4370_v11  ;;  %v262_v0 = vsel %vm84_vm0, %v4426_v57, 0.0  ;;  %vm85_vm1 = vcmp.eq.s32.totalorder %v4437_v1, %v4420_v50 }
  0xd1   :  { %278 = vadd.xlane.f32.xlu0 %v262_v0 }
  0xd2   :  { %3222 = vmatpush.xpose.msra.mxu2 %v4268_v3  ;;  %3238 = vmatpush.xpose.msra.mxu3 %v4270_v2 }
  0xd5   :  { %v152_v59 = vpop.f32.mrf.mxu0  ;;  %v217_v62 = vpop.f32.mrf.mxu1  ;;  %706 = vmatmul.f32.gmra.mxu2 %v4527_v26  ;;  %771 = vmatmul.f32.gmra.mxu3 %v4527_v26 }
  0xd6   :  { %v4441_v3 = vadd.f32 %v217_v62, %v152_v59 }
  0xd8   :  { %1978 = vmatmul.f32.gmra.mxu0 %v4354_v46  ;;  %2043 = vmatmul.f32.gmra.mxu1 %v4354_v46  ;;  %v263_v2 = vsel %vm85_vm1, %v4441_v3, 0.0 }
  0xd9   :  { %280 = vadd.xlane.f32.xlu0 %v263_v2  ;;  %v310_v63 = vadd.f32 %v263_v2, %v262_v0 }
  0xdd   :  { %v155_v9 = vpop.f32.mrf.mxu0  ;;  %v220_v18 = vpop.f32.mrf.mxu1  ;;  %709 = vmatmul.f32.gmra.mxu2 %v4542_v6  ;;  %774 = vmatmul.f32.gmra.mxu3 %v4542_v6 }
  0xde   :  { %v4454_v19 = vadd.f32 %v220_v18, %v155_v9  ;;  %v4563_v9 = vld [vmem:[#allocation6 + $0x50] sm:$0xff] }
  0xe0   :  { %1981 = vmatmul.f32.gmra.mxu0 %v4372_v14  ;;  %2046 = vmatmul.f32.gmra.mxu1 %v4372_v14  ;;  %v264_v24 = vsel %vm86_vm2, %v4454_v19, 0.0  ;;  %v4515_v14 = vadd.s32 56, %v4418_v45 }
  0xe1   :  { %282 = vadd.xlane.f32.xlu1 %v264_v24  ;;  %v311_v25 = vadd.f32 %v310_v63, %v264_v24  ;;  %v4568_v24 = vadd.s32 80, %v4418_v45 }
  0xe2   :  { %6350 = vst [vmem:[#allocation16_spill] sm:$0xff] %v4515_v14  ;;  %vm91_vm7 = vcmp.eq.s32.totalorder %v4515_v14, %v4420_v50 }
  0xe3   :  { %6353 = vst [vmem:[#allocation21_spill] sm:$0xff] %v4568_v24  ;;  %vm94_vm10 = vcmp.eq.s32.totalorder %v4568_v24, %v4420_v50 }
  0xe5   :  { %v158_v37 = vpop.f32.mrf.mxu0  ;;  %v223_v42 = vpop.f32.mrf.mxu1  ;;  %712 = vmatmul.f32.gmra.mxu2 %v4563_v9  ;;  %777 = vmatmul.f32.gmra.mxu3 %v4563_v9 }
  0xe6   :  { %v4467_v43 = vadd.f32 %v223_v42, %v158_v37 }
  0xe8   :  { %1984 = vmatmul.f32.gmra.mxu0 %v4390_v22  ;;  %2049 = vmatmul.f32.gmra.mxu1 %v4390_v22  ;;  %v265_v54 = vsel %vm87_vm3, %v4467_v43, 0.0 }
  0xe9   :  { %284 = vadd.xlane.f32.xlu1 %v265_v54  ;;  %v312_v55 = vadd.f32 %v311_v25, %v265_v54 }
  0xed   :  { %v161_v61 = vpop.f32.mrf.mxu0  ;;  %v226_v30 = vpop.f32.mrf.mxu1 }
  0xee   :  { %v4480_v31 = vadd.f32 %v226_v30, %v161_v61 }
  0xf0   :  { %1987 = vmatmul.f32.gmra.mxu0 %v4400_v16  ;;  %2052 = vmatmul.f32.gmra.mxu1 %v4400_v16  ;;  %v266_v48 = vsel %vm88_vm4, %v4480_v31, 0.0 }
  0xf1   :  { %286 = vadd.xlane.f32.xlu2 %v266_v48  ;;  %v313_v49 = vadd.f32 %v312_v55, %v266_v48 }
  0xf5   :  { %v164_v13 = vpop.f32.mrf.mxu0  ;;  %v229_v58 = vpop.f32.mrf.mxu1 }
  0xf6   :  { %v4493_v52 = vadd.f32 %v229_v58, %v164_v13  ;;  %v635_v56 = vpop.xlane.xlu1 %634  ;;  %v4576_v13 = vld [vmem:[#allocation6 + $0xb0] sm:$0xff] }
  0xf8   :  { %1990 = vmatmul.f32.gmra.mxu0 %v4410_v35  ;;  %2055 = vmatmul.f32.gmra.mxu1 %v4410_v35  ;;  %v267_v53 = vsel %vm89_vm5, %v4493_v52, 0.0 }
  0xf9   :  { %288 = vadd.xlane.f32.xlu2 %v267_v53  ;;  %v314_v46 = vadd.f32 %v313_v49, %v267_v53 }
  0xfd   :  { %v167_v40 = vpop.f32.mrf.mxu0  ;;  %v232_v4 = vpop.f32.mrf.mxu1 }
  0xfe   :  { %v4506_v5 = vadd.f32 %v232_v4, %v167_v40  ;;  %v578_v33 = vpop.f32.mrf.mxu2  ;;  %v598_v16 = vpop.f32.mrf.mxu3 }
  0xff   :  { %v4549_v35 = vperm.slane %v578_v33, 0  ;;  %v4551_v38 = vperm.slane %v598_v16, 0 }
 0x100   :  { %v268_v41 = vsel %vm90_vm6, %v4506_v5, 0.0  ;;  %1993 = vmatmul.f32.gmra.mxu0 %v4576_v13  ;;  %2058 = vmatmul.f32.gmra.mxu1 %v4576_v13 }
 0x101   :  { %290 = vadd.xlane.f32.xlu0 %v268_v41  ;;  %v315_v11 = vadd.f32 %v314_v46, %v268_v41  ;;  %v798_v0 = vadd.f32 %v4549_v35, %v635_v56  ;;  %v799_v59 = vadd.f32 %v4551_v38, %v635_v56  ;;  %v4586_v41 = vld [vmem:[#allocation6 + $0x58] sm:$0xff] }
 0x102   :  { %715 = vmatmul.f32.gmra.mxu2 %v4586_v41  ;;  %780 = vmatmul.f32.gmra.mxu3 %v4586_v41  ;;  %v4604_v56 = vld [vmem:[#allocation6 + $0xb8] sm:$0xff] }
 0x105   :  { %v170_v15 = vpop.f32.mrf.mxu0  ;;  %v235_v20 = vpop.f32.mrf.mxu1 }
 0x106   :  { %v4521_v21 = vadd.f32 %v235_v20, %v170_v15 }
 0x108   :  { %v269_v28 = vsel %vm91_vm7, %v4521_v21, 0.0  ;;  %1996 = vmatmul.f32.gmra.mxu0 %v4604_v56  ;;  %2061 = vmatmul.f32.gmra.mxu1 %v4604_v56 }
 0x109   :  { %292 = vadd.xlane.f32.xlu1 %v269_v28  ;;  %v316_v27 = vadd.f32 %v315_v11, %v269_v28  ;;  %v4590_v11 = vadd.s32 88, %v4418_v45 }
 0x10b   :  { %6354 = vst [vmem:[#allocation22_spill] sm:$0xff] %v4590_v11  ;;  %vm95_vm11 = vcmp.eq.s32.totalorder %v4590_v11, %v4420_v50 }
 0x10d   :  { %v173_v22 = vpop.f32.mrf.mxu0  ;;  %v238_v23 = vpop.f32.mrf.mxu1 }
 0x10e   :  { %v4536_v32 = vadd.f32 %v238_v23, %v173_v22  ;;  %v637_v22 = vpop.xlane.xlu0 %636 }
 0x10f   :  { %v800_v16 = vadd.f32 %v4549_v35, %v637_v22 }
 0x110   :  { %v270_v17 = vsel %vm92_vm8, %v4536_v32, 0.0 }
 0x111   :  { %294 = vadd.xlane.f32.xlu2 %v270_v17  ;;  %v317_v7 = vadd.f32 %v316_v27, %v270_v17  ;;  %v4595_v27 = vpop.xlane.xlu1 %1929 }
 0x115   :  { %v176_v39 = vpop.f32.mrf.mxu0  ;;  %v241_v44 = vpop.f32.mrf.mxu1 }
 0x116   :  { %v4555_v51 = vadd.f32 %v241_v44, %v176_v39  ;;  %v801_v39 = vadd.f32 %v4551_v38, %v637_v22 }
 0x117   :  { %v4592_v28 = vpop.xlane.xlu2 %1927 }
 0x118   :  { %v271_v62 = vsel %vm93_vm9, %v4555_v51, 0.0  ;;  %v683_v2 = vpop.f32.mrf.mxu2  ;;  %v748_v63 = vpop.f32.mrf.mxu3 }
 0x119   :  { %296 = vadd.xlane.f32.xlu0 %v271_v62  ;;  %v4565_v18 = vadd.f32 %v317_v7, %v271_v62  ;;  %v830_v25 = vmul.f32 2.0, %v683_v2  ;;  %v831_v37 = vmul.f32 2.0, %v748_v63  ;;  %v4616_v63 = vadd.s32 96, %v4418_v45 }
 0x11b   :  { %v862_v42 = vsub.f32 %v798_v0, %v830_v25  ;;  %v863_v54 = vsub.f32 %v799_v59, %v831_v37  ;;  %6355 = vst [vmem:[#allocation23_spill] sm:$0xff] %v4616_v63  ;;  %v4618_v25 = vld [vmem:[#allocation6 + $0x60] sm:$0xff]  ;;  %vm96_vm12 = vcmp.eq.s32.totalorder %v4616_v63, %v4420_v50 }
 0x11c   :  { %718 = vmatmul.f32.gmra.mxu2 %v4618_v25  ;;  %783 = vmatmul.f32.gmra.mxu3 %v4618_v25 }
 0x11d   :  { %v179_v55 = vpop.f32.mrf.mxu0  ;;  %v244_v61 = vpop.f32.mrf.mxu1  ;;  %v894_v30 = vmax.f32 %v862_v42, 0.0  ;;  %v895_v48 = vmax.f32 %v863_v54, 0.0  ;;  %v4621_v42 = vadd.s32 128, %v4420_v50 }
 0x11e   :  { %v4574_v49 = vadd.f32 %v244_v61, %v179_v55  ;;  %v4626_v61 = vadd.s32 128, %v4437_v1 }
 0x11f   :  { %v1182_v58 = vmul.f32 100.0, %v894_v30  ;;  %v1183_v53 = vmul.f32 100.0, %v895_v48  ;;  %6356 = vst [vmem:[#allocation24_spill] sm:$0xff] %v4621_v42  ;;  %v4629_v30 = vadd.s32 128, %v4450_v8  ;;  %v4632_v48 = vadd.s32 128, %v4463_v36 }
 0x120   :  { %v4584_v46 = vsel %vm94_vm10, %v4574_v49, 0.0  ;;  %v686_v40 = vpop.f32.mrf.mxu2  ;;  %v751_v4 = vpop.f32.mrf.mxu3  ;;  %6357 = vst [vmem:[#allocation25_spill] sm:$0xff] %v4626_v61 }
 0x121   :  { %298 = vadd.xlane.f32.xlu1 %v4584_v46  ;;  %v1214_v15 = vadd.f32 1.0, %v1182_v58  ;;  %v1215_v20 = vadd.f32 1.0, %v1183_v53  ;;  %v832_v7 = vmul.f32 2.0, %v686_v40  ;;  %v833_v44 = vmul.f32 2.0, %v751_v4  ;;  %6358 = vst [vmem:[#allocation26_spill] sm:$0xff] %v4629_v30  ;;  %v639_v53 = vpop.xlane.xlu2 %638  ;;  %v641_v4 = vpop.xlane.xlu1 %640 }
 0x122   :  { %6359 = vst [vmem:[#allocation27_spill] sm:$0xff] %v4632_v48  ;;  %v4635_v40 = vmul.f32 2.0, %v4426_v57  ;;  %v802_v22 = vadd.f32 %v4549_v35, %v639_v53  ;;  %v4647_v57 = vadd.s32 128, %v4489_v12  ;;  %v4660_v48 = vld [vmem:[#allocation6 + $0xc0] sm:$0xff]  ;;  %v4663_v30 = vmul.f32 2.0, %v4480_v31 }
 0x123   :  { %3253 = vlog2.f32 %v1214_v15  ;;  %v864_v59 = vsub.f32 %v800_v16, %v832_v7  ;;  %v865_v58 = vsub.f32 %v801_v39, %v833_v44  ;;  %1999 = vmatmul.f32.gmra.mxu0 %v4660_v48  ;;  %2064 = vmatmul.f32.gmra.mxu1 %v4660_v48  ;;  %v4680_v31 = vadd.s32 128, %v4530_v29 }
 0x124   :  { %3255 = vlog2.f32 %v1215_v20  ;;  %6361 = vst [vmem:[#allocation29_spill] sm:$0xff] %v4647_v57  ;;  %v804_v57 = vadd.f32 %v4549_v35, %v641_v4  ;;  %v803_v42 = vadd.f32 %v4551_v38, %v639_v53 }
 0x125   :  { %v182_v23 = vpop.f32.mrf.mxu0  ;;  %v247_v33 = vpop.f32.mrf.mxu1  ;;  %v896_v54 = vmax.f32 %v864_v59, 0.0  ;;  %6364 = vst [vmem:[#allocation32_spill] sm:$0xff] %v4680_v31 }
 0x126   :  { %v4601_v17 = vadd.f32 %v247_v33, %v182_v23  ;;  %v4639_v23 = vmul.f32 2.0, %v4441_v3  ;;  %v4642_v33 = vadd.s32 128, %v4476_v60  ;;  %v4655_v3 = vmul.f32 2.0, %v4467_v43 }
 0x127   :  { %v1184_v15 = vmul.f32 100.0, %v896_v54  ;;  %v4652_v54 = vmul.f32 2.0, %v4454_v19 }
 0x128   :  { %v4610_v0 = vsel %vm95_vm11, %v4601_v17, 0.0  ;;  %v689_v62 = vpop.f32.mrf.mxu2  ;;  %v754_v2 = vpop.f32.mrf.mxu3  ;;  %6360 = vst [vmem:[#allocation28_spill] sm:$0xff] %v4642_v33  ;;  %v4658_v33 = vadd.s32 128, %v4502_v47 }
 0x129   :  { %300 = vadd.xlane.f32.xlu2 %v4610_v0  ;;  %v3254_v37 = vpop.eup %3253  ;;  %v834_v20 = vmul.f32 2.0, %v689_v62  ;;  %v1216_v62 = vadd.f32 1.0, %v1184_v15  ;;  %v835_v61 = vmul.f32 2.0, %v754_v2  ;;  %v643_v53 = vpop.xlane.xlu1 %642 }
 0x12a   :  { %v3256_v55 = vpop.eup %3255  ;;  %v1247_v59 = vmul.f32 0.6931472, %v3254_v37  ;;  %6362 = vst [vmem:[#allocation30_spill] sm:$0xff] %v4658_v33  ;;  %v897_v37 = vmax.f32 %v865_v58, 0.0  ;;  %v4677_v58 = vmul.f32 2.0, %v4493_v52  ;;  %v615_v33 = vld [vmem:[#allocation6 + $0x68] sm:$0xff] }
 0x12b   :  { %v1249_v44 = vmul.f32 0.6931472, %v3256_v55  ;;  %v866_v43 = vsub.f32 %v802_v22, %v834_v20  ;;  %v4687_v20 = vadd.s32 128, %v4545_v34  ;;  %3257 = vlog2.f32 %v1216_v62  ;;  %721 = vmatmul.f32.gmra.mxu2 %v615_v33  ;;  %786 = vmatmul.f32.gmra.mxu3 %v615_v33  ;;  %v4751_v34 = vld [vmem:[#allocation6 + $0xc8] sm:$0xff] }
 0x12c   :  { %v1310_v15 = vmul.f32 -0.505, %v1247_v59  ;;  %v4691_v52 = vmul.f32 2.0, %v4506_v5  ;;  %v805_v59 = vadd.f32 %v4551_v38, %v641_v4  ;;  %v1185_v31 = vmul.f32 100.0, %v897_v37  ;;  %2002 = vmatmul.f32.gmra.mxu0 %v4751_v34  ;;  %2067 = vmatmul.f32.gmra.mxu1 %v4751_v34 }
 0x12d   :  { %v185_v16 = vpop.f32.mrf.mxu0  ;;  %v250_v7 = vpop.f32.mrf.mxu1  ;;  %6366 = vst [vmem:[#allocation34_spill] sm:$0xff] %v4687_v20  ;;  %v1311_v22 = vmul.f32 -0.505, %v1249_v44  ;;  %v898_v29 = vmax.f32 %v866_v43, 0.0  ;;  %v4696_v20 = vmul.f32 2.0, %v4521_v21  ;;  %v4699_v44 = vadd.s32 128, %v4568_v24 }
 0x12e   :  { %v4649_v39 = vadd.f32 %v250_v7, %v185_v16  ;;  %v4666_v16 = vadd.s32 128, %v4515_v14  ;;  %v4684_v7 = vadd.s32 104, %v4418_v45  ;;  %v4701_v62 = vadd.f32 -1.1647458, %v1310_v15 }
 0x12f   :  { %6367 = vst [vmem:[#allocation35_spill] sm:$0xff] %v4699_v44  ;;  %v4705_v4 = vadd.f32 -1.1647458, %v1311_v22  ;;  %v867_v37 = vsub.f32 %v803_v42, %v835_v61  ;;  %v4710_v21 = vadd.s32 128, %v4590_v11  ;;  %v4714_v43 = vadd.f32 %v4595_v27, %v4549_v35 }
 0x130   :  { %6363 = vst [vmem:[#allocation31_spill] sm:$0xff] %v4666_v16  ;;  %v4672_v19 = vsel %vm96_vm12, %v4649_v39, 0.0  ;;  %v692_v55 = vpop.f32.mrf.mxu2  ;;  %v757_v16 = vpop.f32.mrf.mxu3  ;;  %vm97_vm13 = vcmp.eq.s32.totalorder %v4684_v7, %v4420_v50  ;;  %v4717_v15 = vadd.s32 112, %v4418_v45 }
 0x131   :  { %302 = vadd.xlane.f32.xlu0 %v4672_v19  ;;  %6365 = vst [vmem:[#allocation33_spill] sm:$0xff] %v4684_v7  ;;  %v836_v14 = vmul.f32 2.0, %v692_v55  ;;  %v837_v47 = vmul.f32 2.0, %v757_v16  ;;  %v1217_v55 = vadd.f32 1.0, %v1185_v31  ;;  %v3258_v44 = vpop.eup %3257  ;;  %v899_v42 = vmax.f32 %v867_v37, 0.0 }
 0x132   :  { %6368 = vst [vmem:[#allocation36_spill] sm:$0xff] %v4701_v62  ;;  %v4733_v31 = vadd.f32 %v4595_v27, %v4551_v38  ;;  %v1376_v11 = vmul.f32 1.442695, %v4705_v4  ;;  %v806_v37 = vadd.f32 %v4549_v35, %v643_v53  ;;  %vm98_vm14 = vcmp.eq.s32.totalorder %v4717_v15, %v4420_v50 }
 0x133   :  { %6369 = vst [vmem:[#allocation37_spill] sm:$0xff] %v4705_v4  ;;  %v868_v16 = vsub.f32 %v804_v57, %v836_v14  ;;  %v1186_v14 = vmul.f32 100.0, %v898_v29  ;;  %v869_v61 = vsub.f32 %v805_v59, %v837_v47  ;;  %v625_v47 = vmul.f32 %v4512_v10, %v4512_v10 }
 0x134   :  { %6370 = vst [vmem:[#allocation38_spill] sm:$0xff] %v4710_v21  ;;  %v1374_v21 = vmul.f32 1.442695, %v4701_v62  ;;  %v1187_v29 = vmul.f32 100.0, %v899_v42  ;;  %v319_v27 = vadd.f32 %v4565_v18, %v4584_v46  ;;  %3259 = vlog2.f32 %v1217_v55  ;;  %v616_v46 = vld [vmem:[#allocation6 + $0x70] sm:$0xff] }
 0x135   :  { %v188_v33 = vpop.f32.mrf.mxu0  ;;  %v253_v5 = vpop.f32.mrf.mxu1  ;;  %6371 = vst [vmem:[#allocation39_spill] sm:$0xff] %v4717_v15  ;;  %v900_v59 = vmax.f32 %v868_v16, 0.0  ;;  %v1218_v24 = vadd.f32 1.0, %v1186_v14  ;;  %v901_v4 = vmax.f32 %v869_v61, 0.0  ;;  %v4749_v10 = vadd.s32 128, %v4616_v63  ;;  %724 = vmatmul.f32.gmra.mxu2 %v616_v46  ;;  %789 = vmatmul.f32.gmra.mxu3 %v616_v46 }
 0x136   :  { %v4707_v2 = vadd.f32 %v253_v5, %v188_v33  ;;  %v4726_v33 = vmul.f32 2.0, %v4536_v32  ;;  %v4729_v5 = vmul.f32 2.0, %v4555_v51  ;;  %v4741_v32 = vmul.f32 2.0, %v4574_v49 }
 0x137   :  { %v1251_v51 = vmul.f32 0.6931472, %v3258_v44  ;;  %3261 = vpow2.f32 %v1374_v21  ;;  %6375 = vst [vmem:[#allocation43_spill] sm:$0xff] %v4749_v10  ;;  %v1188_v42 = vmul.f32 100.0, %v900_v59  ;;  %v4756_v18 = vadd.s32 120, %v4418_v45 }
 0x138   :  { %v4723_v22 = vsel %vm97_vm13, %v4707_v2, 0.0  ;;  %v695_v57 = vpop.f32.mrf.mxu2  ;;  %6372 = vst [vmem:[#allocation40_spill] sm:$0xff] %v4726_v33  ;;  %v760_v62 = vpop.f32.mrf.mxu3  ;;  %3263 = vpow2.f32 %v1376_v11  ;;  %v807_v55 = vadd.f32 %v4551_v38, %v643_v53  ;;  %v4762_v11 = vmul.f32 2.0, %v4601_v17 }
 0x139   :  { %6373 = vst [vmem:[#allocation41_spill] sm:$0xff] %v4729_v5  ;;  %304 = vadd.xlane.f32.xlu1 %v4723_v22  ;;  %v838_v44 = vmul.f32 2.0, %v695_v57  ;;  %v1219_v5 = vadd.f32 1.0, %v1187_v29  ;;  %v1312_v21 = vmul.f32 -0.505, %v1251_v51  ;;  %v839_v61 = vmul.f32 2.0, %v760_v62  ;;  %v4768_v29 = vpop.xlane.xlu1 %644 }
 0x13a   :  { %6374 = vst [vmem:[#allocation42_spill] sm:$0xff] %v4741_v32  ;;  %3265 = vlog2.f32 %v1218_v24  ;;  %v1189_v59 = vmul.f32 100.0, %v901_v4  ;;  %v320_v51 = vadd.f32 %v319_v27, %v4610_v0  ;;  %v808_v62 = vadd.f32 %v4549_v35, %v4768_v29 }
 0x13b   :  { %6376 = vst [vmem:[#allocation44_spill] sm:$0xff] %v4756_v18  ;;  %v870_v14 = vsub.f32 %v806_v37, %v838_v44  ;;  %v1220_v53 = vadd.f32 1.0, %v1188_v42  ;;  %v626_v17 = vmul.f32 %v4527_v26, %v4527_v26  ;;  %v3260_v37 = vpop.eup %3259  ;;  %3267 = vlog2.f32 %v1219_v5 }
 0x13c   :  { %6377 = vst [vmem:[#allocation45_spill] sm:$0xff] %v4762_v11  ;;  %v1917_v24 = vmul.f32 %v4576_v13, %v4576_v13  ;;  %vm99_vm15 = vcmp.eq.s32.totalorder %v4756_v18, %v4420_v50  ;;  %v4783_v27 = vadd.f32 %v4592_v28, %v4549_v35  ;;  %v871_v42 = vsub.f32 %v807_v55, %v839_v61 }
 0x13d   :  { %v191_v16 = vpop.f32.mrf.mxu0  ;;  %v256_v49 = vpop.f32.mrf.mxu1  ;;  %v902_v4 = vmax.f32 %v870_v14, 0.0  ;;  %v321_v46 = vadd.f32 %v320_v51, %v4672_v19  ;;  %v4788_v5 = vadd.f32 %v4592_v28, %v4551_v38  ;;  %v1221_v13 = vadd.f32 1.0, %v1189_v59 }
 0x13e   :  { %v4753_v32 = vadd.f32 %v256_v49, %v191_v16  ;;  %v1932_v49 = vpop.xlane.xlu0 %1931  ;;  %v3262_v0 = vpop.eup %3261  ;;  %v1253_v15 = vmul.f32 0.6931472, %v3260_v37  ;;  %3269 = vlog2.f32 %v1220_v53  ;;  %v4794_v19 = vmul.f32 2.0, %v4649_v39 }
 0x13f   :  { %v3264_v26 = vpop.eup %3263  ;;  %v1190_v10 = vmul.f32 100.0, %v902_v4  ;;  %v1502_v33 = vsub.f32 1.0, %v3262_v0  ;;  %v322_v55 = vadd.f32 %v321_v46, %v4723_v22  ;;  %v4798_v59 = vadd.f32 %v1932_v49, %v4549_v35 }
 0x140   :  { %v276_v57 = vsel %vm98_vm14, %v4753_v32, 0.0  ;;  %v698_v16 = vpop.f32.mrf.mxu2  ;;  %v3266_v12 = vpop.eup %3265  ;;  %6378 = vst [vmem:[#allocation46_spill] sm:$0xff] %v4794_v19  ;;  %v1503_v53 = vsub.f32 1.0, %v3264_v26  ;;  %3271 = vlog2.f32 %v1221_v13  ;;  %v1313_v22 = vmul.f32 -0.505, %v1253_v15 }
 0x141   :  { %648 = vadd.xlane.f32.xlu1 %v625_v47  ;;  %306 = vadd.xlane.f32.xlu2 %v276_v57  ;;  %v4779_v47 = vadd.f32 -1.1647458, %v1312_v21  ;;  %v840_v44 = vmul.f32 2.0, %v698_v16  ;;  %v903_v21 = vmax.f32 %v871_v42, 0.0  ;;  %v1222_v16 = vadd.f32 1.0, %v1190_v10  ;;  %v3268_v37 = vpop.eup %3267  ;;  %v763_v10 = vpop.f32.mrf.mxu3 }
 0x142   :  { %v323_v4 = vadd.f32 %v322_v55, %v276_v57  ;;  %v1534_v0 = vadd.f32 1e-12, %v1502_v33  ;;  %v4808_v42 = vadd.f32 %v1932_v49, %v4551_v38  ;;  %v627_v57 = vmul.f32 %v4542_v6, %v4542_v6 }
 0x143   :  { %v872_v11 = vsub.f32 %v808_v62, %v840_v44  ;;  %v1378_v28 = vmul.f32 1.442695, %v4779_v47  ;;  %v1191_v51 = vmul.f32 100.0, %v903_v21  ;;  %v4801_v62 = vadd.s32 128, %v4684_v7 }
 0x144   :  { %3273 = vlog2.f32 %v1222_v16  ;;  %v3270_v15 = vpop.eup %3269  ;;  %v1535_v26 = vadd.f32 1e-12, %v1503_v53  ;;  %v809_v46 = vadd.f32 %v4551_v38, %v4768_v29  ;;  %v4817_v49 = vmul.f32 2.0, %v4707_v2  ;;  %v4823_v29 = vpop.xlane.xlu1 %646 }
 0x145   :  { %v194_v14 = vpop.f32.mrf.mxu0  ;;  %v259_v63 = vpop.f32.mrf.mxu1  ;;  %6379 = vst [vmem:[#allocation47_spill] sm:$0xff] %v4801_v62  ;;  %3275 = vpow2.f32 %v1378_v28  ;;  %v4819_v21 = vadd.f32 -1.1647458, %v1313_v22  ;;  %v1918_v28 = vmul.f32 %v4604_v56, %v4604_v56 }
 0x146   :  { %v4791_v61 = vadd.f32 %v259_v63, %v194_v14  ;;  %v1255_v63 = vmul.f32 0.6931472, %v3266_v12  ;;  %v1257_v12 = vmul.f32 0.6931472, %v3268_v37  ;;  %v4814_v13 = vpop.xlane.xlu0 %278  ;;  %v841_v14 = vmul.f32 2.0, %v763_v10  ;;  %6380 = vst [vmem:[#allocation48_spill] sm:$0xff] %v4817_v49 }
 0x147   :  { %6381 = vst [vmem:[#allocation49_spill] sm:$0xff] %v4819_v21  ;;  %3277 = vlog2.f32 %v1534_v0  ;;  %v1380_v56 = vmul.f32 1.442695, %v4819_v21 }
 0x148   :  { %v277_v39 = vsel %vm99_vm15, %v4791_v61, 0.0  ;;  %v1314_v55 = vmul.f32 -0.505, %v1255_v63  ;;  %v873_v62 = vsub.f32 %v809_v46, %v841_v14 }
 0x149   :  { %650 = vadd.xlane.f32.xlu1 %v626_v17  ;;  %1939 = vadd.xlane.f32.xlu2 %v1917_v24  ;;  %v324_v44 = vadd.f32 %v323_v4, %v277_v39  ;;  %v1223_v17 = vadd.f32 1.0, %v1191_v51  ;;  %v904_v24 = vmax.f32 %v872_v11, 0.0  ;;  %v3272_v11 = vpop.eup %3271  ;;  %v1259_v51 = vmul.f32 0.6931472, %v3270_v15 }
 0x14a   :  { %308 = vadd.xlane.f32.xlu0 %v277_v39  ;;  %v3274_v4 = vpop.eup %3273  ;;  %v1315_v39 = vmul.f32 -0.505, %v1257_v12  ;;  %v4827_v7 = vadd.f32 -1.1647458, %v1314_v55  ;;  %v1261_v0 = vmul.f32 0.6931472, %v3272_v11 }
 0x14b   :  { %v325_v33 = vrot.slane %v324_v44, 4  ;;  %3279 = vlog2.f32 %v1223_v17  ;;  %v1192_v2 = vmul.f32 100.0, %v904_v24  ;;  %v3276_v18 = vpop.eup %3275  ;;  %v1316_v15 = vmul.f32 -0.505, %v1259_v51 }
 0x14c   :  { %3281 = vlog2.f32 %v1535_v26  ;;  %v1263_v17 = vmul.f32 0.6931472, %v3274_v4  ;;  %v4830_v24 = vadd.f32 -1.1647458, %v1315_v39  ;;  %v1504_v14 = vsub.f32 1.0, %v3276_v18 }
 0x14d   :  { %v1976_v6 = vpop.f32.mrf.mxu0  ;;  %v2041_v16 = vpop.f32.mrf.mxu1  ;;  %v326_v37 = vadd.f32 %v325_v33, %v324_v44  ;;  %v905_v11 = vmax.f32 %v873_v62, 0.0  ;;  %v1919_v4 = vmul.f32 %v4660_v48, %v4660_v48 }
 0x14e   :  { %v2121_v53 = vmul.f32 2.0, %v1976_v6  ;;  %v2122_v10 = vmul.f32 2.0, %v2041_v16  ;;  %6382 = vst [vmem:[#allocation50_spill] sm:$0xff] %v4830_v24  ;;  %v1224_v6 = vadd.f32 1.0, %v1192_v2  ;;  %v4834_v46 = vpop.eup %3277  ;;  %v1318_v2 = vmul.f32 -0.505, %v1263_v17 }
 0x14f   :  { %v327_v22 = vrot.slane %v326_v37, 2  ;;  %v1384_v62 = vmul.f32 1.442695, %v4830_v24 }
 0x150   :  { %v2153_v63 = vsub.f32 %v4783_v27, %v2121_v53  ;;  %v2154_v44 = vsub.f32 %v4788_v5, %v2122_v10  ;;  %v628_v27 = vmul.f32 %v4563_v9, %v4563_v9  ;;  %v4841_v10 = vadd.f32 -1.1647458, %v1316_v15 }
 0x151   :  { %652 = vadd.xlane.f32.xlu1 %v627_v57  ;;  %1941 = vadd.xlane.f32.xlu2 %v1918_v28  ;;  %v328_v12 = vadd.f32 %v327_v22, %v326_v37  ;;  %v3280_v5 = vpop.eup %3279  ;;  %v1382_v57 = vmul.f32 1.442695, %v4827_v7  ;;  %v1317_v28 = vmul.f32 -0.505, %v1261_v0  ;;  %v281_v22 = vpop.xlane.xlu0 %280  ;;  %3283 = vlog2.f32 %v1224_v6 }
 0x152   :  { %v2185_v33 = vmax.f32 %v2153_v63, 0.0  ;;  %v2186_v26 = vmax.f32 %v2154_v44, 0.0  ;;  %v4839_v39 = vpop.eup %3281  ;;  %v1386_v17 = vmul.f32 1.442695, %v4841_v10  ;;  %v4852_v6 = vadd.f32 -1.1647458, %v1318_v2 }
 0x153   :  { %v329_v55 = vrot.slane %v328_v12, 1  ;;  %v4847_v21 = vadd.f32 -1.1647458, %v1317_v28 }
 0x154   :  { %v2473_v16 = vmul.f32 100.0, %v2185_v33  ;;  %v2474_v51 = vmul.f32 100.0, %v2186_v26  ;;  %v1265_v33 = vmul.f32 0.6931472, %v3280_v5  ;;  %v283_v26 = vpop.xlane.xlu1 %282 }
 0x155   :  { %v1979_v37 = vpop.f32.mrf.mxu0  ;;  %v2044_v53 = vpop.f32.mrf.mxu1  ;;  %v4843_v9 = vadd.f32 %v329_v55, %v328_v12  ;;  %6383 = vst [vmem:[#allocation51_spill] sm:$0xff] %v4847_v21  ;;  %v1193_v12 = vmul.f32 100.0, %v905_v11 }
 0x156   :  { %v2505_v18 = vadd.f32 1.0, %v2473_v16  ;;  %v2506_v63 = vadd.f32 1.0, %v2474_v51  ;;  %v2123_v44 = vmul.f32 2.0, %v1979_v37  ;;  %v2124_v48 = vmul.f32 2.0, %v2044_v53 }
 0x157   :  { %v332_v0 = vadd.f32 %v4843_v9, %v281_v22  ;;  %v333_v15 = vadd.f32 %v4843_v9, %v283_v26  ;;  %v1536_v16 = vadd.f32 1e-12, %v1504_v14  ;;  %v1319_v37 = vmul.f32 -0.505, %v1265_v33  ;;  %v3284_v11 = vpop.eup %3283 }
 0x158   :  { %3285 = vlog2.f32 %v2505_v18  ;;  %v2155_v28 = vsub.f32 %v4714_v43, %v2123_v44  ;;  %v1934_v44 = vpop.xlane.xlu2 %1933 }
 0x159   :  { %3287 = vlog2.f32 %v2506_v63  ;;  %654 = vadd.xlane.f32.xlu1 %v628_v27  ;;  %1943 = vadd.xlane.f32.xlu2 %v1919_v4  ;;  %v364_v55 = vsub.f32 %v332_v0, %v4639_v23  ;;  %v365_v5 = vsub.f32 %v333_v15, %v4652_v54  ;;  %v2156_v27 = vsub.f32 %v4733_v31, %v2124_v48 }
 0x15a   :  { %3289 = vpow2.f32 %v1380_v56  ;;  %v1388_v56 = vmul.f32 1.442695, %v4847_v21  ;;  %v2187_v23 = vmax.f32 %v2155_v28, 0.0  ;;  %v1225_v4 = vadd.f32 1.0, %v1193_v12 }
 0x15b   :  { %3291 = vpow2.f32 %v1382_v57  ;;  %v4856_v51 = vmax.f32 %v364_v55, 0.0  ;;  %v4860_v53 = vmax.f32 %v365_v5, 0.0  ;;  %v1390_v54 = vmul.f32 1.442695, %v4852_v6  ;;  %v4870_v55 = vld [vmem:[#allocation6 + $0xd0] sm:$0xff] }
 0x15c   :  { %3293 = vpow2.f32 %v1384_v62  ;;  %v2188_v43 = vmax.f32 %v2156_v27, 0.0  ;;  %v2475_v22 = vmul.f32 100.0, %v2187_v23  ;;  %v4866_v63 = vmul.f32 2.0, %v4753_v32  ;;  %2005 = vmatmul.f32.gmra.mxu0 %v4870_v55  ;;  %2070 = vmatmul.f32.gmra.mxu1 %v4870_v55  ;;  %v285_v21 = vpop.xlane.xlu1 %284 }
 0x15d   :  { %3295 = vpow2.f32 %v1386_v17  ;;  %v928_v14 = vmul.f32 0.01, %v4856_v51  ;;  %v930_v62 = vmul.f32 0.01, %v4860_v53  ;;  %v4868_v26 = vadd.f32 -1.1647458, %v1319_v37 }
 0x15e   :  { %v3286_v18 = vpop.eup %3285  ;;  %3297 = vlog2.f32 %v1225_v4  ;;  %6384 = vst [vmem:[#allocation52_spill] sm:$0xff] %v4866_v63  ;;  %v2476_v17 = vmul.f32 100.0, %v2188_v43  ;;  %v4873_v28 = vadd.f32 %v1934_v44, %v4549_v35  ;;  %v1267_v32 = vmul.f32 0.6931472, %v3284_v11  ;;  %v4877_v37 = vld [vmem:[#allocation6 + $0x78] sm:$0xff] }
 0x15f   :  { %v3288_v57 = vpop.eup %3287  ;;  %v2538_v2 = vmul.f32 0.6931472, %v3286_v18  ;;  %v960_v0 = vadd.f32 1.0, %v928_v14  ;;  %6385 = vst [vmem:[#allocation53_spill] sm:$0xff] %v4868_v26  ;;  %3299 = vpow2.f32 %v1388_v56  ;;  %v962_v12 = vadd.f32 1.0, %v930_v62  ;;  %727 = vmatmul.f32.gmra.mxu2 %v4877_v37  ;;  %792 = vmatmul.f32.gmra.mxu3 %v4877_v37 }
 0x160   :  { %v3290_v31 = vpop.eup %3289  ;;  %v2540_v33 = vmul.f32 0.6931472, %v3288_v57  ;;  %v4880_v56 = vadd.f32 %v1934_v44, %v4551_v38  ;;  %v2507_v18 = vadd.f32 1.0, %v2475_v22  ;;  %v4888_v11 = vadd.f32 %v4549_v35, %v4823_v29  ;;  %v1982_v44 = vpop.f32.mrf.mxu0 }
 0x161   :  { %v3292_v48 = vpop.eup %3291  ;;  %v2601_v15 = vmul.f32 -0.505, %v2538_v2  ;;  %3301 = vlog2.f32 %v960_v0  ;;  %v1505_v23 = vsub.f32 1.0, %v3290_v31  ;;  %v4892_v43 = vadd.f32 %v4551_v38, %v4823_v29 }
 0x162   :  { %v3294_v5 = vpop.eup %3293  ;;  %v2602_v27 = vmul.f32 -0.505, %v2540_v33  ;;  %3303 = vpow2.f32 %v1390_v54  ;;  %v1392_v57 = vmul.f32 1.442695, %v4868_v26  ;;  %v4896_v62 = vmul.f32 0.6931472, %v4834_v46  ;;  %v2047_v46 = vpop.f32.mrf.mxu1 }
 0x163   :  { %v4882_v4 = vadd.f32 -1.1647458, %v2601_v15  ;;  %v3296_v14 = vpop.eup %3295  ;;  %v1506_v22 = vsub.f32 1.0, %v3292_v48  ;;  %3305 = vlog2.f32 %v962_v12  ;;  %v2508_v31 = vadd.f32 1.0, %v2476_v17 }
 0x164   :  { %v3298_v2 = vpop.eup %3297  ;;  %6387 = vst [vmem:[#allocation55_spill] sm:$0xff] %v4896_v62  ;;  %3307 = vlog2.f32 %v1536_v16  ;;  %v4899_v33 = vadd.f32 -1.1647458, %v2602_v27  ;;  %v1320_v15 = vmul.f32 -0.505, %v1267_v32  ;;  %v1507_v24 = vsub.f32 1.0, %v3294_v5 }
 0x165   :  { %6386 = vst [vmem:[#allocation54_spill] sm:$0xff] %v4882_v4  ;;  %v2665_v0 = vmul.f32 1.442695, %v4882_v4  ;;  %v3300_v29 = vpop.eup %3299  ;;  %v4902_v54 = vmul.f32 0.6931472, %v4839_v39  ;;  %3309 = vlog2.f32 %v2507_v18  ;;  %v1508_v48 = vsub.f32 1.0, %v3296_v14 }
 0x166   :  { %6388 = vst [vmem:[#allocation56_spill] sm:$0xff] %v4899_v33  ;;  %v1537_v26 = vadd.f32 1e-12, %v1505_v23  ;;  %3311 = vpow2.f32 %v1392_v57  ;;  %v1269_v12 = vmul.f32 0.6931472, %v3298_v2  ;;  %v2125_v17 = vmul.f32 2.0, %v1982_v44  ;;  %v1936_v23 = vpop.xlane.xlu2 %1935 }
 0x167   :  { %6389 = vst [vmem:[#allocation57_spill] sm:$0xff] %v4902_v54  ;;  %v3302_v63 = vpop.eup %3301  ;;  %v1538_v16 = vadd.f32 1e-12, %v1506_v22  ;;  %v4905_v4 = vmul.f32 2.0, %v4791_v61  ;;  %3313 = vlog2.f32 %v2508_v31  ;;  %v334_v27 = vadd.f32 %v4843_v9, %v285_v21  ;;  %v701_v54 = vpop.f32.mrf.mxu2 }
 0x168   :  { %v3304_v32 = vpop.eup %3303  ;;  %3315 = vpow2.f32 %v2665_v0  ;;  %v2667_v39 = vmul.f32 1.442695, %v4899_v33  ;;  %v4909_v5 = vadd.f32 -1.1647458, %v1320_v15  ;;  %v2126_v18 = vmul.f32 2.0, %v2047_v46 }
 0x169   :  { %6390 = vst [vmem:[#allocation58_spill] sm:$0xff] %v4905_v4  ;;  %v3306_v14 = vpop.eup %3305  ;;  %3317 = vlog2.f32 %v1537_v26  ;;  %v1539_v57 = vadd.f32 1e-12, %v1507_v24  ;;  %v1509_v2 = vsub.f32 1.0, %v3300_v29  ;;  %v995_v22 = vmul.f32 0.6931472, %v3302_v63 }
 0x16a   :  { %6391 = vst [vmem:[#allocation59_spill] sm:$0xff] %v4909_v5  ;;  %v4911_v44 = vpop.eup %3307  ;;  %v1540_v61 = vadd.f32 1e-12, %v1508_v48  ;;  %v4914_v31 = vadd.f32 %v1936_v23, %v4549_v35  ;;  %v1321_v21 = vmul.f32 -0.505, %v1269_v12  ;;  %v2157_v0 = vsub.f32 %v4798_v59, %v2125_v17 }
 0x16b   :  { %v3310_v33 = vpop.eup %3309  ;;  %3319 = vlog2.f32 %v1538_v16  ;;  %v1510_v15 = vsub.f32 1.0, %v3304_v32  ;;  %v366_v46 = vsub.f32 %v334_v27, %v4655_v3  ;;  %v842_v4 = vmul.f32 2.0, %v701_v54  ;;  %v766_v54 = vpop.f32.mrf.mxu3 }
 0x16c   :  { %v3312_v62 = vpop.eup %3311  ;;  %3321 = vpow2.f32 %v2667_v39  ;;  %v999_v24 = vmul.f32 0.6931472, %v3306_v14  ;;  %v1394_v63 = vmul.f32 1.442695, %v4909_v5  ;;  %v2158_v26 = vsub.f32 %v4808_v42, %v2126_v18 }
 0x16d   :  { %v3314_v29 = vpop.eup %3313  ;;  %3323 = vlog2.f32 %v1539_v57  ;;  %v1541_v48 = vadd.f32 1e-12, %v1509_v2  ;;  %v1056_v49 = vmul.f32 -50.5, %v995_v22  ;;  %v4921_v12 = vadd.f32 %v1936_v23, %v4551_v38 }
 0x16e   :  { %v3316_v59 = vpop.eup %3315  ;;  %3325 = vlog2.f32 %v1540_v61  ;;  %v2542_v17 = vmul.f32 0.6931472, %v3310_v33  ;;  %v4923_v16 = vadd.f32 -1.1647458, %v1321_v21  ;;  %v2189_v3 = vmax.f32 %v2157_v0, 0.0  ;;  %v4930_v21 = vld [vmem:[#allocation6 + $0xd8] sm:$0xff] }
 0x16f   :  { %v3318_v27 = vpop.eup %3317  ;;  %v1542_v32 = vadd.f32 1e-12, %v1510_v15  ;;  %v1511_v39 = vsub.f32 1.0, %v3312_v62  ;;  %v4925_v14 = vmax.f32 %v366_v46, 0.0  ;;  %v874_v42 = vsub.f32 %v4888_v11, %v842_v4  ;;  %v4933_v46 = vpop.xlane.xlu2 %1937  ;;  %2008 = vmatmul.f32.gmra.mxu0 %v4930_v21  ;;  %2073 = vmatmul.f32.gmra.mxu1 %v4930_v21 }
 0x170   :  { %6392 = vst [vmem:[#allocation60_spill] sm:$0xff] %v4923_v16  ;;  %v1058_v18 = vmul.f32 -50.5, %v999_v24  ;;  %v2544_v57 = vmul.f32 0.6931472, %v3314_v29  ;;  %3327 = vpow2.f32 %v1394_v63  ;;  %v2190_v2 = vmax.f32 %v2158_v26, 0.0  ;;  %v4939_v26 = vld [vmem:[#allocation6 + $0xe0] sm:$0xff] }
 0x171   :  { %6393 = vst [vmem:[#allocation61_spill] sm:$0xff] %v4925_v14  ;;  %v3320_v23 = vpop.eup %3319  ;;  %v1090_v22 = vmul.f32 1.442695, %v1056_v49  ;;  %v2793_v19 = vsub.f32 1.0, %v3316_v59  ;;  %v843_v61 = vmul.f32 2.0, %v766_v54  ;;  %v331_v33 = vadd.f32 %v4843_v9, %v4814_v13  ;;  %2011 = vmatmul.f32.vlgmr.msra.gmra.mxu2 %v4939_v26  ;;  %2076 = vmatmul.f32.vlgmr.msra.gmra.mxu3 %v4939_v26 }
 0x172   :  { %v3322_v0 = vpop.eup %3321  ;;  %3329 = vlog2.f32 %v1541_v48  ;;  %v2603_v62 = vmul.f32 -0.505, %v2542_v17  ;;  %v1396_v15 = vmul.f32 1.442695, %v4923_v16  ;;  %v2477_v4 = vmul.f32 100.0, %v2189_v3 }
 0x173   :  { %v3324_v49 = vpop.eup %3323  ;;  %v1543_v11 = vadd.f32 1e-12, %v1511_v39  ;;  %v932_v24 = vmul.f32 0.01, %v4925_v14  ;;  %v906_v63 = vmax.f32 %v874_v42, 0.0  ;;  %v875_v13 = vsub.f32 %v4892_v43, %v843_v61 }
 0x174   :  { %v3326_v29 = vpop.eup %3325  ;;  %3331 = vlog2.f32 %v1542_v32  ;;  %v1094_v48 = vmul.f32 1.442695, %v1058_v18  ;;  %v2604_v59 = vmul.f32 -0.505, %v2544_v57  ;;  %v2478_v17 = vmul.f32 100.0, %v2190_v2 }
 0x175   :  { %3333 = vpow2.f32 %v1090_v22  ;;  %v2825_v3 = vadd.f32 1e-12, %v2793_v19  ;;  %v2794_v54 = vsub.f32 1.0, %v3322_v0  ;;  %v363_v39 = vsub.f32 %v331_v33, %v4635_v40 }
 0x176   :  { %v3328_v16 = vpop.eup %3327  ;;  %v4944_v42 = vadd.f32 -1.1647458, %v2603_v62  ;;  %3335 = vpow2.f32 %v1396_v15  ;;  %v2509_v43 = vadd.f32 1.0, %v2477_v4  ;;  %v907_v61 = vmax.f32 %v875_v13, 0.0 }
 0x177   :  { %v4947_v32 = vmul.f32 0.6931472, %v4911_v44  ;;  %3337 = vlog2.f32 %v1543_v11  ;;  %v964_v18 = vadd.f32 1.0, %v932_v24  ;;  %v1194_v57 = vmul.f32 100.0, %v906_v63 }
 0x178   :  { %6394 = vst [vmem:[#allocation62_spill] sm:$0xff] %v4944_v42  ;;  %v3330_v2 = vpop.eup %3329  ;;  %v4949_v5 = vmul.f32 0.6931472, %v3318_v27  ;;  %3339 = vpow2.f32 %v1094_v48  ;;  %v4951_v19 = vadd.f32 -1.1647458, %v2604_v59  ;;  %v2510_v22 = vadd.f32 1.0, %v2478_v17 }
 0x179   :  { %3341 = vlog2.f32 %v2825_v3  ;;  %v2826_v40 = vadd.f32 1e-12, %v2794_v54  ;;  %v1195_v33 = vmul.f32 100.0, %v907_v61  ;;  %v4953_v0 = vmax.f32 %v363_v39, 0.0  ;;  %v2050_v39 = vpop.f32.mrf.mxu1 }
 0x17a   :  { %6395 = vst [vmem:[#allocation63_spill] sm:$0xff] %v4949_v5  ;;  %v3332_v62 = vpop.eup %3331  ;;  %v2669_v15 = vmul.f32 1.442695, %v4944_v42  ;;  %v1512_v44 = vsub.f32 1.0, %v3328_v16  ;;  %3343 = vlog2.f32 %v2509_v43  ;;  %v629_v4 = vmul.f32 %v4586_v41, %v4586_v41  ;;  %v287_v41 = vpop.xlane.xlu2 %286 }
 0x17b   :  { %6396 = vst [vmem:[#allocation64_spill] sm:$0xff] %v4951_v19  ;;  %v3334_v11 = vpop.eup %3333  ;;  %v4958_v27 = vmul.f32 0.6931472, %v3320_v23  ;;  %3345 = vlog2.f32 %v964_v18  ;;  %v1226_v24 = vadd.f32 1.0, %v1194_v57  ;;  %v4964_v63 = vsel %vm84_vm0, 1e+30, %v4953_v0 }
 0x17c   :  { %v3336_v13 = vpop.eup %3335  ;;  %v4966_v48 = vmul.f32 0.6931472, %v3324_v49  ;;  %v4968_v59 = vmul.f32 0.6931472, %v3326_v29  ;;  %v2671_v16 = vmul.f32 1.442695, %v4951_v19  ;;  %3347 = vlog2.f32 %v2510_v22  ;;  %433 = vmin.xlane.f32.xlu0 %v4964_v63  ;;  %656 = vadd.xlane.f32.xlu1 %v629_v4  ;;  %v1985_v49 = vpop.f32.mrf.mxu0 }
 0x17d   :  { %v3338_v23 = vpop.eup %3337  ;;  %v4972_v17 = vmul.f32 0.6931472, %v3330_v2  ;;  %3349 = vlog2.f32 %v2826_v40  ;;  %v4976_v3 = vadd.f32 %v4933_v46, %v4549_v35  ;;  %v1227_v54 = vadd.f32 1.0, %v1195_v33 }
 0x17e   :  { %6397 = vst [vmem:[#allocation65_spill] sm:$0xff] %v4966_v48  ;;  %v3340_v29 = vpop.eup %3339  ;;  %v1152_v43 = vmul.f32 2.5003695, %v3334_v11  ;;  %3351 = vpow2.f32 %v2669_v15  ;;  %v1544_v61 = vadd.f32 1e-12, %v1512_v44  ;;  %v1920_v18 = vmul.f32 %v4751_v34, %v4751_v34 }
 0x17f   :  { %6398 = vst [vmem:[#allocation66_spill] sm:$0xff] %v4972_v17  ;;  %v3342_v57 = vpop.eup %3341  ;;  %v1513_v22 = vsub.f32 1.0, %v3336_v13  ;;  %v4982_v2 = vadd.f32 %v4933_v46, %v4551_v38  ;;  %3353 = vlog2.f32 %v1226_v24  ;;  %v335_v40 = vadd.f32 %v4843_v9, %v287_v41 }
 0x180   :  { %v3344_v4 = vpop.eup %3343  ;;  %v4985_v33 = vmul.f32 0.6931472, %v3332_v62  ;;  %3355 = vpow2.f32 %v2671_v16  ;;  %1945 = vadd.xlane.f32.xlu2 %v1920_v18  ;;  %v2127_v11 = vmul.f32 2.0, %v1985_v49  ;;  %v2128_v15 = vmul.f32 2.0, %v2050_v39 }
 0x181   :  { %v3346_v44 = vpop.eup %3345  ;;  %v4987_v17 = vmul.f32 0.6931472, %v3338_v23  ;;  %v4989_v34 = vmul.f32 2.5003695, %v3340_v29  ;;  %3357 = vlog2.f32 %v1227_v54  ;;  %v367_v13 = vsub.f32 %v335_v40, %v4663_v30 }
 0x182   :  { %v3348_v46 = vpop.eup %3347  ;;  %v1472_v48 = vsub.f32 1.0, %v1152_v43  ;;  %3359 = vlog2.f32 %v1544_v61  ;;  %v2159_v24 = vsub.f32 %v4873_v28, %v2127_v11  ;;  %v2160_v62 = vsub.f32 %v4880_v56, %v2128_v15 }
 0x183   :  { %6399 = vst [vmem:[#allocation67_spill] sm:$0xff] %v4987_v17  ;;  %v3350_v41 = vpop.eup %3349  ;;  %v1545_v16 = vadd.f32 1e-12, %v1513_v22  ;;  %v2546_v18 = vmul.f32 0.6931472, %v3344_v4  ;;  %v630_v23 = vmul.f32 %v4618_v25, %v4618_v25  ;;  %v1440_v54 = vmul.f32 %v4779_v47, %v1152_v43 }
 0x184   :  { %v926_v49 = vmul.f32 0.01, %v4953_v0  ;;  %v3352_v39 = vpop.eup %3351  ;;  %v1003_v29 = vmul.f32 0.6931472, %v3346_v44  ;;  %v4998_v30 = vmax.f32 %v367_v13, 0.0  ;;  %v2191_v40 = vmax.f32 %v2159_v24, 0.0  ;;  %v289_v13 = vpop.xlane.xlu2 %288 }
 0x185   :  { %v3354_v61 = vpop.eup %3353  ;;  %v5000_v17 = vmul.f32 0.6931472, %v3342_v57  ;;  %v5004_v28 = vmul.f32 %v4827_v7, %v4989_v34  ;;  %v1474_v56 = vsub.f32 1.0, %v4989_v34  ;;  %v2548_v22 = vmul.f32 0.6931472, %v3348_v46  ;;  %658 = vadd.xlane.f32.xlu1 %v630_v23  ;;  %v1988_v46 = vpop.f32.mrf.mxu0  ;;  %v5019_v24 = vld [vmem:[#allocation6 + $0xe8] sm:$0xff] }
 0x186   :  { %6400 = vst [vmem:[#allocation68_spill] sm:$0xff] %v4998_v30  ;;  %v5007_v4 = vpop.eup %3355  ;;  %v1632_v25 = vmul.f32 %v4947_v32, %v1472_v48  ;;  %v934_v47 = vmul.f32 0.01, %v4998_v30  ;;  %v2479_v43 = vmul.f32 100.0, %v2191_v40  ;;  %v2192_v11 = vmax.f32 %v2160_v62, 0.0  ;;  %2014 = vmatmul.f32.gmra.mxu2 %v5019_v24  ;;  %2079 = vmatmul.f32.gmra.mxu3 %v5019_v24 }
 0x187   :  { %v3358_v15 = vpop.eup %3357  ;;  %v2605_v44 = vmul.f32 -0.505, %v2546_v18  ;;  %v958_v57 = vadd.f32 1.0, %v926_v49  ;;  %v5015_v7 = vsel %vm85_vm1, 1e+30, %v4856_v51  ;;  %v1921_v34 = vmul.f32 %v4870_v55, %v4870_v55 }
 0x188   :  { %v5021_v32 = vpop.eup %3359  ;;  %v1060_v48 = vmul.f32 -50.5, %v1003_v29  ;;  %v1271_v62 = vmul.f32 0.6931472, %v3354_v61  ;;  %v966_v23 = vadd.f32 1.0, %v934_v47  ;;  %v2511_v18 = vadd.f32 1.0, %v2479_v43  ;;  %435 = vmin.xlane.f32.xlu0 %v5015_v7  ;;  %v2053_v47 = vpop.f32.mrf.mxu1 }
 0x189   :  { %v2795_v49 = vsub.f32 1.0, %v3352_v39  ;;  %v2606_v40 = vmul.f32 -0.505, %v2548_v22  ;;  %v2480_v19 = vmul.f32 100.0, %v2192_v11  ;;  %1947 = vadd.xlane.f32.xlu2 %v1921_v34  ;;  %v1273_v42 = vmul.f32 0.6931472, %v3358_v15 }
 0x18a   :  { %3361 = vlog2.f32 %v966_v23  ;;  %v336_v29 = vadd.f32 %v4843_v9, %v289_v13  ;;  %v2129_v61 = vmul.f32 2.0, %v1988_v46  ;;  %v5029_v43 = vmul.f32 0.6931472, %v3350_v41 }
 0x18b   :  { %v5031_v5 = vadd.f32 -1.1647458, %v2605_v44  ;;  %3363 = vlog2.f32 %v958_v57  ;;  %v2512_v39 = vadd.f32 1.0, %v2480_v19  ;;  %v1098_v22 = vmul.f32 1.442695, %v1060_v48 }
 0x18c   :  { %v1322_v11 = vmul.f32 -0.505, %v1271_v62  ;;  %3365 = vlog2.f32 %v2511_v18  ;;  %v368_v55 = vsub.f32 %v336_v29, %v4677_v58  ;;  %v5034_v34 = vadd.f32 -1.1647458, %v2606_v40  ;;  %v5055_v40 = vld [vmem:[#allocation6 + $0xf0] sm:$0xff] }
 0x18d   :  { %6401 = vst [vmem:[#allocation69_spill] sm:$0xff] %v5031_v5  ;;  %3367 = vlog2.f32 %v2512_v39  ;;  %v2161_v15 = vsub.f32 %v4914_v31, %v2129_v61  ;;  %v2130_v23 = vmul.f32 2.0, %v2053_v47  ;;  %v2827_v13 = vadd.f32 1e-12, %v2795_v49 }
 0x18e   :  { %6402 = vst [vmem:[#allocation70_spill] sm:$0xff] %v5034_v34  ;;  %3369 = vlog2.f32 %v1545_v16  ;;  %v1323_v46 = vmul.f32 -0.505, %v1273_v42  ;;  %v5037_v41 = vmax.f32 %v368_v55, 0.0  ;;  %v1634_v44 = vmul.f32 %v4958_v27, %v1474_v56  ;;  %2017 = vmatmul.f32.gmra.mxu2 %v5055_v40  ;;  %2082 = vmatmul.f32.gmra.mxu3 %v5055_v40 }
 0x18f   :  { %v2673_v19 = vmul.f32 1.442695, %v5031_v5  ;;  %v2193_v57 = vmax.f32 %v2161_v15, 0.0  ;;  %v2162_v48 = vsub.f32 %v4921_v12, %v2130_v23  ;;  %v5042_v58 = vadd.f32 %v1632_v25, %v1440_v54 }
 0x190   :  { %6403 = vst [vmem:[#allocation71_spill] sm:$0xff] %v5037_v41  ;;  %v3362_v62 = vpop.eup %3361  ;;  %v2796_v18 = vsub.f32 1.0, %v5007_v4  ;;  %v936_v31 = vmul.f32 0.01, %v5037_v41  ;;  %v397_v42 = vsel %vm86_vm2, 1e+30, %v4860_v53  ;;  %3371 = vpow2.f32 %v1098_v22 }
 0x191   :  { %v3364_v16 = vpop.eup %3363  ;;  %v2675_v27 = vmul.f32 1.442695, %v5034_v34  ;;  %v5051_v56 = vadd.f32 -1.1647458, %v1322_v11  ;;  %v2481_v49 = vmul.f32 100.0, %v2193_v57  ;;  %437 = vmin.xlane.f32.xlu0 %v397_v42  ;;  %3373 = vlog2.f32 %v2827_v13  ;;  %v293_v34 = vpop.xlane.xlu1 %292 }
 0x192   :  { %v3366_v12 = vpop.eup %3365  ;;  %v5053_v54 = vadd.f32 -1.1647458, %v1323_v46  ;;  %v968_v4 = vadd.f32 1.0, %v936_v31  ;;  %v2194_v25 = vmax.f32 %v2162_v48, 0.0  ;;  %3375 = vpow2.f32 %v2673_v19 }
 0x193   :  { %v3368_v55 = vpop.eup %3367  ;;  %v1007_v29 = vmul.f32 0.6931472, %v3362_v62  ;;  %v2550_v61 = vmul.f32 0.6931472, %v3366_v12  ;;  %v2513_v47 = vadd.f32 1.0, %v2481_v49  ;;  %v5062_v22 = vadd.f32 %v1634_v44, %v5004_v28  ;;  %v291_v49 = vpop.xlane.xlu0 %290 }
 0x194   :  { %6404 = vst [vmem:[#allocation72_spill] sm:$0xff] %v5053_v54  ;;  %v5059_v39 = vpop.eup %3369  ;;  %v2552_v11 = vmul.f32 0.6931472, %v3368_v55  ;;  %3377 = vlog2.f32 %v968_v4  ;;  %v2482_v15 = vmul.f32 100.0, %v2194_v25  ;;  %v1398_v23 = vmul.f32 1.442695, %v5051_v56  ;;  %v1991_v28 = vpop.f32.mrf.mxu0 }
 0x195   :  { %v991_v13 = vmul.f32 0.6931472, %v3364_v16  ;;  %v2607_v46 = vmul.f32 -0.505, %v2550_v61  ;;  %3379 = vlog2.f32 %v2513_v47  ;;  %v1400_v19 = vmul.f32 1.442695, %v5053_v54  ;;  %v2056_v25 = vpop.f32.mrf.mxu1 }
 0x196   :  { %v2608_v57 = vmul.f32 -0.505, %v2552_v11  ;;  %v2514_v48 = vadd.f32 1.0, %v2482_v15  ;;  %v6405_v62 = vmin.f32 %v4964_v63, %v5015_v7  ;;  %v3372_v44 = vpop.eup %3371  ;;  %v2828_v12 = vadd.f32 1e-12, %v2796_v18  ;;  %v3893_v47 = vld [vmem:[#allocation6 + $0x68] sm:$0xff] }
 0x197   :  { %v5072_v4 = vmul.f32 0.6931472, %v5021_v32  ;;  %3381 = vpow2.f32 %v2675_v27  ;;  %v1062_v16 = vmul.f32 -50.5, %v1007_v29  ;;  %v5074_v55 = vpop.eup %3373  ;;  %v5076_v61 = vadd.f32 -1.1647458, %v2607_v46 }
 0x198   :  { %v5069_v31 = vmin.f32 %v397_v42, %v6405_v62  ;;  %3383 = vlog2.f32 %v2514_v48  ;;  %v631_v11 = vmul.f32 %v3893_v47, %v3893_v47  ;;  %v1922_v63 = vmul.f32 %v4930_v21, %v4930_v21  ;;  %v3376_v7 = vpop.eup %3375  ;;  %v5085_v48 = vld [vmem:[#allocation6 + $0xf8] sm:$0xff] }
 0x199   :  { %6406 = vst [vmem:[#allocation73_spill] sm:$0xff] %v5076_v61  ;;  %3385 = vpow2.f32 %v1398_v23  ;;  %v5080_v42 = vadd.f32 -1.1647458, %v2608_v57  ;;  %v337_v32 = vadd.f32 %v4843_v9, %v291_v49  ;;  %v2131_v18 = vmul.f32 2.0, %v1991_v28  ;;  %2020 = vmatmul.f32.gmra.mxu2 %v5085_v48  ;;  %2085 = vmatmul.f32.gmra.mxu3 %v5085_v48 }
 0x19a   :  { %v3378_v27 = vpop.eup %3377  ;;  %v5083_v29 = vmul.f32 2.5003695, %v3372_v44  ;;  %3387 = vpow2.f32 %v1400_v19  ;;  %v1054_v15 = vmul.f32 -50.5, %v991_v13  ;;  %660 = vadd.xlane.f32.xlu1 %v631_v11  ;;  %1949 = vadd.xlane.f32.xlu2 %v1922_v63  ;;  %v2132_v46 = vmul.f32 2.0, %v2056_v25 }
 0x19b   :  { %6407 = vst [vmem:[#allocation74_spill] sm:$0xff] %v5080_v42  ;;  %v3380_v62 = vpop.eup %3379  ;;  %v1102_v47 = vmul.f32 1.442695, %v1062_v16  ;;  %v1011_v21 = vmul.f32 0.6931472, %v3378_v27  ;;  %v369_v23 = vsub.f32 %v337_v32, %v4691_v52  ;;  %v2163_v57 = vsub.f32 %v4976_v3, %v2131_v18  ;;  %v3894_v18 = vld [vmem:[#allocation6 + $0x70] sm:$0xff] }
 0x19c   :  { %v2677_v49 = vmul.f32 1.442695, %v5076_v61  ;;  %v2554_v19 = vmul.f32 0.6931472, %v3380_v62  ;;  %v2164_v13 = vsub.f32 %v4982_v2, %v2132_v46  ;;  %v5097_v28 = vsel %vm87_vm3, 1e+30, %v4925_v14 }
 0x19d   :  { %v5099_v44 = vpop.eup %3381  ;;  %v2679_v52 = vmul.f32 1.442695, %v5080_v42  ;;  %v1064_v3 = vmul.f32 -50.5, %v1011_v21  ;;  %v5102_v16 = vmax.f32 %v369_v23, 0.0  ;;  %v2195_v25 = vmax.f32 %v2163_v57, 0.0  ;;  %439 = vmin.xlane.f32.xlu0 %v5097_v28 }
 0x19e   :  { %v3384_v11 = vpop.eup %3383  ;;  %v2609_v63 = vmul.f32 -0.505, %v2554_v19  ;;  %v2196_v32 = vmax.f32 %v2164_v13, 0.0  ;;  %v632_v27 = vmul.f32 %v3894_v18, %v3894_v18  ;;  %3389 = vlog2.f32 %v2828_v12 }
 0x19f   :  { %6408 = vst [vmem:[#allocation75_spill] sm:$0xff] %v5102_v16  ;;  %v3386_v46 = vpop.eup %3385  ;;  %v1476_v62 = vsub.f32 1.0, %v5083_v29  ;;  %v938_v54 = vmul.f32 0.01, %v5102_v16  ;;  %v1923_v21 = vmul.f32 %v4939_v26, %v4939_v26  ;;  %v2797_v57 = vsub.f32 1.0, %v3376_v7 }
 0x1a0   :  { %v3388_v23 = vpop.eup %3387  ;;  %3391 = vpow2.f32 %v1102_v47  ;;  %v1106_v42 = vmul.f32 1.442695, %v1064_v3  ;;  %v2483_v19 = vmul.f32 100.0, %v2195_v25  ;;  %v2556_v13 = vmul.f32 0.6931472, %v3384_v11 }
 0x1a1   :  { %3393 = vpow2.f32 %v2677_v49  ;;  %v970_v61 = vadd.f32 1.0, %v938_v54  ;;  %v2484_v2 = vmul.f32 100.0, %v2196_v32  ;;  %v1086_v18 = vmul.f32 1.442695, %v1054_v15  ;;  %v295_v49 = vpop.xlane.xlu2 %294 }
 0x1a2   :  { %3395 = vpow2.f32 %v2679_v52  ;;  %v5111_v12 = vadd.f32 -1.1647458, %v2609_v63  ;;  %v2515_v5 = vadd.f32 1.0, %v2483_v19  ;;  %662 = vadd.xlane.f32.xlu1 %v632_v27  ;;  %1951 = vadd.xlane.f32.xlu2 %v1923_v21  ;;  %v5116_v7 = vmul.f32 0.6931472, %v5059_v39 }
 0x1a3   :  { %3397 = vlog2.f32 %v970_v61  ;;  %v2829_v47 = vadd.f32 1e-12, %v2797_v57  ;;  %v2798_v54 = vsub.f32 1.0, %v5099_v44  ;;  %v338_v15 = vadd.f32 %v4843_v9, %v293_v34 }
 0x1a4   :  { %6409 = vst [vmem:[#allocation76_spill] sm:$0xff] %v5111_v12  ;;  %3399 = vpow2.f32 %v1106_v42  ;;  %v3390_v52 = vpop.eup %3389  ;;  %v2610_v3 = vmul.f32 -0.505, %v2556_v13  ;;  %v2516_v25 = vadd.f32 1.0, %v2484_v2  ;;  %v5124_v11 = vsel %vm88_vm4, 1e+30, %v4998_v30 }
 0x1a5   :  { %6410 = vst [vmem:[#allocation77_spill] sm:$0xff] %v5116_v7  ;;  %3401 = vlog2.f32 %v2515_v5  ;;  %v1636_v61 = vmul.f32 %v4968_v59, %v1476_v62  ;;  %v1514_v63 = vsub.f32 1.0, %v3386_v46  ;;  %v2681_v42 = vmul.f32 1.442695, %v5111_v12  ;;  %441 = vmin.xlane.f32.xlu0 %v5124_v11 }
 0x1a6   :  { %v3392_v39 = vpop.eup %3391  ;;  %3403 = vpow2.f32 %v1086_v18  ;;  %v1515_v44 = vsub.f32 1.0, %v3388_v23  ;;  %v633_v5 = vmul.f32 %v4877_v37, %v4877_v37  ;;  %v1924_v32 = vmul.f32 %v5019_v24, %v5019_v24  ;;  %v297_v24 = vpop.xlane.xlu0 %296 }
 0x1a7   :  { %v3394_v34 = vpop.eup %3393  ;;  %v339_v2 = vadd.f32 %v4843_v9, %v295_v49  ;;  %v5135_v21 = vmul.f32 0.6931472, %v5074_v55  ;;  %v5137_v59 = vmul.f32 0.6931472, %v3390_v52  ;;  %3405 = vlog2.f32 %v2829_v47  ;;  %v6412_v55 = vld [vmem:[#allocation40_spill] sm:$0xff] }
 0x1a8   :  { %v3396_v27 = vpop.eup %3395  ;;  %v370_v46 = vsub.f32 %v338_v15, %v4696_v20  ;;  %v1444_v23 = vmul.f32 %v4841_v10, %v5083_v29  ;;  %v2830_v57 = vadd.f32 1e-12, %v2798_v54  ;;  %v5142_v37 = vadd.f32 -1.1647458, %v2610_v3 }
 0x1a9   :  { %v3398_v62 = vpop.eup %3397  ;;  %3407 = vlog2.f32 %v2516_v25  ;;  %v1546_v13 = vadd.f32 1e-12, %v1514_v63  ;;  %v371_v49 = vsub.f32 %v339_v2, %v6412_v55  ;;  %v1547_v20 = vadd.f32 1e-12, %v1515_v44  ;;  %v299_v63 = vpop.xlane.xlu1 %298 }
 0x1aa   :  { %6411 = vst [vmem:[#allocation78_spill] sm:$0xff] %v5142_v37  ;;  %v3400_v19 = vpop.eup %3399  ;;  %3409 = vpow2.f32 %v2681_v42  ;;  %v1015_v18 = vmul.f32 0.6931472, %v3398_v62  ;;  %664 = vadd.xlane.f32.xlu1 %v633_v5  ;;  %1953 = vadd.xlane.f32.xlu2 %v1924_v32  ;;  %v5145_v52 = vadd.f32 %v1636_v61, %v1444_v23  ;;  %v1158_v15 = vmul.f32 2.5003695, %v3392_v39  ;;  %v6414_v32 = vld [vmem:[#allocation18_spill] sm:$0xff] }
 0x1ab   :  { %v3402_v47 = vpop.eup %3401  ;;  %v2799_v26 = vsub.f32 1.0, %v3394_v34  ;;  %v2800_v29 = vsub.f32 1.0, %v3396_v27  ;;  %v5147_v3 = vmax.f32 %v370_v46, 0.0  ;;  %v340_v25 = vadd.f32 %v4843_v9, %v297_v24 }
 0x1ac   :  { %v3404_v10 = vpop.eup %3403  ;;  %v2558_v54 = vmul.f32 0.6931472, %v3402_v47  ;;  %3411 = vlog2.f32 %v2830_v57  ;;  %v1160_v42 = vmul.f32 2.5003695, %v3400_v19  ;;  %v2683_v5 = vmul.f32 1.442695, %v5142_v37 }
 0x1ad   :  { %6413 = vst [vmem:[#allocation40_spill] sm:$0xff] %v5147_v3  ;;  %v5155_v61 = vsel %vm89_vm5, 1e+30, %v5037_v41  ;;  %v3406_v39 = vpop.eup %3405  ;;  %v1066_v34 = vmul.f32 -50.5, %v1015_v18  ;;  %v5157_v2 = vmax.f32 %v371_v49, 0.0  ;;  %v1925_v27 = vmul.f32 %v5055_v40, %v5055_v40  ;;  %v6416_v18 = vld [vmem:[#allocation41_spill] sm:$0xff] }
 0x1ae   :  { %v2611_v44 = vmul.f32 -0.505, %v2558_v54  ;;  %443 = vmin.xlane.f32.xlu0 %v5155_v61  ;;  %3413 = vlog2.f32 %v1546_v13  ;;  %v1478_v23 = vsub.f32 1.0, %v1158_v15  ;;  %v2831_v57 = vadd.f32 1e-12, %v2799_v26  ;;  %v301_v26 = vpop.xlane.xlu2 %300 }
 0x1af   :  { %6415 = vst [vmem:[#allocation18_spill] sm:$0xff] %v5157_v2  ;;  %v3408_v46 = vpop.eup %3407  ;;  %v2832_v19 = vadd.f32 1e-12, %v2800_v29  ;;  %v940_v47 = vmul.f32 0.01, %v5147_v3  ;;  %v372_v54 = vsub.f32 %v340_v25, %v6416_v18  ;;  %3415 = vpow2.f32 %v2683_v5 }
 0x1b0   :  { %v3410_v24 = vpop.eup %3409  ;;  %v2560_v55 = vmul.f32 0.6931472, %v3408_v46  ;;  %v5165_v49 = vmul.f32 0.6931472, %v3406_v39  ;;  %v5167_v14 = vmul.f32 2.5003695, %v3404_v10  ;;  %3417 = vlog2.f32 %v1547_v20 }
 0x1b1   :  { %v5169_v7 = vadd.f32 -1.1647458, %v2611_v44  ;;  %v1480_v40 = vsub.f32 1.0, %v1160_v42  ;;  %v1110_v62 = vmul.f32 1.442695, %v1066_v34  ;;  %3419 = vlog2.f32 %v2831_v57  ;;  %v5176_v44 = vpop.xlane.xlu1 %304 }
 0x1b2   :  { %6417 = vst [vmem:[#allocation41_spill] sm:$0xff] %v5165_v49  ;;  %v942_v13 = vmul.f32 0.01, %v5157_v2  ;;  %1955 = vadd.xlane.f32.xlu2 %v1925_v27  ;;  %v3412_v29 = vpop.eup %3411  ;;  %v2801_v46 = vsub.f32 1.0, %v3410_v24  ;;  %v2612_v37 = vmul.f32 -0.505, %v2560_v55  ;;  %v341_v25 = vadd.f32 %v4843_v9, %v299_v63 }
 0x1b3   :  { %6418 = vst [vmem:[#allocation79_spill] sm:$0xff] %v5169_v7  ;;  %v1638_v39 = vmul.f32 %v4985_v33, %v1478_v23  ;;  %3421 = vlog2.f32 %v2832_v19  ;;  %v972_v10 = vadd.f32 1.0, %v940_v47  ;;  %v5174_v5 = vmax.f32 %v372_v54, 0.0  ;;  %v6420_v27 = vld [vmem:[#allocation15_spill] sm:$0xff]  ;;  %v6421_v24 = vld [vmem:[#allocation42_spill] sm:$0xff]  ;;  %v303_v47 = vpop.xlane.xlu0 %302 }
 0x1b4   :  { %v3414_v20 = vpop.eup %3413  ;;  %v2685_v34 = vmul.f32 1.442695, %v5169_v7  ;;  %v401_v57 = vsel %vm90_vm6, 1e+30, %v5102_v16  ;;  %v373_v55 = vsub.f32 %v341_v25, %v6421_v24  ;;  %v342_v63 = vadd.f32 %v4843_v9, %v301_v26  ;;  %v6423_v24 = vld [vmem:[#allocation59_spill] sm:$0xff] }
 0x1b5   :  { %6419 = vst [vmem:[#allocation80_spill] sm:$0xff] %v5174_v5  ;;  %v1640_v33 = vmul.f32 %v5072_v4, %v1480_v40  ;;  %3423 = vpow2.f32 %v1110_v62  ;;  %v974_v23 = vadd.f32 1.0, %v942_v13  ;;  %v1926_v19 = vmul.f32 %v5085_v48, %v5085_v48  ;;  %v3416_v18 = vpop.eup %3415  ;;  %v6425_v48 = vld [vmem:[#allocation45_spill] sm:$0xff] }
 0x1b6   :  { %445 = vmin.xlane.f32.xlu0 %v401_v57  ;;  %v1446_v7 = vmul.f32 %v4852_v6, %v1158_v15  ;;  %v2833_v12 = vadd.f32 1e-12, %v2801_v46  ;;  %v5190_v16 = vadd.f32 -1.1647458, %v2612_v37  ;;  %v3418_v25 = vpop.eup %3417  ;;  %v1448_v26 = vmul.f32 %v6423_v24, %v1160_v42 }
 0x1b7   :  { %3425 = vlog2.f32 %v972_v10  ;;  %v944_v4 = vmul.f32 0.01, %v5174_v5  ;;  %v5194_v62 = vmax.f32 %v373_v55, 0.0  ;;  %v3420_v40 = vpop.eup %3419  ;;  %v374_v41 = vsub.f32 %v342_v63, %v6425_v48 }
 0x1b8   :  { %6422 = vst [vmem:[#allocation15_spill] sm:$0xff] %v5190_v16  ;;  %v5196_v13 = vadd.f32 %v1638_v39, %v1446_v7  ;;  %3427 = vpow2.f32 %v2685_v34  ;;  %v343_v54 = vadd.f32 %v4843_v9, %v303_v47  ;;  %v5200_v15 = vadd.f32 %v1640_v33, %v1448_v26  ;;  %v704_v34 = vpop.f32.mrf.mxu2 }
 0x1b9   :  { %6424 = vst [vmem:[#allocation42_spill] sm:$0xff] %v5194_v62  ;;  %v3422_v6 = vpop.eup %3421  ;;  %v2802_v37 = vsub.f32 1.0, %v3416_v18  ;;  %v6426_v42 = vmin.f32 %v5097_v28, %v5069_v31  ;;  %3429 = vlog2.f32 %v974_v23  ;;  %v5206_v10 = vmul.f32 0.6931472, %v3412_v29  ;;  %v769_v31 = vpop.f32.mrf.mxu3 }
 0x1ba   :  { %1957 = vadd.xlane.f32.xlu2 %v1926_v19  ;;  %v1591_v7 = vmul.f32 0.6931472, %v3414_v20  ;;  %3431 = vlog2.f32 %v2833_v12  ;;  %v2687_v39 = vmul.f32 1.442695, %v5190_v16  ;;  %v5209_v63 = vmul.f32 0.6931472, %v3418_v25 }
 0x1bb   :  { %v414_v46 = vmin.f32 %v5124_v11, %v6426_v42  ;;  %6427 = vst [vmem:[#allocation59_spill] sm:$0xff] %v5206_v10  ;;  %v3424_v55 = vpop.eup %3423  ;;  %v976_v47 = vadd.f32 1.0, %v944_v4  ;;  %v946_v18 = vmul.f32 0.01, %v5194_v62  ;;  %v5213_v28 = vmul.f32 0.6931472, %v3420_v40  ;;  %v649_v4 = vpop.xlane.xlu1 %648 }
 0x1bc   :  { %6428 = vst [vmem:[#allocation45_spill] sm:$0xff] %v5209_v63  ;;  %v6430_v11 = vld [vmem:[#allocation16_spill] sm:$0xff]  ;;  %v402_v29 = vsel %vm91_vm7, 1e+30, %v5147_v3  ;;  %v5219_v12 = vmax.f32 %v374_v41, 0.0  ;;  %v6432_v20 = vld [vmem:[#allocation46_spill] sm:$0xff]  ;;  %3433 = vpow2.f32 %v2687_v39  ;;  %vm1728_vm0 = vcmp.eq.s32.totalorder %v4420_v50, %v4437_v1 }
 0x1bd   :  { %v415_v33 = vmin.f32 %v5155_v61, %v414_v46  ;;  %6429 = vst [vmem:[#allocation81_spill] sm:$0xff] %v5213_v28  ;;  %v375_v23 = vsub.f32 %v343_v54, %v6432_v20  ;;  %v3426_v19 = vpop.eup %3425  ;;  %v5223_v24 = vmul.f32 0.6931472, %v3422_v6  ;;  %v2834_v26 = vadd.f32 1e-12, %v2802_v37  ;;  %v6434_v54 = vld [vmem:[#allocation19_spill] sm:$0xff] }
 0x1be   :  { %6431 = vst [vmem:[#allocation16_spill] sm:$0xff] %v5219_v12  ;;  %447 = vmin.xlane.f32.xlu0 %v402_v29  ;;  %v3428_v40 = vpop.eup %3427  ;;  %v1162_v48 = vmul.f32 2.5003695, %v3424_v55  ;;  %v844_v46 = vmul.f32 2.0, %v704_v34  ;;  %3435 = vlog2.f32 %v976_v47  ;;  %v978_v41 = vadd.f32 1.0, %v946_v18 }
 0x1bf   :  { %6433 = vst [vmem:[#allocation46_spill] sm:$0xff] %v5223_v24  ;;  %v416_v42 = vmin.f32 %v401_v57, %v415_v33  ;;  %v3430_v63 = vpop.eup %3429  ;;  %v403_v6 = vsel %vm92_vm8, 1e+30, %v5157_v2  ;;  %v845_v20 = vmul.f32 2.0, %v769_v31  ;;  %v948_v61 = vmul.f32 0.01, %v5219_v12 }
 0x1c0   :  { %v3432_v37 = vpop.eup %3431  ;;  %v5233_v25 = vmax.f32 %v375_v23, 0.0  ;;  %v344_v57 = vadd.f32 %v4843_v9, %v5176_v44  ;;  %v812_v39 = vadd.f32 %v4549_v35, %v649_v4  ;;  %3437 = vlog2.f32 %v2834_v26  ;;  %v707_v30 = vpop.f32.mrf.mxu2  ;;  %v6437_v26 = vld [vmem:[#allocation48_spill] sm:$0xff] }
 0x1c1   :  { %v2803_v34 = vsub.f32 1.0, %v3428_v40  ;;  %v417_v55 = vmin.f32 %v402_v29, %v416_v42  ;;  %v813_v33 = vadd.f32 %v4551_v38, %v649_v4  ;;  %v1482_v47 = vsub.f32 1.0, %v1162_v48 }
 0x1c2   :  { %6435 = vst [vmem:[#allocation19_spill] sm:$0xff] %v5233_v25  ;;  %v1019_v18 = vmul.f32 0.6931472, %v3426_v19  ;;  %v1023_v16 = vmul.f32 0.6931472, %v3430_v63  ;;  %v876_v2 = vsub.f32 %v812_v39, %v844_v46  ;;  %3439 = vlog2.f32 %v978_v41  ;;  %v3434_v24 = vpop.eup %3433  ;;  %v6438_v63 = vld [vmem:[#allocation20_spill] sm:$0xff]  ;;  %v772_v41 = vpop.f32.mrf.mxu3 }
 0x1c3   :  { %v5239_v31 = vmul.f32 0.6931472, %v3432_v37  ;;  %v5241_v3 = vmin.f32 %v403_v6, %v417_v55  ;;  %v877_v23 = vsub.f32 %v813_v33, %v845_v20  ;;  %v980_v28 = vadd.f32 1.0, %v948_v61 }
 0x1c4   :  { %v950_v44 = vmul.f32 0.01, %v5233_v25  ;;  %v376_v40 = vsub.f32 %v344_v57, %v6437_v26  ;;  %v908_v29 = vmax.f32 %v876_v2, 0.0  ;;  %v3436_v42 = vpop.eup %3435  ;;  %v1450_v4 = vmul.f32 %v5051_v56, %v1162_v48  ;;  %v6439_v26 = vld [vmem:[#allocation36_spill] sm:$0xff] }
 0x1c5   :  { %6436 = vst [vmem:[#allocation82_spill] sm:$0xff] %v5239_v31  ;;  %v2835_v19 = vadd.f32 1e-12, %v2803_v34  ;;  %v5250_v46 = vsel %vm93_vm9, 1e+30, %v5174_v5  ;;  %v909_v20 = vmax.f32 %v877_v23, 0.0  ;;  %v1642_v61 = vmul.f32 %v1591_v7, %v1482_v47 }
 0x1c6   :  { %449 = vmin.xlane.f32.xlu0 %v403_v6  ;;  %v1068_v37 = vmul.f32 -50.5, %v1019_v18  ;;  %v1070_v39 = vmul.f32 -50.5, %v1023_v16  ;;  %v1196_v55 = vmul.f32 100.0, %v908_v29  ;;  %v3438_v33 = vpop.eup %3437  ;;  %v2804_v57 = vsub.f32 1.0, %v3434_v24  ;;  %v6441_v6 = vld [vmem:[#allocation55_spill] sm:$0xff] }
 0x1c7   :  { %v1197_v2 = vmul.f32 100.0, %v909_v20  ;;  %v1438_v56 = vmul.f32 %v6439_v26, %v5167_v14  ;;  %v6440_v48 = vsub.f32 1.0, %v5167_v14  ;;  %vm1730_vm1 = vcmp.eq.s32.totalorder %v4420_v50, %v4450_v8 }
 0x1c8   :  { %3441 = vlog2.f32 %v980_v28  ;;  %v982_v5 = vadd.f32 1.0, %v950_v44  ;;  %v5259_v23 = vmax.f32 %v376_v40, 0.0  ;;  %v1228_v7 = vadd.f32 1.0, %v1196_v55  ;;  %v3440_v16 = vpop.eup %3439  ;;  %v710_v26 = vpop.f32.mrf.mxu2 }
 0x1c9   :  { %v1630_v34 = vmul.f32 %v6441_v6, %v6440_v48  ;;  %3443 = vlog2.f32 %v2835_v19  ;;  %v1027_v47 = vmul.f32 0.6931472, %v3436_v42  ;;  %v1229_v24 = vadd.f32 1.0, %v1197_v2 }
 0x1ca   :  { %6442 = vst [vmem:[#allocation48_spill] sm:$0xff] %v5259_v23  ;;  %v5261_v29 = vadd.f32 %v1642_v61, %v1450_v4  ;;  %3445 = vlog2.f32 %v1228_v7  ;;  %vm1726_vm2 = vcmp.eq.s32.totalorder %v4420_v50, %v4418_v45  ;;  %v6444_v14 = vsub.f32 0.0, %v5042_v58  ;;  %v775_v7 = vpop.f32.mrf.mxu3 }
 0x1cb   :  { %v1662_v18 = vadd.f32 %v1630_v34, %v1438_v56  ;;  %v5270_v44 = vmul.f32 0.6931472, %v3438_v33  ;;  %v2836_v40 = vadd.f32 1e-12, %v2804_v57  ;;  %3447 = vlog2.f32 %v1229_v24  ;;  %v307_v33 = vpop.xlane.xlu2 %306  ;;  %v6448_v24 = vld [vmem:[#allocation52_spill] sm:$0xff] }
 0x1cc   :  { %6443 = vst [vmem:[#allocation20_spill] sm:$0xff] %v5261_v29  ;;  %v1760_v28 = vsel %vm1728_vm0, 0.0, %v6444_v14  ;;  %v1031_v42 = vmul.f32 0.6931472, %v3440_v16  ;;  %3449 = vlog2.f32 %v982_v5  ;;  %v418_v4 = vmin.f32 %v5250_v46, %v5241_v3 }
 0x1cd   :  { %6445 = vst [vmem:[#allocation36_spill] sm:$0xff] %v5270_v44  ;;  %v1694_v19 = vsub.f32 0.0, %v1662_v18  ;;  %v5278_v58 = vsel %vm97_vm13, 1e+30, %v5259_v23  ;;  %v1072_v61 = vmul.f32 -50.5, %v1027_v47  ;;  %v5281_v1 = vmul.f32 2.0, %v707_v30 }
 0x1ce   :  { %1792 = vst [vmem:[#allocation9 + $0x10] sm:$0xff] %v1760_v28  ;;  %451 = vmin.xlane.f32.xlu0 %v5250_v46  ;;  %v1114_v55 = vmul.f32 1.442695, %v1068_v37  ;;  %459 = vmin.xlane.f32.xlu1 %v5278_v58  ;;  %v3442_v3 = vpop.eup %3441  ;;  %v5288_v2 = vmul.f32 2.0, %v772_v41  ;;  %v345_v56 = vadd.f32 %v4843_v9, %v307_v33  ;;  %v1118_v48 = vmul.f32 1.442695, %v1070_v39 }
 0x1cf   :  { %v1758_v5 = vsel %vm1726_vm2, 0.0, %v1694_v19  ;;  %v3444_v30 = vpop.eup %3443  ;;  %3451 = vlog2.f32 %v2836_v40  ;;  %v952_v46 = vmul.f32 0.01, %v5259_v23  ;;  %v6447_v37 = vld [vmem:[#allocation21_spill] sm:$0xff]  ;;  %v405_v6 = vsel %vm94_vm10, 1e+30, %v5194_v62  ;;  %v309_v23 = vpop.xlane.xlu0 %308 }
 0x1d0   :  { %1790 = vst [vmem:[#allocation9] sm:$0xff] %v1758_v5  ;;  %v5296_v34 = vmul.f32 2.0, %v710_v26  ;;  %v3446_v16 = vpop.eup %3445  ;;  %v1074_v41 = vmul.f32 -50.5, %v1031_v42  ;;  %v5298_v47 = vmul.f32 2.0, %v775_v7  ;;  %v377_v18 = vsub.f32 %v345_v56, %v6448_v24  ;;  %v6449_v39 = vld [vmem:[#allocation22_spill] sm:$0xff] }
 0x1d1   :  { %v5305_v14 = vsel %vm95_vm11, 1e+30, %v5219_v12  ;;  %v3448_v28 = vpop.eup %3447  ;;  %v1035_v40 = vmul.f32 0.6931472, %v3442_v3  ;;  %3453 = vpow2.f32 %v1114_v55  ;;  %v1275_v19 = vmul.f32 0.6931472, %v3446_v16  ;;  %v651_v12 = vpop.xlane.xlu1 %650 }
 0x1d2   :  { %v1122_v33 = vmul.f32 1.442695, %v1072_v61  ;;  %v3450_v5 = vpop.eup %3449  ;;  %v5307_v26 = vmul.f32 0.6931472, %v3444_v30  ;;  %v1277_v57 = vmul.f32 0.6931472, %v3448_v28  ;;  %3455 = vpow2.f32 %v1118_v48 }
 0x1d3   :  { %v5309_v42 = vmax.f32 %v377_v18, 0.0  ;;  %v984_v7 = vadd.f32 1.0, %v952_v46  ;;  %v1324_v56 = vmul.f32 -0.505, %v1275_v19  ;;  %v5315_v20 = vsel %vm96_vm12, 1e+30, %v5233_v25 }
 0x1d4   :  { %6450 = vst [vmem:[#allocation55_spill] sm:$0xff] %v5307_v26  ;;  %v6453_v3 = vsub.f32 0.0, %v5062_v22  ;;  %v421_v55 = vmin.f32 %v405_v6, %v418_v4  ;;  %v1325_v30 = vmul.f32 -0.505, %v1277_v57  ;;  %v1126_v46 = vmul.f32 1.442695, %v1074_v41  ;;  %v2059_v22 = vpop.f32.mrf.mxu1 }
 0x1d5   :  { %6451 = vst [vmem:[#allocation21_spill] sm:$0xff] %v5309_v42  ;;  %v5326_v48 = vsel %vm98_vm14, 1e+30, %v5309_v42  ;;  %v3452_v18 = vpop.eup %3451  ;;  %v5328_v28 = vmul.f32 -50.5, %v1035_v40  ;;  %v1039_v19 = vmul.f32 0.6931472, %v3450_v5  ;;  %3457 = vpow2.f32 %v1122_v33  ;;  %v1994_v40 = vpop.f32.mrf.mxu0 }
 0x1d6   :  { %v1762_v61 = vsel %vm1730_vm1, 0.0, %v6453_v3  ;;  %453 = vmin.xlane.f32.xlu0 %v405_v6  ;;  %v5330_v25 = vadd.f32 -1.1647458, %v1324_v56  ;;  %461 = vmin.xlane.f32.xlu2 %v5326_v48  ;;  %v5333_v8 = vadd.f32 -1.1647458, %v1325_v30  ;;  %v2134_v57 = vmul.f32 2.0, %v2059_v22  ;;  %v1940_v3 = vpop.xlane.xlu2 %1939 }
 0x1d7   :  { %1794 = vst [vmem:[#allocation9 + $0x20] sm:$0xff] %v1762_v61  ;;  %v954_v4 = vmul.f32 0.01, %v5309_v42  ;;  %v814_v41 = vadd.f32 %v4549_v35, %v651_v12  ;;  %v3454_v16 = vpop.eup %3453  ;;  %3459 = vlog2.f32 %v984_v7  ;;  %v815_v5 = vadd.f32 %v4551_v38, %v651_v12 }
 0x1d8   :  { %6455 = vst [vmem:[#allocation52_spill] sm:$0xff] %v5333_v8  ;;  %v1402_v6 = vmul.f32 1.442695, %v5330_v25  ;;  %v2101_v56 = vadd.f32 %v1940_v3, %v4549_v35  ;;  %v3456_v33 = vpop.eup %3455  ;;  %v5340_v61 = vmul.f32 0.6931472, %v3452_v18  ;;  %v2102_v42 = vadd.f32 %v1940_v3, %v4551_v38 }
 0x1d9   :  { %v1404_v30 = vmul.f32 1.442695, %v5333_v8  ;;  %v878_v22 = vsub.f32 %v814_v41, %v5281_v1  ;;  %v879_v62 = vsub.f32 %v815_v5, %v5288_v2  ;;  %v2133_v7 = vmul.f32 2.0, %v1994_v40 }
 0x1da   :  { %6456 = vst [vmem:[#allocation22_spill] sm:$0xff] %v5340_v61  ;;  %3461 = vpow2.f32 %v1402_v6  ;;  %v346_v26 = vadd.f32 %v4843_v9, %v309_v23  ;;  %v5347_v44 = vmul.f32 2.5003695, %v3454_v16  ;;  %v986_v12 = vadd.f32 1.0, %v954_v4  ;;  %v6457_v16 = vld [vmem:[#allocation58_spill] sm:$0xff] }
 0x1db   :  { %v910_v31 = vmax.f32 %v878_v22, 0.0  ;;  %v2166_v10 = vsub.f32 %v2102_v42, %v2134_v57  ;;  %v3458_v49 = vpop.eup %3457  ;;  %v419_v18 = vmin.f32 %v5278_v58, %v421_v55  ;;  %v911_v61 = vmax.f32 %v879_v62, 0.0 }
 0x1dc   :  { %v5350_v8 = vmul.f32 2.5003695, %v3456_v33  ;;  %v2165_v1 = vsub.f32 %v2101_v56, %v2133_v7  ;;  %v5352_v41 = vmul.f32 -50.5, %v1039_v19  ;;  %3463 = vpow2.f32 %v1126_v46  ;;  %v653_v46 = vpop.xlane.xlu1 %652  ;;  %v2062_v56 = vpop.f32.mrf.mxu1 }
 0x1dd   :  { %v1198_v3 = vmul.f32 100.0, %v910_v31  ;;  %v2198_v6 = vmax.f32 %v2166_v10, 0.0  ;;  %v3460_v2 = vpop.eup %3459  ;;  %3465 = vpow2.f32 %v1404_v30  ;;  %v1199_v9 = vmul.f32 100.0, %v911_v61  ;;  %v1997_v7 = vpop.f32.mrf.mxu0 }
 0x1de   :  { %455 = vmin.xlane.f32.xlu0 %v5305_v14  ;;  %v2197_v23 = vmax.f32 %v2165_v1, 0.0  ;;  %v378_v42 = vsub.f32 %v346_v26, %v6457_v16  ;;  %3467 = vlog2.f32 %v986_v12  ;;  %v423_v19 = vmin.f32 %v419_v18, %v5305_v14  ;;  %v1942_v26 = vpop.xlane.xlu2 %1941 }
 0x1df   :  { %v1230_v62 = vadd.f32 1.0, %v1198_v3  ;;  %v2486_v58 = vmul.f32 100.0, %v2198_v6  ;;  %v1231_v57 = vadd.f32 1.0, %v1199_v9  ;;  %v5359_v33 = vmul.f32 2.5003695, %v3458_v49 }
 0x1e0   :  { %v3462_v55 = vpop.eup %3461  ;;  %v2485_v31 = vmul.f32 100.0, %v2197_v23  ;;  %v5361_v30 = vmax.f32 %v378_v42, 0.0  ;;  %v422_v22 = vmin.f32 %v5326_v48, %v423_v19  ;;  %v1043_v12 = vmul.f32 0.6931472, %v3460_v2 }
 0x1e1   :  { %v1516_v40 = vsub.f32 1.0, %v3462_v55  ;;  %3469 = vlog2.f32 %v1230_v62  ;;  %v2518_v5 = vadd.f32 1.0, %v2486_v58  ;;  %v816_v1 = vadd.f32 %v4549_v35, %v653_v46  ;;  %v713_v62 = vpop.f32.mrf.mxu2 }
 0x1e2   :  { %3471 = vlog2.f32 %v1231_v57  ;;  %v2517_v61 = vadd.f32 1.0, %v2485_v31  ;;  %6458 = vst [vmem:[#allocation58_spill] sm:$0xff] %v5361_v30  ;;  %v3464_v14 = vpop.eup %3463  ;;  %v2136_v6 = vmul.f32 2.0, %v2062_v56  ;;  %v817_v49 = vadd.f32 %v4551_v38, %v653_v46 }
 0x1e3   :  { %v1548_v18 = vadd.f32 1e-12, %v1516_v40  ;;  %3473 = vlog2.f32 %v2518_v5  ;;  %v3466_v3 = vpop.eup %3465  ;;  %v2103_v9 = vadd.f32 %v1942_v26, %v4549_v35  ;;  %v880_v16 = vsub.f32 %v816_v1, %v5296_v34 }
 0x1e4   :  { %3475 = vlog2.f32 %v2517_v61  ;;  %v3468_v23 = vpop.eup %3467  ;;  %v2104_v48 = vadd.f32 %v1942_v26, %v4551_v38  ;;  %v2135_v42 = vmul.f32 2.0, %v1997_v7  ;;  %v424_v2 = vmin.f32 %v5315_v20, %v422_v22  ;;  %v778_v7 = vpop.f32.mrf.mxu3 }
 0x1e5   :  { %3477 = vlog2.f32 %v1548_v18  ;;  %v881_v58 = vsub.f32 %v817_v49, %v5298_v47  ;;  %v410_v57 = vsel %vm99_vm15, 1e+30, %v5361_v30  ;;  %v5377_v46 = vmul.f32 -50.5, %v1043_v12  ;;  %v2065_v24 = vpop.f32.mrf.mxu1 }
 0x1e6   :  { %457 = vmin.xlane.f32.xlu0 %v5315_v20  ;;  %v1517_v34 = vsub.f32 1.0, %v3466_v3  ;;  %v5379_v40 = vmul.f32 2.0, %v713_v62  ;;  %v5381_v5 = vmul.f32 2.5003695, %v3464_v14  ;;  %v5383_v26 = vmul.f32 0.6931472, %v3468_v23 }
 0x1e7   :  { %v3470_v31 = vpop.eup %3469  ;;  %v912_v47 = vmax.f32 %v880_v16, 0.0  ;;  %v425_v61 = vmin.f32 %v410_v57, %v424_v2  ;;  %v913_v1 = vmax.f32 %v881_v58, 0.0  ;;  %v2168_v49 = vsub.f32 %v2104_v48, %v2136_v6 }
 0x1e8   :  { %v3472_v56 = vpop.eup %3471  ;;  %v1279_v20 = vmul.f32 0.6931472, %v3470_v31  ;;  %v2167_v55 = vsub.f32 %v2103_v9, %v2135_v42  ;;  %v851_v12 = vmul.f32 2.0, %v778_v7  ;;  %vm1740_vm3 = vcmp.eq.s32.totalorder %v4420_v50, %v6430_v11  ;;  %v655_v9 = vpop.xlane.xlu1 %654 }
 0x1e9   :  { %v3474_v22 = vpop.eup %3473  ;;  %v1281_v18 = vmul.f32 0.6931472, %v3472_v56  ;;  %v426_v62 = vrot.slane %v425_v61, 4  ;;  %v1549_v14 = vadd.f32 1e-12, %v1517_v34  ;;  %v1452_v2 = vmul.f32 %v5330_v25, %v5347_v44 }
 0x1ea   :  { %v3476_v10 = vpop.eup %3475  ;;  %v1326_v4 = vmul.f32 -0.505, %v1279_v20  ;;  %v2564_v3 = vmul.f32 0.6931472, %v3474_v22  ;;  %v956_v16 = vmul.f32 0.01, %v5361_v30  ;;  %vm1732_vm4 = vcmp.eq.s32.totalorder %v4420_v50, %v4463_v36 }
 0x1eb   :  { %v3478_v19 = vpop.eup %3477  ;;  %v1327_v23 = vmul.f32 -0.505, %v1281_v18  ;;  %v1200_v6 = vmul.f32 100.0, %v912_v47  ;;  %v2562_v48 = vmul.f32 0.6931472, %v3476_v10  ;;  %v1201_v42 = vmul.f32 100.0, %v913_v1 }
 0x1ec   :  { %v1595_v31 = vmul.f32 0.6931472, %v3478_v19  ;;  %v5390_v58 = vadd.f32 -1.1647458, %v1326_v4  ;;  %v2200_v56 = vmax.f32 %v2168_v49, 0.0  ;;  %v2199_v20 = vmax.f32 %v2167_v55, 0.0 }
 0x1ed   :  { %v6460_v22 = vsub.f32 1.0, %v5347_v44  ;;  %v2614_v18 = vmul.f32 -0.505, %v2564_v3  ;;  %v427_v30 = vmin.f32 %v425_v61, %v426_v62  ;;  %3479 = vlog2.f32 %v1549_v14  ;;  %v1944_v62 = vpop.xlane.xlu2 %1943 }
 0x1ee   :  { %v1406_v34 = vmul.f32 1.442695, %v5390_v58  ;;  %463 = vmin.xlane.f32.xlu0 %v410_v57  ;;  %v5395_v25 = vadd.f32 -1.1647458, %v1327_v23  ;;  %v818_v4 = vadd.f32 %v4549_v35, %v655_v9  ;;  %v819_v19 = vadd.f32 %v4551_v38, %v655_v9 }
 0x1ef   :  { %v1644_v7 = vmul.f32 %v1595_v31, %v6460_v22  ;;  %v988_v47 = vadd.f32 1.0, %v956_v16  ;;  %v1232_v55 = vadd.f32 1.0, %v1200_v6  ;;  %v2613_v1 = vmul.f32 -0.505, %v2562_v48 }
 0x1f0   :  { %3481 = vpow2.f32 %v1406_v34  ;;  %v1233_v44 = vadd.f32 1.0, %v1201_v42  ;;  %v2488_v49 = vmul.f32 100.0, %v2200_v56  ;;  %v2138_v31 = vmul.f32 2.0, %v2065_v24 }
 0x1f1   :  { %v1676_v10 = vadd.f32 %v1644_v7, %v1452_v2  ;;  %v5399_v3 = vadd.f32 -1.1647458, %v2614_v18  ;;  %v2487_v57 = vmul.f32 100.0, %v2199_v20  ;;  %v428_v61 = vrot.slane %v427_v30, 2  ;;  %v2000_v2 = vpop.f32.mrf.mxu0 }
 0x1f2   :  { %v1408_v14 = vmul.f32 1.442695, %v5395_v25  ;;  %v2520_v23 = vadd.f32 1.0, %v2488_v49  ;;  %v882_v29 = vsub.f32 %v818_v4, %v5379_v40  ;;  %v883_v9 = vsub.f32 %v819_v19, %v851_v12 }
 0x1f3   :  { %v1708_v22 = vsub.f32 0.0, %v1676_v10  ;;  %3483 = vlog2.f32 %v1232_v55  ;;  %v2519_v6 = vadd.f32 1.0, %v2487_v57  ;;  %v429_v24 = vmin.f32 %v427_v30, %v428_v61  ;;  %v3480_v48 = vpop.eup %3479  ;;  %v716_v55 = vpop.f32.mrf.mxu2 }
 0x1f4   :  { %3485 = vlog2.f32 %v1233_v44  ;;  %v914_v42 = vmax.f32 %v882_v29, 0.0  ;;  %v915_v56 = vmax.f32 %v883_v9, 0.0  ;;  %v2105_v20 = vadd.f32 %v1944_v62, %v4549_v35 }
 0x1f5   :  { %v1772_v16 = vsel %vm1740_vm3, 0.0, %v1708_v22  ;;  %v5407_v34 = vadd.f32 -1.1647458, %v2613_v1  ;;  %3487 = vlog2.f32 %v2520_v23  ;;  %v2106_v40 = vadd.f32 %v1944_v62, %v4551_v38 }
 0x1f6   :  { %1804 = vst [vmem:[#allocation9 + $0x70] sm:$0xff] %v1772_v16  ;;  %v3482_v7 = vpop.eup %3481  ;;  %v2137_v12 = vmul.f32 2.0, %v2000_v2  ;;  %v5411_v11 = vmul.f32 -50.5, %v5383_v26  ;;  %3489 = vlog2.f32 %v2519_v6  ;;  %v2691_v4 = vmul.f32 1.442695, %v5399_v3 }
 0x1f7   :  { %v1518_v18 = vsub.f32 1.0, %v3482_v7  ;;  %3491 = vlog2.f32 %v988_v47  ;;  %v1202_v29 = vmul.f32 100.0, %v914_v42  ;;  %v1203_v19 = vmul.f32 100.0, %v915_v56 }
 0x1f8   :  { %v430_v1 = vrot.slane %v429_v24, 1  ;;  %v2170_v44 = vsub.f32 %v2106_v40, %v2138_v31  ;;  %v2169_v49 = vsub.f32 %v2105_v20, %v2137_v12  ;;  %3493 = vpow2.f32 %v1408_v14 }
 0x1f9   :  { %v1550_v10 = vadd.f32 1e-12, %v1518_v18  ;;  %v3484_v22 = vpop.eup %3483  ;;  %v2689_v57 = vmul.f32 1.442695, %v5407_v34  ;;  %v5416_v26 = vmul.f32 2.0, %v716_v55  ;;  %v1234_v9 = vadd.f32 1.0, %v1202_v29 }
 0x1fa   :  { %v5419_v61 = vmul.f32 1.442695, %v5328_v28  ;;  %v3486_v62 = vpop.eup %3485  ;;  %v5423_v47 = vmul.f32 0.6931472, %v3480_v48  ;;  %v1283_v23 = vmul.f32 0.6931472, %v3484_v22  ;;  %v431_v20 = vmin.f32 %v429_v24, %v430_v1 }
 0x1fb   :  { %3495 = vlog2.f32 %v1550_v10  ;;  %v3488_v31 = vpop.eup %3487  ;;  %v1285_v2 = vmul.f32 0.6931472, %v3486_v62  ;;  %v1235_v14 = vadd.f32 1.0, %v1203_v19  ;;  %v2202_v16 = vmax.f32 %v2170_v44, 0.0 }
 0x1fc   :  { %3497 = vpow2.f32 %v2691_v4  ;;  %v3490_v6 = vpop.eup %3489  ;;  %v1328_v42 = vmul.f32 -0.505, %v1283_v23  ;;  %v2568_v56 = vmul.f32 0.6931472, %v3488_v31  ;;  %v2201_v28 = vmax.f32 %v2169_v49, 0.0  ;;  %v434_v31 = vpop.xlane.xlu0 %433 }
 0x1fd   :  { %v3492_v7 = vpop.eup %3491  ;;  %3499 = vpow2.f32 %v2689_v57  ;;  %v1329_v40 = vmul.f32 -0.505, %v1285_v2  ;;  %v2566_v12 = vmul.f32 0.6931472, %v3490_v6  ;;  %v2490_v18 = vmul.f32 100.0, %v2202_v16 }
 0x1fe   :  { %v5425_v48 = vadd.f32 -1.1647458, %v1328_v42  ;;  %v2616_v10 = vmul.f32 -0.505, %v2568_v56  ;;  %3501 = vlog2.f32 %v1234_v9  ;;  %v2489_v29 = vmul.f32 100.0, %v2201_v28  ;;  %v3494_v55 = vpop.eup %3493 }
 0x1ff   :  { %v5427_v4 = vadd.f32 -1.1647458, %v1329_v40  ;;  %v2615_v19 = vmul.f32 -0.505, %v2566_v12  ;;  %3503 = vlog2.f32 %v1235_v14  ;;  %v2522_v44 = vadd.f32 1.0, %v2490_v18  ;;  %v781_v40 = vpop.f32.mrf.mxu3 }
 0x200   :  { %vm1742_vm5 = vcmp.eq.s32.totalorder %v4420_v50, %v6434_v54  ;;  %v1410_v24 = vmul.f32 1.442695, %v5425_v48  ;;  %v5432_v1 = vadd.f32 -1.1647458, %v2616_v10  ;;  %v5434_v49 = vmul.f32 1e-05, %v431_v20 }
 0x201   :  { %v3496_v22 = vpop.eup %3495  ;;  %v1412_v23 = vmul.f32 1.442695, %v5427_v4  ;;  %v5437_v9 = vadd.f32 -1.1647458, %v2615_v19  ;;  %3505 = vlog2.f32 %v2522_v44  ;;  %v1454_v2 = vmul.f32 %v5390_v58, %v5350_v8 }
 0x202   :  { %6461 = vst [vmem:[#allocation83_spill] sm:$0xff] %v5432_v1  ;;  %v3498_v57 = vpop.eup %3497  ;;  %v1599_v62 = vmul.f32 0.6931472, %v3496_v22  ;;  %3507 = vpow2.f32 %v1410_v24  ;;  %v2695_v14 = vmul.f32 1.442695, %v5432_v1  ;;  %v2521_v16 = vadd.f32 1.0, %v2489_v29 }
 0x203   :  { %v3500_v6 = vpop.eup %3499  ;;  %v1519_v42 = vsub.f32 1.0, %v3494_v55  ;;  %v6462_v56 = vsub.f32 1.0, %v5350_v8  ;;  %v5444_v28 = vmul.f32 0.6931472, %v3492_v7  ;;  %3509 = vpow2.f32 %v1412_v23 }
 0x204   :  { %v3502_v12 = vpop.eup %3501  ;;  %v2806_v18 = vsub.f32 1.0, %v3498_v57  ;;  %v2693_v10 = vmul.f32 1.442695, %v5437_v9  ;;  %v465_v19 = vmul.f32 1e-05, %v434_v31  ;;  %v481_v58 = vadd.f32 %v5434_v49, %v4953_v0 }
 0x205   :  { %v1646_v20 = vmul.f32 %v1599_v62, %v6462_v56  ;;  %6463 = vst [vmem:[#allocation84_spill] sm:$0xff] %v5444_v28  ;;  %v3504_v44 = vpop.eup %3503  ;;  %3511 = vpow2.f32 %v2695_v14  ;;  %v1287_v29 = vmul.f32 0.6931472, %v3502_v12  ;;  %v6464_v55 = vsub.f32 0.0, %v5145_v52 }
 0x206   :  { %v5454_v7 = vmul.f32 2.0, %v781_v40  ;;  %v1289_v24 = vmul.f32 0.6931472, %v3504_v44  ;;  %3513 = vlog2.f32 %v2521_v16  ;;  %v927_v57 = vmul.f32 0.01, %v481_v58 }
 0x207   :  { %v1678_v22 = vadd.f32 %v1646_v20, %v1454_v2  ;;  %v1764_v8 = vsel %vm1732_vm4, 0.0, %v6464_v55  ;;  %v3506_v62 = vpop.eup %3505  ;;  %v1551_v23 = vadd.f32 1e-12, %v1519_v42  ;;  %v2805_v56 = vsub.f32 1.0, %v3500_v6  ;;  %v657_v55 = vpop.xlane.xlu1 %656 }
 0x208   :  { %1796 = vst [vmem:[#allocation9 + $0x30] sm:$0xff] %v1764_v8  ;;  %v1330_v30 = vmul.f32 -0.505, %v1287_v29  ;;  %v3508_v2 = vpop.eup %3507  ;;  %3515 = vpow2.f32 %v2693_v10  ;;  %v1331_v14 = vmul.f32 -0.505, %v1289_v24  ;;  %v959_v20 = vadd.f32 1.0, %v927_v57  ;;  %v719_v24 = vpop.f32.mrf.mxu2 }
 0x209   :  { %v1710_v31 = vsub.f32 0.0, %v1678_v22  ;;  %v1879_v52 = vadd.f32 %v465_v19, %v4953_v0  ;;  %v3510_v12 = vpop.eup %3509  ;;  %v2838_v40 = vadd.f32 1e-12, %v2806_v18  ;;  %v1520_v16 = vsub.f32 1.0, %v3508_v2 }
 0x20a   :  { %v5460_v44 = vadd.f32 -1.1647458, %v1330_v30  ;;  %v1521_v42 = vsub.f32 1.0, %v3510_v12  ;;  %v2572_v6 = vmul.f32 0.6931472, %v3506_v62  ;;  %3517 = vlog2.f32 %v959_v20  ;;  %v784_v62 = vpop.f32.mrf.mxu3 }
 0x20b   :  { %v1774_v36 = vsel %vm1742_vm5, 0.0, %v1710_v31  ;;  %v1880_v22 = vadd.f32 %v481_v58, %v465_v19  ;;  %v3512_v10 = vpop.eup %3511  ;;  %vm1734_vm6 = vcmp.eq.s32.totalorder %v4420_v50, %v4476_v60  ;;  %v2837_v0 = vadd.f32 1e-12, %v2805_v56 }
 0x20c   :  { %1806 = vst [vmem:[#allocation9 + $0x80] sm:$0xff] %v1774_v36  ;;  %v1552_v29 = vadd.f32 1e-12, %v1520_v16  ;;  %v5464_v8 = vadd.f32 -1.1647458, %v1331_v14  ;;  %v3514_v54 = vpop.eup %3513  ;;  %3519 = vlog2.f32 %v1551_v23  ;;  %v820_v57 = vadd.f32 %v4549_v35, %v657_v55 }
 0x20d   :  { %v1553_v18 = vadd.f32 1e-12, %v1521_v42  ;;  %v2217_v30 = vmul.f32 0.01, %v1879_v52  ;;  %v5467_v31 = vmul.f32 2.0, %v719_v24  ;;  %v5470_v56 = vmul.f32 2.0, %v784_v62 }
 0x20e   :  { %6465 = vst [vmem:[#allocation85_spill] sm:$0xff] %v5464_v8  ;;  %3521 = vlog2.f32 %v1552_v29  ;;  %v1414_v19 = vmul.f32 1.442695, %v5460_v44  ;;  %v2570_v58 = vmul.f32 0.6931472, %v3514_v54  ;;  %v3516_v2 = vpop.eup %3515  ;;  %v2808_v23 = vsub.f32 1.0, %v3512_v10 }
 0x20f   :  { %3523 = vlog2.f32 %v2838_v40  ;;  %v2618_v14 = vmul.f32 -0.505, %v2572_v6  ;;  %v2218_v20 = vmul.f32 0.01, %v1880_v22  ;;  %v1416_v12 = vmul.f32 1.442695, %v5464_v8 }
 0x210   :  { %3525 = vlog2.f32 %v2837_v0  ;;  %v2617_v52 = vmul.f32 -0.505, %v2570_v58  ;;  %v3518_v36 = vpop.eup %3517  ;;  %v2249_v16 = vadd.f32 1.0, %v2217_v30  ;;  %v821_v42 = vadd.f32 %v4551_v38, %v657_v55 }
 0x211   :  { %3527 = vlog2.f32 %v1553_v18  ;;  %v884_v29 = vsub.f32 %v820_v57, %v5416_v26  ;;  %vm1744_vm7 = vcmp.eq.s32.totalorder %v4420_v50, %v6438_v63  ;;  %v2807_v40 = vsub.f32 1.0, %v3516_v2  ;;  %v2068_v2 = vpop.f32.mrf.mxu1 }
 0x212   :  { %3529 = vpow2.f32 %v1414_v19  ;;  %v5477_v54 = vadd.f32 -1.1647458, %v2617_v52  ;;  %v993_v6 = vmul.f32 0.6931472, %v3518_v36  ;;  %v3520_v22 = vpop.eup %3519  ;;  %v2250_v10 = vadd.f32 1.0, %v2218_v20 }
 0x213   :  { %v885_v0 = vsub.f32 %v821_v42, %v5454_v7  ;;  %v916_v24 = vmax.f32 %v884_v29, 0.0  ;;  %v6467_v18 = vsub.f32 0.0, %v5196_v13  ;;  %v1456_v30 = vmul.f32 %v5425_v48, %v5359_v33 }
 0x214   :  { %6466 = vst [vmem:[#allocation86_spill] sm:$0xff] %v5477_v54  ;;  %v3522_v26 = vpop.eup %3521  ;;  %3531 = vpow2.f32 %v1416_v12  ;;  %v2697_v57 = vmul.f32 1.442695, %v5477_v54  ;;  %v1055_v62 = vmul.f32 -50.5, %v993_v6  ;;  %v2840_v7 = vadd.f32 1e-12, %v2808_v23 }
 0x215   :  { %v1766_v55 = vsel %vm1734_vm6, 0.0, %v6467_v18  ;;  %v5488_v19 = vpop.eup %3523  ;;  %v1603_v58 = vmul.f32 0.6931472, %v3522_v26  ;;  %3533 = vlog2.f32 %v2249_v16  ;;  %v917_v13 = vmax.f32 %v885_v0, 0.0  ;;  %v1946_v26 = vpop.xlane.xlu2 %1945 }
 0x216   :  { %1798 = vst [vmem:[#allocation9 + $0x40] sm:$0xff] %v1766_v55  ;;  %v3526_v20 = vpop.eup %3525  ;;  %v2839_v52 = vadd.f32 1e-12, %v2807_v40  ;;  %v5490_v60 = vadd.f32 -1.1647458, %v2618_v14  ;;  %3535 = vpow2.f32 %v2697_v57  ;;  %v6469_v12 = vsub.f32 1.0, %v5359_v33 }
 0x217   :  { %v1088_v36 = vmul.f32 1.442695, %v1055_v62  ;;  %v3528_v42 = vpop.eup %3527  ;;  %v5492_v48 = vmul.f32 0.6931472, %v3520_v22  ;;  %3537 = vlog2.f32 %v2250_v10  ;;  %v1204_v6 = vmul.f32 100.0, %v916_v24 }
 0x218   :  { %6468 = vst [vmem:[#allocation87_spill] sm:$0xff] %v5490_v60  ;;  %v1648_v29 = vmul.f32 %v1603_v58, %v6469_v12  ;;  %v3530_v18 = vpop.eup %3529  ;;  %v2140_v23 = vmul.f32 2.0, %v2068_v2  ;;  %v1205_v16 = vmul.f32 100.0, %v917_v13  ;;  %v5497_v0 = vmul.f32 1.442695, %v5352_v41 }
 0x219   :  { %3539 = vpow2.f32 %v1088_v36  ;;  %v1522_v14 = vsub.f32 1.0, %v3530_v18  ;;  %v1236_v55 = vadd.f32 1.0, %v1204_v6  ;;  %v2699_v22 = vmul.f32 1.442695, %v5490_v60 }
 0x21a   :  { %v1680_v40 = vadd.f32 %v1648_v29, %v1456_v30  ;;  %3541 = vlog2.f32 %v2840_v7  ;;  %v3532_v57 = vpop.eup %3531  ;;  %v1237_v33 = vadd.f32 1.0, %v1205_v16  ;;  %v2108_v10 = vadd.f32 %v1946_v26, %v4551_v38  ;;  %v722_v16 = vpop.f32.mrf.mxu2 }
 0x21b   :  { %3543 = vlog2.f32 %v2839_v52  ;;  %v3534_v24 = vpop.eup %3533  ;;  %v5501_v62 = vmul.f32 0.6931472, %v3526_v20  ;;  %v1554_v2 = vadd.f32 1e-12, %v1522_v14  ;;  %v5505_v30 = vmul.f32 %v5460_v44, %v5381_v5  ;;  %v2003_v52 = vpop.f32.mrf.mxu0 }
 0x21c   :  { %v1712_v58 = vsub.f32 0.0, %v1680_v40  ;;  %3545 = vlog2.f32 %v1236_v55  ;;  %v3536_v41 = vpop.eup %3535  ;;  %v2282_v7 = vmul.f32 0.6931472, %v3534_v24  ;;  %v2172_v13 = vsub.f32 %v2108_v10, %v2140_v23 }
 0x21d   :  { %3547 = vlog2.f32 %v1237_v33  ;;  %v3538_v36 = vpop.eup %3537  ;;  %v5511_v20 = vadd.s32 128, %v4418_v45  ;;  %v2107_v29 = vadd.f32 %v1946_v26, %v4549_v35  ;;  %v5516_v14 = vmul.f32 0.6931472, %v3528_v42 }
 0x21e   :  { %v1776_v12 = vsel %vm1744_vm7, 0.0, %v1712_v58  ;;  %3549 = vlog2.f32 %v1554_v2  ;;  %v2284_v44 = vmul.f32 0.6931472, %v3538_v36  ;;  %v2345_v18 = vmul.f32 -50.5, %v2282_v7  ;;  %v6470_v36 = vld [vmem:[#allocation37_spill] sm:$0xff] }
 0x21f   :  { %v3540_v6 = vpop.eup %3539  ;;  %1808 = vst [vmem:[#allocation9 + $0x90] sm:$0xff] %v1776_v12  ;;  %3551 = vpow2.f32 %v2699_v22  ;;  %v2204_v40 = vmax.f32 %v2172_v13, 0.0  ;;  %v5518_v63 = vmul.f32 2.0, %v722_v16  ;;  %v2139_v33 = vmul.f32 2.0, %v2003_v52  ;;  %v436_v16 = vpop.xlane.xlu0 %435 }
 0x220   :  { %v5514_v23 = vpop.eup %3541  ;;  %v1151_v55 = vmul.f32 2.5003695, %v3540_v6  ;;  %v1523_v45 = vsub.f32 1.0, %v3532_v57  ;;  %v2346_v24 = vmul.f32 -50.5, %v2284_v44  ;;  %v2377_v26 = vmul.f32 1.442695, %v2345_v18 }
 0x221   :  { %v5520_v10 = vpop.eup %3543  ;;  %v2492_v58 = vmul.f32 100.0, %v2204_v40  ;;  %vm1746_vm8 = vcmp.eq.s32.totalorder %v4420_v50, %v6447_v37  ;;  %v2809_v22 = vsub.f32 1.0, %v3536_v41  ;;  %3553 = vpow2.f32 %v5419_v61  ;;  %v6471_v44 = vld [vmem:[#allocation57_spill] sm:$0xff] }
 0x222   :  { %v3546_v2 = vpop.eup %3545  ;;  %v1471_v7 = vsub.f32 1.0, %v1151_v55  ;;  %v2171_v42 = vsub.f32 %v2107_v29, %v2139_v33  ;;  %v1439_v12 = vmul.f32 %v6470_v36, %v1151_v55  ;;  %3555 = vpow2.f32 %v2377_v26  ;;  %v787_v36 = vpop.f32.mrf.mxu3 }
 0x223   :  { %v3548_v13 = vpop.eup %3547  ;;  %v2379_v52 = vmul.f32 1.442695, %v2346_v24  ;;  %v1291_v6 = vmul.f32 0.6931472, %v3546_v2  ;;  %v2524_v28 = vadd.f32 1.0, %v2492_v58  ;;  %v6472_v33 = vsub.f32 1.0, %v5381_v5 }
 0x224   :  { %v3550_v57 = vpop.eup %3549  ;;  %v1631_v18 = vmul.f32 %v6471_v44, %v1471_v7  ;;  %v1293_v40 = vmul.f32 0.6931472, %v3548_v13  ;;  %v2203_v8 = vmax.f32 %v2171_v42, 0.0  ;;  %v1555_v54 = vadd.f32 1e-12, %v1523_v45  ;;  %v6474_v44 = vld [vmem:[#allocation24_spill] sm:$0xff] }
 0x225   :  { %v3552_v60 = vpop.eup %3551  ;;  %v1607_v41 = vmul.f32 0.6931472, %v3550_v57  ;;  %3557 = vpow2.f32 %v2379_v52  ;;  %v1332_v1 = vmul.f32 -0.505, %v1291_v6  ;;  %v466_v55 = vmul.f32 1e-05, %v436_v16 }
 0x226   :  { %v5527_v61 = vadd.f32 %v1631_v18, %v1439_v12  ;;  %v1333_v29 = vmul.f32 -0.505, %v1293_v40  ;;  %3559 = vlog2.f32 %v2524_v28  ;;  %v2491_v2 = vmul.f32 100.0, %v2203_v8 }
 0x227   :  { %v1650_v24 = vmul.f32 %v1607_v41, %v6472_v33  ;;  %v5531_v26 = vadd.f32 -1.1647458, %v1332_v1  ;;  %v482_v58 = vadd.f32 %v5434_v49, %v4856_v51  ;;  %v3554_v7 = vpop.eup %3553  ;;  %v2810_v42 = vsub.f32 1.0, %v3552_v60 }
 0x228   :  { %v2841_v45 = vadd.f32 1e-12, %v2809_v22  ;;  %v6318_v13 = vsub.f32 0.0, %v5527_v61  ;;  %v5536_v12 = vadd.f32 -1.1647458, %v1333_v29  ;;  %v3556_v52 = vpop.eup %3555  ;;  %3561 = vlog2.f32 %v1555_v54 }
 0x229   :  { %v1682_v28 = vadd.f32 %v1650_v24, %v5505_v30  ;;  %v5539_v5 = vmul.f32 2.0, %v787_v36  ;;  %v1418_v1 = vmul.f32 1.442695, %v5531_v26  ;;  %v2441_v8 = vmul.f32 2.5003695, %v3556_v52  ;;  %v6475_v36 = vld [vmem:[#allocation54_spill] sm:$0xff] }
 0x22a   :  { %6473 = vst [vmem:[#allocation37_spill] sm:$0xff] %v5536_v12  ;;  %v1420_v60 = vmul.f32 1.442695, %v5536_v12  ;;  %v2523_v22 = vadd.f32 1.0, %v2491_v2  ;;  %v1881_v6 = vadd.f32 %v466_v55, %v4856_v51  ;;  %vm3034_vm9 = vcmp.eq.s32.totalorder %v6474_v44, %v5511_v20  ;;  %v659_v2 = vpop.xlane.xlu1 %658 }
 0x22b   :  { %1791 = vst [vmem:[#allocation9 + $0x8] sm:$0xff] %v6318_v13  ;;  %v3558_v16 = vpop.eup %3557  ;;  %v1714_v57 = vsub.f32 0.0, %v1682_v28  ;;  %3563 = vpow2.f32 %v1418_v1  ;;  %v929_v54 = vmul.f32 0.01, %v482_v58  ;;  %v1882_v30 = vadd.f32 %v482_v58, %v466_v55  ;;  %v6476_v58 = vld [vmem:[#allocation56_spill] sm:$0xff] }
 0x22c   :  { %v3560_v18 = vpop.eup %3559  ;;  %v2842_v40 = vadd.f32 1e-12, %v2810_v42  ;;  %3565 = vlog2.f32 %v2841_v45  ;;  %v2442_v41 = vmul.f32 2.5003695, %v3558_v16  ;;  %v2761_v29 = vsub.f32 1.0, %v2441_v8 }
 0x22d   :  { %v1778_v33 = vsel %vm1746_vm8, 0.0, %v1714_v57  ;;  %v2576_v24 = vmul.f32 0.6931472, %v3560_v18  ;;  %3567 = vlog2.f32 %v2523_v22  ;;  %v961_v51 = vadd.f32 1.0, %v929_v54 }
 0x22e   :  { %1810 = vst [vmem:[#allocation9 + $0xa0] sm:$0xff] %v1778_v33  ;;  %v2729_v52 = vmul.f32 %v6475_v36, %v2441_v8  ;;  %v2762_v28 = vsub.f32 1.0, %v2442_v41  ;;  %v2921_v1 = vmul.f32 %v5000_v17, %v2761_v29  ;;  %3569 = vpow2.f32 %v1420_v60  ;;  %v3562_v55 = vpop.eup %3561 }
 0x22f   :  { %v2730_v42 = vmul.f32 %v6476_v58, %v2442_v41  ;;  %3571 = vlog2.f32 %v961_v51  ;;  %v2219_v45 = vmul.f32 0.01, %v1881_v6  ;;  %v2220_v16 = vmul.f32 0.01, %v1882_v30  ;;  %v2071_v6 = vpop.f32.mrf.mxu1 }
 0x230   :  { %v2922_v37 = vmul.f32 %v5029_v43, %v2762_v28  ;;  %v2953_v57 = vadd.f32 %v2921_v1, %v2729_v52  ;;  %v2620_v18 = vmul.f32 -0.505, %v2576_v24  ;;  %v822_v22 = vadd.f32 %v4549_v35, %v659_v2 }
 0x231   :  { %v3564_v54 = vpop.eup %3563  ;;  %v5556_v33 = vmul.f32 2.5003695, %v3554_v7  ;;  %v2251_v8 = vadd.f32 1.0, %v2219_v45  ;;  %v2252_v36 = vadd.f32 1.0, %v2220_v16  ;;  %v823_v17 = vadd.f32 %v4551_v38, %v659_v2  ;;  %v1948_v16 = vpop.xlane.xlu2 %1947 }
 0x232   :  { %v3566_v60 = vpop.eup %3565  ;;  %3573 = vlog2.f32 %v2842_v40  ;;  %v2954_v29 = vadd.f32 %v2922_v37, %v2730_v42  ;;  %v2985_v41 = vsub.f32 0.0, %v2953_v57  ;;  %v1524_v51 = vsub.f32 1.0, %v3564_v54  ;;  %v2006_v57 = vpop.f32.mrf.mxu0 }
 0x233   :  { %v3568_v30 = vpop.eup %3567  ;;  %v5560_v43 = vmul.f32 0.6931472, %v5520_v10  ;;  %3575 = vlog2.f32 %v2251_v8  ;;  %v886_v24 = vsub.f32 %v822_v22, %v5467_v31  ;;  %v5564_v7 = vmul.f32 1.442695, %v5377_v46 }
 0x234   :  { %v3570_v52 = vpop.eup %3569  ;;  %v2986_v28 = vsub.f32 0.0, %v2954_v29  ;;  %3097 = vst [vmem:[#allocation9 + $0x100] sm:$0xff] %v2985_v41  ;;  %v1556_v2 = vadd.f32 1e-12, %v1524_v51  ;;  %v5566_v1 = vadd.f32 -1.1647458, %v2620_v18  ;;  %3577 = vlog2.f32 %v2252_v36 }
 0x235   :  { %v3572_v40 = vpop.eup %3571  ;;  %v5568_v58 = vmul.f32 0.6931472, %v3562_v55  ;;  %v1492_v42 = vsub.f32 1.0, %v5556_v33  ;;  %v2142_v10 = vmul.f32 2.0, %v2071_v6  ;;  %v887_v45 = vsub.f32 %v823_v17, %v5470_v56 }
 0x236   :  { %6477 = vst [vmem:[#allocation57_spill] sm:$0xff] %v5566_v1  ;;  %v3066_v46 = vsel %vm3034_vm9, 0.0, %v2986_v28  ;;  %3579 = vlog2.f32 %v1556_v2  ;;  %v2574_v31 = vmul.f32 0.6931472, %v3568_v30  ;;  %v997_v37 = vmul.f32 0.6931472, %v3572_v40 }
 0x237   :  { %3098 = vst [vmem:[#allocation9 + $0x108] sm:$0xff] %v3066_v46  ;;  %v5575_v18 = vadd.f32 %v3066_v46, %v2985_v41  ;;  %v1525_v22 = vsub.f32 1.0, %v3570_v52  ;;  %v918_v55 = vmax.f32 %v886_v24, 0.0  ;;  %v919_v54 = vmax.f32 %v887_v45, 0.0 }
 0x238   :  { %v5577_v8 = vpop.eup %3573  ;;  %v5579_v36 = vmul.f32 0.6931472, %v3566_v60  ;;  %v2703_v56 = vmul.f32 1.442695, %v5566_v1  ;;  %v1057_v17 = vmul.f32 -50.5, %v997_v37  ;;  %v2109_v20 = vadd.f32 %v1948_v16, %v4549_v35 }
 0x239   :  { %v3576_v29 = vpop.eup %3575  ;;  %v1206_v51 = vmul.f32 100.0, %v918_v55  ;;  %v1207_v6 = vmul.f32 100.0, %v919_v54  ;;  %v2110_v30 = vadd.f32 %v1948_v16, %v4551_v38  ;;  %v2141_v28 = vmul.f32 2.0, %v2006_v57 }
 0x23a   :  { %v3578_v41 = vpop.eup %3577  ;;  %vm1748_vm10 = vcmp.eq.s32.totalorder %v4420_v50, %v6449_v39  ;;  %v2619_v24 = vmul.f32 -0.505, %v2574_v31  ;;  %v1092_v52 = vmul.f32 1.442695, %v1057_v17  ;;  %v2286_v2 = vmul.f32 0.6931472, %v3576_v29  ;;  %v438_v31 = vpop.xlane.xlu0 %437 }
 0x23b   :  { %3581 = vpow2.f32 %v5497_v0  ;;  %v1557_v60 = vadd.f32 1e-12, %v1525_v22  ;;  %v2288_v40 = vmul.f32 0.6931472, %v3578_v41  ;;  %v1238_v45 = vadd.f32 1.0, %v1206_v51 }
 0x23c   :  { %v1239_v46 = vadd.f32 1.0, %v1207_v6  ;;  %v3580_v37 = vpop.eup %3579  ;;  %3583 = vpow2.f32 %v2703_v56  ;;  %v2347_v55 = vmul.f32 -50.5, %v2286_v2  ;;  %v2174_v54 = vsub.f32 %v2110_v30, %v2142_v10 }
 0x23d   :  { %v483_v16 = vadd.f32 %v5434_v49, %v4860_v53  ;;  %v1611_v57 = vmul.f32 0.6931472, %v3580_v37  ;;  %3585 = vpow2.f32 %v1092_v52  ;;  %v2348_v13 = vmul.f32 -50.5, %v2288_v40  ;;  %v3895_v52 = vld [vmem:[#allocation9] sm:$0xff] }
 0x23e   :  { %v2173_v12 = vsub.f32 %v2109_v20, %v2141_v28  ;;  %v1460_v17 = vmul.f32 %v5531_v26, %v5556_v33  ;;  %v5591_v0 = vadd.f32 -1.1647458, %v2619_v24  ;;  %v2381_v22 = vmul.f32 1.442695, %v2347_v55 }
 0x23f   :  { %3587 = vlog2.f32 %v1238_v45  ;;  %v1652_v29 = vmul.f32 %v1611_v57, %v1492_v42  ;;  %v2383_v51 = vmul.f32 1.442695, %v2348_v13  ;;  %v2206_v56 = vmax.f32 %v2174_v54, 0.0 }
 0x240   :  { %6478 = vst [vmem:[#allocation24_spill] sm:$0xff] %v5591_v0  ;;  %3589 = vlog2.f32 %v1239_v46  ;;  %v2205_v6 = vmax.f32 %v2173_v12, 0.0  ;;  %v467_v30 = vmul.f32 1e-05, %v438_v31  ;;  %v931_v41 = vmul.f32 0.01, %v483_v16 }
 0x241   :  { %v5593_v10 = vpop.eup %3581  ;;  %3591 = vlog2.f32 %v1557_v60  ;;  %v6479_v20 = vsub.f32 0.0, %v5527_v61  ;;  %v1684_v2 = vadd.f32 %v1652_v29, %v1460_v17  ;;  %v2494_v26 = vmul.f32 100.0, %v2206_v56  ;;  %v3896_v17 = vld [vmem:[#allocation9 + $0x10] sm:$0xff]  ;;  %v725_v29 = vpop.f32.mrf.mxu2 }
 0x242   :  { %3593 = vpow2.f32 %v2381_v22  ;;  %v5597_v33 = vpop.eup %3583  ;;  %v2493_v42 = vmul.f32 100.0, %v2205_v6  ;;  %v963_v13 = vadd.f32 1.0, %v931_v41  ;;  %v1883_v24 = vadd.f32 %v467_v30, %v4860_v53 }
 0x243   :  { %v1822_v28 = vadd.f32 %v3895_v52, %v6479_v20  ;;  %3595 = vpow2.f32 %v2383_v51  ;;  %v3586_v40 = vpop.eup %3585  ;;  %v1716_v45 = vsub.f32 0.0, %v1684_v2  ;;  %v2701_v12 = vmul.f32 1.442695, %v5591_v0  ;;  %v6480_v2 = vld [vmem:[#allocation25_spill] sm:$0xff] }
 0x244   :  { %v2526_v60 = vadd.f32 1.0, %v2494_v26  ;;  %v1884_v46 = vadd.f32 %v483_v16, %v467_v30  ;;  %v1153_v55 = vmul.f32 2.5003695, %v3586_v40  ;;  %v2525_v61 = vadd.f32 1.0, %v2493_v42  ;;  %v6482_v42 = vld [vmem:[#allocation63_spill] sm:$0xff]  ;;  %v790_v40 = vpop.f32.mrf.mxu3 }
 0x245   :  { %v3588_v37 = vpop.eup %3587  ;;  %3597 = vlog2.f32 %v963_v13  ;;  %v2221_v54 = vmul.f32 0.01, %v1883_v24  ;;  %v1780_v31 = vsel %vm1748_vm10, 0.0, %v1716_v45  ;;  %v1823_v22 = vadd.f32 %v3896_v17, %v1822_v28  ;;  %v6481_v28 = vld [vmem:[#allocation49_spill] sm:$0xff] }
 0x246   :  { %v3590_v57 = vpop.eup %3589  ;;  %v1295_v53 = vmul.f32 0.6931472, %v3588_v37  ;;  %3599 = vlog2.f32 %v2526_v60  ;;  %1812 = vst [vmem:[#allocation9 + $0xb0] sm:$0xff] %v1780_v31  ;;  %v1473_v56 = vsub.f32 1.0, %v1153_v55  ;;  %v5606_v16 = vmul.f32 2.0, %v725_v29  ;;  %v6484_v29 = vld [vmem:[#allocation62_spill] sm:$0xff] }
 0x247   :  { %v5604_v51 = vpop.eup %3591  ;;  %v1297_v6 = vmul.f32 0.6931472, %v3590_v57  ;;  %3601 = vlog2.f32 %v2525_v61  ;;  %v2222_v52 = vmul.f32 0.01, %v1884_v46  ;;  %v2253_v20 = vadd.f32 1.0, %v2221_v54 }
 0x248   :  { %v3594_v30 = vpop.eup %3593  ;;  %3603 = vpow2.f32 %v2701_v12  ;;  %v1334_v41 = vmul.f32 -0.505, %v1295_v53  ;;  %vm3036_vm11 = vcmp.eq.s32.totalorder %v6474_v44, %v6480_v2  ;;  %v1441_v26 = vmul.f32 %v6481_v28, %v1153_v55  ;;  %v6485_v53 = vld [vmem:[#allocation64_spill] sm:$0xff] }
 0x249   :  { %v3596_v39 = vpop.eup %3595  ;;  %v1633_v13 = vmul.f32 %v6482_v42, %v1473_v56  ;;  %v2443_v24 = vmul.f32 2.5003695, %v3594_v30  ;;  %v1335_v45 = vmul.f32 -0.505, %v1297_v6  ;;  %v5612_v37 = vmul.f32 2.0, %v790_v40 }
 0x24a   :  { %v2444_v60 = vmul.f32 2.5003695, %v3596_v39  ;;  %v5614_v61 = vadd.f32 -1.1647458, %v1334_v41  ;;  %3605 = vlog2.f32 %v2253_v20  ;;  %v2254_v31 = vadd.f32 1.0, %v2222_v52 }
 0x24b   :  { %v3598_v12 = vpop.eup %3597  ;;  %v1665_v46 = vadd.f32 %v1633_v13, %v1441_v26  ;;  %v2763_v54 = vsub.f32 1.0, %v2443_v24  ;;  %v5616_v57 = vadd.f32 -1.1647458, %v1335_v45  ;;  %v2731_v55 = vmul.f32 %v6484_v29, %v2443_v24 }
 0x24c   :  { %v3600_v17 = vpop.eup %3599  ;;  %v2732_v56 = vmul.f32 %v6485_v53, %v2444_v60  ;;  %v2764_v30 = vsub.f32 1.0, %v2444_v60  ;;  %v1422_v6 = vmul.f32 1.442695, %v5614_v61  ;;  %vm1736_vm12 = vcmp.eq.s32.totalorder %v4420_v50, %v6414_v32  ;;  %v661_v60 = vpop.xlane.xlu1 %660 }
 0x24d   :  { %6483 = vst [vmem:[#allocation54_spill] sm:$0xff] %v5616_v57  ;;  %v3602_v39 = vpop.eup %3601  ;;  %v1697_v28 = vsub.f32 0.0, %v1665_v46  ;;  %v2923_v41 = vmul.f32 %v5135_v21, %v2763_v54  ;;  %v1424_v20 = vmul.f32 1.442695, %v5616_v57  ;;  %v2580_v42 = vmul.f32 0.6931472, %v3600_v17  ;;  %v1950_v32 = vpop.xlane.xlu2 %1949 }
 0x24e   :  { %v3604_v26 = vpop.eup %3603  ;;  %v2924_v52 = vmul.f32 %v5137_v59, %v2764_v30  ;;  %3607 = vpow2.f32 %v1422_v6  ;;  %v2578_v13 = vmul.f32 0.6931472, %v3602_v39  ;;  %v1001_v24 = vmul.f32 0.6931472, %v3598_v12 }
 0x24f   :  { %vm1738_vm13 = vcmp.eq.s32.totalorder %v4420_v50, %v6420_v27  ;;  %v2812_v40 = vsub.f32 1.0, %v5597_v33  ;;  %1793 = vst [vmem:[#allocation9 + $0x18] sm:$0xff] %v1697_v28  ;;  %v5629_v45 = vadd.f32 %v1823_v22, %v1697_v28  ;;  %v2955_v21 = vadd.f32 %v2923_v41, %v2731_v55 }
 0x250   :  { %3609 = vpow2.f32 %v1424_v20  ;;  %v3606_v46 = vpop.eup %3605  ;;  %v2956_v54 = vadd.f32 %v2924_v52, %v2732_v56  ;;  %v2622_v17 = vmul.f32 -0.505, %v2580_v42  ;;  %v2621_v29 = vmul.f32 -0.505, %v2578_v13 }
 0x251   :  { %v1059_v53 = vmul.f32 -50.5, %v1001_v24  ;;  %v2987_v59 = vsub.f32 0.0, %v2955_v21  ;;  %v5632_v30 = vmul.f32 2.5003695, %v5593_v10  ;;  %v2290_v12 = vmul.f32 0.6931472, %v3606_v46 }
 0x252   :  { %3611 = vlog2.f32 %v2254_v31  ;;  %v2811_v6 = vsub.f32 1.0, %v3604_v26  ;;  %v2988_v39 = vsub.f32 0.0, %v2956_v54  ;;  %v5634_v33 = vadd.f32 -1.1647458, %v2622_v17 }
 0x253   :  { %v824_v22 = vadd.f32 %v4549_v35, %v661_v60  ;;  %3099 = vst [vmem:[#allocation9 + $0x110] sm:$0xff] %v2987_v59  ;;  %v3130_v55 = vadd.f32 %v5575_v18, %v2987_v59  ;;  %v5638_v28 = vadd.f32 -1.1647458, %v2621_v29  ;;  %v1096_v56 = vmul.f32 1.442695, %v1059_v53  ;;  %v6488_v53 = vld [vmem:[#allocation61_spill] sm:$0xff] }
 0x254   :  { %6486 = vst [vmem:[#allocation56_spill] sm:$0xff] %v5634_v33  ;;  %v2349_v41 = vmul.f32 -50.5, %v2290_v12  ;;  %v3608_v20 = vpop.eup %3607  ;;  %v2844_v42 = vadd.f32 1e-12, %v2812_v40  ;;  %v3068_v10 = vsel %vm3036_vm11, 0.0, %v2988_v39  ;;  %v825_v26 = vadd.f32 %v4551_v38, %v661_v60  ;;  %v2074_v39 = vpop.f32.mrf.mxu1 }
 0x255   :  { %6487 = vst [vmem:[#allocation25_spill] sm:$0xff] %v5638_v28  ;;  %v2707_v31 = vmul.f32 1.442695, %v5634_v33  ;;  %v5645_v13 = vadd.f32 %v3130_v55, %v3068_v10  ;;  %v1526_v24 = vsub.f32 1.0, %v3608_v20  ;;  %3613 = vpow2.f32 %v1096_v56  ;;  %v6490_v20 = vld [vmem:[#allocation20_spill] sm:$0xff] }
 0x256   :  { %v3610_v52 = vpop.eup %3609  ;;  %3100 = vst [vmem:[#allocation9 + $0x118] sm:$0xff] %v3068_v10  ;;  %v2385_v18 = vmul.f32 1.442695, %v2349_v41  ;;  %v888_v46 = vsub.f32 %v824_v22, %v5518_v63  ;;  %v889_v40 = vsub.f32 %v825_v26, %v5539_v5  ;;  %v2843_v2 = vadd.f32 1e-12, %v2811_v6 }
 0x257   :  { %v1527_v21 = vsub.f32 1.0, %v3610_v52  ;;  %3615 = vpow2.f32 %v2707_v31  ;;  %v1558_v17 = vadd.f32 1e-12, %v1526_v24  ;;  %v2705_v29 = vmul.f32 1.442695, %v5638_v28 }
 0x258   :  { %v3612_v54 = vpop.eup %3611  ;;  %v5652_v60 = vadd.f32 %v5434_v49, %v6488_v53  ;;  %3617 = vpow2.f32 %v2385_v18  ;;  %v920_v55 = vmax.f32 %v888_v46, 0.0  ;;  %v921_v56 = vmax.f32 %v889_v40, 0.0  ;;  %v2009_v40 = vpop.f32.mrf.mxu0 }
 0x259   :  { %v1559_v59 = vadd.f32 1e-12, %v1527_v21  ;;  %v2292_v12 = vmul.f32 0.6931472, %v3612_v54  ;;  %3619 = vlog2.f32 %v1558_v17  ;;  %v6489_v5 = vsub.f32 0.0, %v5200_v15  ;;  %v6492_v54 = vld [vmem:[#allocation23_spill] sm:$0xff] }
 0x25a   :  { %v933_v63 = vmul.f32 0.01, %v5652_v60  ;;  %3621 = vlog2.f32 %v2844_v42  ;;  %v1208_v41 = vmul.f32 100.0, %v920_v55  ;;  %v6491_v10 = vsub.f32 0.0, %v6490_v20 }
 0x25b   :  { %v5660_v6 = vsel %vm1736_vm12, 0.0, %v6489_v5  ;;  %v2350_v22 = vmul.f32 -50.5, %v2292_v12  ;;  %v3614_v26 = vpop.eup %3613  ;;  %v1494_v52 = vsub.f32 1.0, %v5632_v30  ;;  %3623 = vpow2.f32 %v2705_v29 }
 0x25c   :  { %1800 = vst [vmem:[#allocation9 + $0x50] sm:$0xff] %v5660_v6  ;;  %v1770_v31 = vsel %vm1738_vm13, 0.0, %v6491_v10  ;;  %v2144_v15 = vmul.f32 2.0, %v2074_v39  ;;  %v1209_v24 = vmul.f32 100.0, %v921_v56  ;;  %3625 = vlog2.f32 %v2843_v2 }
 0x25d   :  { %1802 = vst [vmem:[#allocation9 + $0x60] sm:$0xff] %v1770_v31  ;;  %v3616_v18 = vpop.eup %3615  ;;  %v1155_v42 = vmul.f32 2.5003695, %v3614_v26  ;;  %v2387_v21 = vmul.f32 1.442695, %v2350_v22  ;;  %v1240_v46 = vadd.f32 1.0, %v1208_v41  ;;  %vm1750_vm14 = vcmp.eq.s32.totalorder %v4420_v50, %v6492_v54 }
 0x25e   :  { %3627 = vlog2.f32 %v1559_v59  ;;  %v1241_v27 = vadd.f32 1.0, %v1209_v24  ;;  %v2112_v17 = vadd.f32 %v1950_v32, %v4551_v38  ;;  %v965_v12 = vadd.f32 1.0, %v933_v63  ;;  %v3618_v55 = vpop.eup %3617  ;;  %v6493_v31 = vld [vmem:[#allocation50_spill] sm:$0xff]  ;;  %v6494_v26 = vld [vmem:[#allocation65_spill] sm:$0xff]  ;;  %v440_v63 = vpop.xlane.xlu0 %439 }
 0x25f   :  { %v2814_v29 = vsub.f32 1.0, %v3616_v18  ;;  %v1475_v39 = vsub.f32 1.0, %v1155_v42  ;;  %3629 = vpow2.f32 %v2387_v21  ;;  %v2111_v56 = vadd.f32 %v1950_v32, %v4549_v35  ;;  %v3620_v5 = vpop.eup %3619  ;;  %v3897_v32 = vld [vmem:[#allocation9 + $0x20] sm:$0xff] }
 0x260   :  { %v2445_v2 = vmul.f32 2.5003695, %v3618_v55  ;;  %3631 = vlog2.f32 %v1240_v46  ;;  %v2176_v22 = vsub.f32 %v2112_v17, %v2144_v15  ;;  %v2143_v41 = vmul.f32 2.0, %v2009_v40  ;;  %v5673_v20 = vpop.eup %3621 }
 0x261   :  { %v1615_v10 = vmul.f32 0.6931472, %v3620_v5  ;;  %v1443_v59 = vmul.f32 %v6493_v31, %v1155_v42  ;;  %v1635_v24 = vmul.f32 %v6494_v26, %v1475_v39  ;;  %3633 = vlog2.f32 %v1241_v27  ;;  %v5677_v57 = vpop.eup %3623  ;;  %v6495_v42 = vld [vmem:[#allocation69_spill] sm:$0xff] }
 0x262   :  { %v1462_v18 = vmul.f32 %v5614_v61, %v5632_v30  ;;  %v1825_v21 = vadd.f32 %v3897_v32, %v5629_v45  ;;  %v2765_v46 = vsub.f32 1.0, %v2445_v2  ;;  %3635 = vpow2.f32 %v5564_v7  ;;  %v3626_v15 = vpop.eup %3625  ;;  %v6496_v27 = vld [vmem:[#allocation41_spill] sm:$0xff]  ;;  %v6497_v30 = vld [vmem:[#allocation26_spill] sm:$0xff] }
 0x263   :  { %v1654_v40 = vmul.f32 %v1615_v10, %v1494_v52  ;;  %v2846_v17 = vadd.f32 1e-12, %v2814_v29  ;;  %v1667_v55 = vadd.f32 %v1635_v24, %v1443_v59  ;;  %v2733_v5 = vmul.f32 %v6495_v42, %v2445_v2 }
 0x264   :  { %v5684_v39 = vpop.eup %3627  ;;  %v2925_v31 = vmul.f32 %v6496_v27, %v2765_v46  ;;  %v2208_v26 = vmax.f32 %v2176_v22, 0.0  ;;  %v2175_v33 = vsub.f32 %v2111_v56, %v2143_v41  ;;  %v468_v28 = vmul.f32 1e-05, %v440_v63 }
 0x265   :  { %v3630_v61 = vpop.eup %3629  ;;  %vm3038_vm15 = vcmp.eq.s32.totalorder %v6474_v44, %v6497_v30  ;;  %v1686_v45 = vadd.f32 %v1654_v40, %v1462_v18  ;;  %v2813_v7 = vsub.f32 1.0, %v5677_v57  ;;  %v1699_v32 = vsub.f32 0.0, %v1667_v55  ;;  %v728_v18 = vpop.f32.mrf.mxu2 }
 0x266   :  { %3637 = vlog2.f32 %v965_v12  ;;  %v3632_v52 = vpop.eup %3631  ;;  %v2446_v29 = vmul.f32 2.5003695, %v3630_v61  ;;  %v2957_v10 = vadd.f32 %v2925_v31, %v2733_v5  ;;  %v2496_v2 = vmul.f32 100.0, %v2208_v26  ;;  %v793_v40 = vpop.f32.mrf.mxu3  ;;  %v6499_v31 = vld [vmem:[#allocation59_spill] sm:$0xff] }
 0x267   :  { %v2207_v59 = vmax.f32 %v2175_v33, 0.0  ;;  %v3634_v24 = vpop.eup %3633  ;;  %v1718_v42 = vsub.f32 0.0, %v1686_v45  ;;  %3639 = vlog2.f32 %v2846_v17  ;;  %1795 = vst [vmem:[#allocation9 + $0x28] sm:$0xff] %v1699_v32  ;;  %v5690_v56 = vadd.f32 %v1825_v21, %v1699_v32  ;;  %v6498_v17 = vld [vmem:[#allocation70_spill] sm:$0xff] }
 0x268   :  { %v1299_v22 = vmul.f32 0.6931472, %v3632_v52  ;;  %v3636_v41 = vpop.eup %3635  ;;  %v2766_v63 = vsub.f32 1.0, %v2446_v29  ;;  %v2989_v46 = vsub.f32 0.0, %v2957_v10  ;;  %v1301_v57 = vmul.f32 0.6931472, %v3634_v24 }
 0x269   :  { %v1885_v12 = vadd.f32 %v468_v28, %v6488_v53  ;;  %v1782_v55 = vsel %vm1750_vm14, 0.0, %v1718_v42  ;;  %v2528_v5 = vadd.f32 1.0, %v2496_v2  ;;  %v2495_v27 = vmul.f32 100.0, %v2207_v59 }
 0x26a   :  { %v1336_v33 = vmul.f32 -0.505, %v1299_v22  ;;  %1814 = vst [vmem:[#allocation9 + $0xc0] sm:$0xff] %v1782_v55  ;;  %v2734_v21 = vmul.f32 %v6498_v17, %v2446_v29  ;;  %v2926_v26 = vmul.f32 %v6499_v31, %v2766_v63  ;;  %v3132_v61 = vadd.f32 %v5645_v13, %v2989_v46 }
 0x26b   :  { %v1337_v45 = vmul.f32 -0.505, %v1301_v57  ;;  %3101 = vst [vmem:[#allocation9 + $0x120] sm:$0xff] %v2989_v46  ;;  %3641 = vlog2.f32 %v2528_v5  ;;  %v2527_v53 = vadd.f32 1.0, %v2495_v27  ;;  %v1886_v54 = vadd.f32 %v5652_v60, %v468_v28  ;;  %v663_v28 = vpop.xlane.xlu1 %662 }
 0x26c   :  { %v3638_v32 = vpop.eup %3637  ;;  %v5699_v52 = vadd.f32 -1.1647458, %v1336_v33  ;;  %v2958_v10 = vadd.f32 %v2926_v26, %v2734_v21  ;;  %v2223_v59 = vmul.f32 0.01, %v1885_v12  ;;  %v5707_v29 = vmul.f32 0.6931472, %v5604_v51 }
 0x26d   :  { %v5702_v24 = vadd.f32 -1.1647458, %v1337_v45  ;;  %v1005_v2 = vmul.f32 0.6931472, %v3638_v32  ;;  %v5704_v42 = vpop.eup %3639  ;;  %3643 = vlog2.f32 %v2527_v53  ;;  %v2224_v22 = vmul.f32 0.01, %v1886_v54 }
 0x26e   :  { %6501 = vst [vmem:[#allocation63_spill] sm:$0xff] %v5707_v29  ;;  %v1426_v13 = vmul.f32 1.442695, %v5699_v52  ;;  %v2990_v63 = vsub.f32 0.0, %v2958_v10  ;;  %v2255_v55 = vadd.f32 1.0, %v2223_v59  ;;  %v5713_v33 = vmul.f32 2.0, %v728_v18  ;;  %v2077_v45 = vpop.f32.mrf.mxu3 }
 0x26f   :  { %6500 = vst [vmem:[#allocation49_spill] sm:$0xff] %v5702_v24  ;;  %v1428_v46 = vmul.f32 1.442695, %v5702_v24  ;;  %v1061_v57 = vmul.f32 -50.5, %v1005_v2  ;;  %v5711_v60 = vmul.f32 0.6931472, %v3626_v15  ;;  %v826_v31 = vadd.f32 %v4549_v35, %v663_v28 }
 0x270   :  { %3645 = vpow2.f32 %v1426_v13  ;;  %v2256_v12 = vadd.f32 1.0, %v2224_v22  ;;  %v2845_v5 = vadd.f32 1e-12, %v2813_v7  ;;  %v3070_v51 = vsel %vm3038_vm15, 0.0, %v2990_v63  ;;  %v2012_v7 = vpop.f32.mrf.mxu2 }
 0x271   :  { %6502 = vst [vmem:[#allocation62_spill] sm:$0xff] %v5711_v60  ;;  %3647 = vpow2.f32 %v1428_v46  ;;  %v1100_v27 = vmul.f32 1.442695, %v1061_v57  ;;  %v3642_v17 = vpop.eup %3641  ;;  %v5718_v21 = vadd.f32 %v3132_v61, %v3070_v51  ;;  %v827_v15 = vadd.f32 %v4551_v38, %v663_v28 }
 0x272   :  { %3102 = vst [vmem:[#allocation9 + $0x128] sm:$0xff] %v3070_v51  ;;  %3649 = vlog2.f32 %v2255_v55  ;;  %v5722_v18 = vmul.f32 2.0, %v793_v40  ;;  %v2584_v26 = vmul.f32 0.6931472, %v3642_v17  ;;  %v1142_v30 = vmul.f32 1.442695, %v5411_v11  ;;  %v1952_v11 = vpop.xlane.xlu2 %1951 }
 0x273   :  { %3651 = vpow2.f32 %v1100_v27  ;;  %v3644_v32 = vpop.eup %3643  ;;  %v5726_v53 = vmul.f32 0.6931472, %v5684_v39  ;;  %v890_v61 = vsub.f32 %v826_v31, %v5606_v16  ;;  %v891_v54 = vsub.f32 %v827_v15, %v5612_v37  ;;  %v6505_v51 = vld [vmem:[#allocation68_spill] sm:$0xff] }
 0x274   :  { %3653 = vlog2.f32 %v2256_v12  ;;  %v5730_v10 = vmul.f32 2.5003695, %v3636_v41  ;;  %v2624_v40 = vmul.f32 -0.505, %v2584_v26  ;;  %v2582_v2 = vmul.f32 0.6931472, %v3644_v32 }
 0x275   :  { %6503 = vst [vmem:[#allocation64_spill] sm:$0xff] %v5726_v53  ;;  %3655 = vlog2.f32 %v2845_v5  ;;  %v2145_v13 = vmul.f32 2.0, %v2012_v7  ;;  %v2146_v22 = vmul.f32 2.0, %v2077_v45  ;;  %v922_v63 = vmax.f32 %v890_v61, 0.0 }
 0x276   :  { %v3646_v59 = vpop.eup %3645  ;;  %v923_v46 = vmax.f32 %v891_v54, 0.0  ;;  %v5732_v39 = vadd.f32 -1.1647458, %v2624_v40  ;;  %v2623_v28 = vmul.f32 -0.505, %v2582_v2  ;;  %v2113_v16 = vadd.f32 %v1952_v11, %v4549_v35 }
 0x277   :  { %v3648_v57 = vpop.eup %3647  ;;  %v1528_v55 = vsub.f32 1.0, %v3646_v59  ;;  %v1210_v37 = vmul.f32 100.0, %v922_v63  ;;  %v2114_v41 = vadd.f32 %v1952_v11, %v4551_v38  ;;  %v5738_v27 = vadd.f32 %v5434_v49, %v6505_v51 }
 0x278   :  { %6504 = vst [vmem:[#allocation61_spill] sm:$0xff] %v5732_v39  ;;  %v3650_v12 = vpop.eup %3649  ;;  %v1211_v5 = vmul.f32 100.0, %v923_v46  ;;  %v2711_v15 = vmul.f32 1.442695, %v5732_v39  ;;  %v5741_v26 = vadd.f32 -1.1647458, %v2623_v28  ;;  %3657 = vpow2.f32 %v1142_v30 }
 0x279   :  { %v3652_v17 = vpop.eup %3651  ;;  %v1560_v31 = vadd.f32 1e-12, %v1528_v55  ;;  %v2294_v32 = vmul.f32 0.6931472, %v3650_v12  ;;  %v2177_v61 = vsub.f32 %v2113_v16, %v2145_v13  ;;  %v2178_v54 = vsub.f32 %v2114_v41, %v2146_v22  ;;  %v6507_v28 = vld [vmem:[#allocation51_spill] sm:$0xff]  ;;  %v6508_v13 = vld [vmem:[#allocation66_spill] sm:$0xff] }
 0x27a   :  { %6506 = vst [vmem:[#allocation20_spill] sm:$0xff] %v5741_v26  ;;  %v3654_v7 = vpop.eup %3653  ;;  %v1157_v45 = vmul.f32 2.5003695, %v3652_v17  ;;  %v2709_v2 = vmul.f32 1.442695, %v5741_v26  ;;  %v1242_v63 = vadd.f32 1.0, %v1210_v37  ;;  %v442_v17 = vpop.xlane.xlu0 %441 }
 0x27b   :  { %v3656_v40 = vpop.eup %3655  ;;  %3659 = vlog2.f32 %v1560_v31  ;;  %v2296_v59 = vmul.f32 0.6931472, %v3654_v7  ;;  %v1529_v46 = vsub.f32 1.0, %v3648_v57  ;;  %v2351_v53 = vmul.f32 -50.5, %v2294_v32  ;;  %v3898_v31 = vld [vmem:[#allocation9 + $0x30] sm:$0xff] }
 0x27c   :  { %v1477_v11 = vsub.f32 1.0, %v1157_v45  ;;  %v935_v55 = vmul.f32 0.01, %v5738_v27  ;;  %3661 = vpow2.f32 %v2711_v15  ;;  %v1445_v24 = vmul.f32 %v6507_v28, %v1157_v45 }
 0x27d   :  { %v2352_v30 = vmul.f32 -50.5, %v2296_v59  ;;  %v1243_v50 = vadd.f32 1.0, %v1211_v5  ;;  %3663 = vpow2.f32 %v2709_v2  ;;  %v2389_v16 = vmul.f32 1.442695, %v2351_v53 }
 0x27e   :  { %v1637_v22 = vmul.f32 %v6508_v13, %v1477_v11  ;;  %v2209_v12 = vmax.f32 %v2177_v61, 0.0  ;;  %v3658_v41 = vpop.eup %3657  ;;  %v1827_v37 = vadd.f32 %v3898_v31, %v5690_v56  ;;  %3665 = vlog2.f32 %v1242_v63 }
 0x27f   :  { %v2391_v57 = vmul.f32 1.442695, %v2352_v30  ;;  %v2210_v7 = vmax.f32 %v2178_v54, 0.0  ;;  %3667 = vpow2.f32 %v2389_v16  ;;  %v469_v39 = vmul.f32 1e-05, %v442_v17 }
 0x280   :  { %v1669_v32 = vadd.f32 %v1637_v22, %v1445_v24  ;;  %v2497_v15 = vmul.f32 100.0, %v2209_v12  ;;  %v1561_v59 = vadd.f32 1e-12, %v1529_v46  ;;  %v967_v2 = vadd.f32 1.0, %v935_v55 }
 0x281   :  { %v3660_v45 = vpop.eup %3659  ;;  %3669 = vpow2.f32 %v2391_v57  ;;  %v2498_v5 = vmul.f32 100.0, %v2210_v7  ;;  %v5748_v11 = vmul.f32 2.5003695, %v3658_v41  ;;  %v1496_v56 = vsub.f32 1.0, %v5730_v10  ;;  %v5763_v41 = vpop.xlane.xlu1 %664 }
 0x282   :  { %v1701_v28 = vsub.f32 0.0, %v1669_v32  ;;  %3671 = vlog2.f32 %v1243_v50  ;;  %v2529_v53 = vadd.f32 1.0, %v2497_v15  ;;  %v5750_v61 = vpop.eup %3661  ;;  %v1887_v24 = vadd.f32 %v469_v39, %v6505_v51  ;;  %v6514_v51 = vld [vmem:[#allocation81_spill] sm:$0xff] }
 0x283   :  { %6509 = vst [vmem:[#allocation23_spill] sm:$0xff] %v5748_v11  ;;  %v2530_v63 = vadd.f32 1.0, %v2498_v5  ;;  %3673 = vlog2.f32 %v967_v2  ;;  %v3664_v54 = vpop.eup %3663  ;;  %v5754_v30 = vmul.f32 0.6931472, %v3656_v40  ;;  %v1619_v46 = vmul.f32 0.6931472, %v3660_v45 }
 0x284   :  { %1797 = vst [vmem:[#allocation9 + $0x38] sm:$0xff] %v1701_v28  ;;  %v5756_v17 = vadd.f32 %v1827_v37, %v1701_v28  ;;  %3675 = vlog2.f32 %v2529_v53  ;;  %v3666_v55 = vpop.eup %3665  ;;  %v1464_v50 = vmul.f32 %v5699_v52, %v5730_v10  ;;  %v2815_v13 = vsub.f32 1.0, %v3664_v54  ;;  %v6511_v37 = vld [vmem:[#allocation27_spill] sm:$0xff]  ;;  %v6513_v54 = vld [vmem:[#allocation73_spill] sm:$0xff] }
 0x285   :  { %6510 = vst [vmem:[#allocation50_spill] sm:$0xff] %v5754_v30  ;;  %3677 = vlog2.f32 %v2530_v63  ;;  %v1888_v22 = vadd.f32 %v5738_v27, %v469_v39  ;;  %v3668_v16 = vpop.eup %3667  ;;  %v1303_v12 = vmul.f32 0.6931472, %v3666_v55  ;;  %vm3040_vm0 = vcmp.eq.s32.totalorder %v6474_v44, %v6511_v37  ;;  %v6512_v10 = vld [vmem:[#allocation71_spill] sm:$0xff] }
 0x286   :  { %3679 = vlog2.f32 %v1561_v59  ;;  %v2847_v57 = vadd.f32 1e-12, %v2815_v13  ;;  %v2447_v7 = vmul.f32 2.5003695, %v3668_v16  ;;  %v2225_v52 = vmul.f32 0.01, %v1887_v24 }
 0x287   :  { %v3670_v31 = vpop.eup %3669  ;;  %v5769_v32 = vadd.f32 %v5434_v49, %v6512_v10  ;;  %v1656_v27 = vmul.f32 %v1619_v46, %v1496_v56  ;;  %v1338_v45 = vmul.f32 -0.505, %v1303_v12  ;;  %v2226_v59 = vmul.f32 0.01, %v1888_v22 }
 0x288   :  { %v3672_v39 = vpop.eup %3671  ;;  %v2448_v15 = vmul.f32 2.5003695, %v3670_v31  ;;  %3681 = vlog2.f32 %v2847_v57  ;;  %v2767_v2 = vsub.f32 1.0, %v2447_v7  ;;  %v828_v53 = vadd.f32 %v4549_v35, %v5763_v41  ;;  %v6515_v57 = vld [vmem:[#allocation74_spill] sm:$0xff] }
 0x289   :  { %v3674_v5 = vpop.eup %3673  ;;  %v1305_v28 = vmul.f32 0.6931472, %v3672_v39  ;;  %v2735_v55 = vmul.f32 %v6513_v54, %v2447_v7  ;;  %v5774_v13 = vadd.f32 -1.1647458, %v1338_v45  ;;  %v2257_v22 = vadd.f32 1.0, %v2225_v52  ;;  %v6516_v39 = vld [vmem:[#allocation46_spill] sm:$0xff] }
 0x28a   :  { %v3676_v63 = vpop.eup %3675  ;;  %v2768_v24 = vsub.f32 1.0, %v2448_v15  ;;  %v1009_v16 = vmul.f32 0.6931472, %v3674_v5  ;;  %v2927_v56 = vmul.f32 %v6514_v51, %v2767_v2  ;;  %v2736_v26 = vmul.f32 %v6515_v57, %v2448_v15 }
 0x28b   :  { %v3678_v40 = vpop.eup %3677  ;;  %v1339_v46 = vmul.f32 -0.505, %v1305_v28  ;;  %v2586_v12 = vmul.f32 0.6931472, %v3676_v63  ;;  %v1430_v30 = vmul.f32 1.442695, %v5774_v13  ;;  %v2015_v63 = vpop.f32.mrf.mxu2 }
 0x28c   :  { %v3680_v31 = vpop.eup %3679  ;;  %v2928_v29 = vmul.f32 %v6516_v39, %v2768_v24  ;;  %v2588_v1 = vmul.f32 0.6931472, %v3678_v40  ;;  %v2959_v60 = vadd.f32 %v2927_v56, %v2735_v55  ;;  %v1063_v54 = vmul.f32 -50.5, %v1009_v16  ;;  %v2080_v24 = vpop.f32.mrf.mxu3 }
 0x28d   :  { %v5780_v7 = vadd.f32 -1.1647458, %v1339_v46  ;;  %v2625_v45 = vmul.f32 -0.505, %v2586_v12  ;;  %3683 = vpow2.f32 %v1430_v30  ;;  %v2258_v51 = vadd.f32 1.0, %v2226_v59 }
 0x28e   :  { %v2960_v5 = vadd.f32 %v2928_v29, %v2736_v26  ;;  %v2626_v0 = vmul.f32 -0.505, %v2588_v1  ;;  %v5782_v2 = vpop.eup %3681  ;;  %v2991_v52 = vsub.f32 0.0, %v2959_v60  ;;  %3685 = vlog2.f32 %v2257_v22  ;;  %v1954_v26 = vpop.xlane.xlu2 %1953 }
 0x28f   :  { %6517 = vst [vmem:[#allocation65_spill] sm:$0xff] %v5780_v7  ;;  %v1432_v28 = vmul.f32 1.442695, %v5780_v7  ;;  %v5785_v15 = vadd.f32 -1.1647458, %v2625_v45  ;;  %v5787_v40 = vadd.f32 %v1656_v27, %v1464_v50  ;;  %3687 = vlog2.f32 %v2258_v51 }
 0x290   :  { %v2992_v55 = vsub.f32 0.0, %v2960_v5  ;;  %v5789_v56 = vadd.f32 -1.1647458, %v2626_v0  ;;  %3103 = vst [vmem:[#allocation9 + $0x130] sm:$0xff] %v2991_v52  ;;  %v3134_v1 = vadd.f32 %v5718_v21, %v2991_v52  ;;  %v1104_v60 = vmul.f32 1.442695, %v1063_v54 }
 0x291   :  { %6518 = vst [vmem:[#allocation69_spill] sm:$0xff] %v5785_v15  ;;  %3689 = vpow2.f32 %v1432_v28  ;;  %v2713_v29 = vmul.f32 1.442695, %v5785_v15  ;;  %v2147_v50 = vmul.f32 2.0, %v2015_v63  ;;  %v2148_v27 = vmul.f32 2.0, %v2080_v24  ;;  %v3899_v63 = vld [vmem:[#allocation9 + $0x40] sm:$0xff] }
 0x292   :  { %6519 = vst [vmem:[#allocation41_spill] sm:$0xff] %v5787_v40  ;;  %v3072_v30 = vsel %vm3040_vm0, 0.0, %v2992_v55  ;;  %v2715_v59 = vmul.f32 1.442695, %v5789_v56  ;;  %v829_v21 = vadd.f32 %v4551_v38, %v5763_v41  ;;  %v892_v16 = vsub.f32 %v828_v53, %v5713_v33 }
 0x293   :  { %6520 = vst [vmem:[#allocation26_spill] sm:$0xff] %v5789_v56  ;;  %v5797_v0 = vadd.f32 %v3134_v1, %v3072_v30  ;;  %3691 = vpow2.f32 %v2713_v29  ;;  %v3684_v46 = vpop.eup %3683  ;;  %v6521_v12 = vsub.f32 1.0, %v5750_v61  ;;  %v2115_v37 = vadd.f32 %v1954_v26, %v4549_v35  ;;  %v6536_v61 = vld [vmem:[#allocation36_spill] sm:$0xff]  ;;  %v2018_v15 = vpop.f32.mrf.mxu2 }
 0x294   :  { %3104 = vst [vmem:[#allocation9 + $0x138] sm:$0xff] %v3072_v30  ;;  %3693 = vpow2.f32 %v2715_v59  ;;  %v2116_v57 = vadd.f32 %v1954_v26, %v4551_v38  ;;  %v3686_v39 = vpop.eup %3685  ;;  %v5806_v45 = vmul.f32 0.6931472, %v3680_v31  ;;  %v893_v54 = vsub.f32 %v829_v21, %v5722_v18 }
 0x295   :  { %v2848_v22 = vadd.f32 1e-12, %v6521_v12  ;;  %3695 = vpow2.f32 %v1104_v60  ;;  %v924_v5 = vmax.f32 %v892_v16, 0.0  ;;  %v3688_v51 = vpop.eup %3687  ;;  %v1530_v41 = vsub.f32 1.0, %v3684_v46 }
 0x296   :  { %6522 = vst [vmem:[#allocation70_spill] sm:$0xff] %v5806_v45  ;;  %v2298_v52 = vmul.f32 0.6931472, %v3686_v39  ;;  %v2179_v33 = vsub.f32 %v2115_v37, %v2147_v50  ;;  %v2180_v53 = vsub.f32 %v2116_v57, %v2148_v27  ;;  %v5811_v24 = vadd.f32 %v3899_v63, %v5756_v17 }
 0x297   :  { %v3690_v28 = vpop.eup %3689  ;;  %v2300_v55 = vmul.f32 0.6931472, %v3688_v51  ;;  %v1212_v1 = vmul.f32 100.0, %v924_v5  ;;  %3697 = vlog2.f32 %v2848_v22  ;;  %v925_v30 = vmax.f32 %v893_v54, 0.0 }
 0x298   :  { %v2353_v31 = vmul.f32 -50.5, %v2298_v52  ;;  %v2211_v29 = vmax.f32 %v2179_v33, 0.0  ;;  %v2212_v60 = vmax.f32 %v2180_v53, 0.0  ;;  %v937_v50 = vmul.f32 0.01, %v5769_v32  ;;  %v444_v52 = vpop.xlane.xlu0 %443 }
 0x299   :  { %v3692_v18 = vpop.eup %3691  ;;  %v2354_v26 = vmul.f32 -50.5, %v2300_v55  ;;  %v1244_v59 = vadd.f32 1.0, %v1212_v1  ;;  %v1562_v21 = vadd.f32 1e-12, %v1530_v41  ;;  %v1531_v17 = vsub.f32 1.0, %v3690_v28 }
 0x29a   :  { %v3694_v27 = vpop.eup %3693  ;;  %v2817_v16 = vsub.f32 1.0, %v3692_v18  ;;  %v2393_v46 = vmul.f32 1.442695, %v2353_v31  ;;  %v2499_v12 = vmul.f32 100.0, %v2211_v29  ;;  %v2500_v51 = vmul.f32 100.0, %v2212_v60  ;;  %v6526_v60 = vld [vmem:[#allocation75_spill] sm:$0xff] }
 0x29b   :  { %v3696_v37 = vpop.eup %3695  ;;  %v2818_v57 = vsub.f32 1.0, %v3694_v27  ;;  %v2395_v39 = vmul.f32 1.442695, %v2354_v26  ;;  %3699 = vlog2.f32 %v1244_v59  ;;  %v5816_v54 = vmul.f32 %v5774_v13, %v5748_v11  ;;  %v6527_v26 = vld [vmem:[#allocation53_spill] sm:$0xff]  ;;  %v6528_v59 = vld [vmem:[#allocation67_spill] sm:$0xff]  ;;  %v2083_v11 = vpop.f32.mrf.mxu3 }
 0x29c   :  { %v2849_v22 = vadd.f32 1e-12, %v2817_v16  ;;  %v1159_v5 = vmul.f32 2.5003695, %v3696_v37  ;;  %3701 = vpow2.f32 %v2393_v46  ;;  %v1213_v33 = vmul.f32 100.0, %v925_v30 }
 0x29d   :  { %6523 = vst [vmem:[#allocation59_spill] sm:$0xff] %v5816_v54  ;;  %3703 = vpow2.f32 %v2395_v39  ;;  %v2531_v41 = vadd.f32 1.0, %v2499_v12  ;;  %v5818_v53 = vpop.eup %3697  ;;  %v5821_v63 = vmul.f32 0.6931472, %v5782_v2  ;;  %v2532_v55 = vadd.f32 1.0, %v2500_v51 }
 0x29e   :  { %v1479_v28 = vsub.f32 1.0, %v1159_v5  ;;  %v969_v1 = vadd.f32 1.0, %v937_v50  ;;  %v5823_v31 = vadd.f32 1e-12, %v1531_v17  ;;  %3705 = vlog2.f32 %v1562_v21  ;;  %v6529_v50 = vld [vmem:[#allocation40_spill] sm:$0xff] }
 0x29f   :  { %6524 = vst [vmem:[#allocation68_spill] sm:$0xff] %v5821_v63  ;;  %v470_v29 = vmul.f32 1e-05, %v444_v52  ;;  %v5827_v18 = vadd.f32 %v5434_v49, %v6526_v60  ;;  %v2850_v13 = vadd.f32 1e-12, %v2818_v57  ;;  %3707 = vlog2.f32 %v2849_v22  ;;  %v6530_v22 = vld [vmem:[#allocation28_spill] sm:$0xff] }
 0x2a0   :  { %6525 = vst [vmem:[#allocation51_spill] sm:$0xff] %v5823_v31  ;;  %v1447_v30 = vmul.f32 %v6527_v26, %v1159_v5  ;;  %v1639_v27 = vmul.f32 %v6528_v59, %v1479_v28  ;;  %v1245_v2 = vadd.f32 1.0, %v1213_v33  ;;  %3709 = vlog2.f32 %v2531_v41 }
 0x2a1   :  { %v3700_v16 = vpop.eup %3699  ;;  %v5832_v46 = vmul.f32 0.6931472, %v5488_v19  ;;  %v5836_v21 = vadd.f32 %v5434_v49, %v6529_v50  ;;  %3711 = vlog2.f32 %v2532_v55  ;;  %v939_v57 = vmul.f32 0.01, %v5827_v18 }
 0x2a2   :  { %v3702_v12 = vpop.eup %3701  ;;  %v1671_v37 = vadd.f32 %v1639_v27, %v1447_v30  ;;  %v1307_v17 = vmul.f32 0.6931472, %v3700_v16  ;;  %vm3042_vm1 = vcmp.eq.s32.totalorder %v6474_v44, %v6530_v22  ;;  %3713 = vlog2.f32 %v969_v1 }
 0x2a3   :  { %v3704_v39 = vpop.eup %3703  ;;  %v2449_v5 = vmul.f32 2.5003695, %v3702_v12  ;;  %v1889_v51 = vadd.f32 %v470_v29, %v6512_v10  ;;  %v1890_v19 = vadd.f32 %v5769_v32, %v470_v29  ;;  %3715 = vlog2.f32 %v2850_v13  ;;  %v6533_v13 = vld [vmem:[#allocation76_spill] sm:$0xff]  ;;  %v6534_v12 = vld [vmem:[#allocation82_spill] sm:$0xff] }
 0x2a4   :  { %v1703_v52 = vsub.f32 0.0, %v1671_v37  ;;  %v2450_v33 = vmul.f32 2.5003695, %v3704_v39  ;;  %v1340_v41 = vmul.f32 -0.505, %v1307_v17  ;;  %v5843_v28 = vpop.eup %3705  ;;  %3717 = vlog2.f32 %v1245_v2 }
 0x2a5   :  { %6531 = vst [vmem:[#allocation66_spill] sm:$0xff] %v5843_v28  ;;  %v2769_v26 = vsub.f32 1.0, %v2449_v5  ;;  %v2227_v55 = vmul.f32 0.01, %v1889_v51  ;;  %v2228_v30 = vmul.f32 0.01, %v1890_v19  ;;  %v5845_v59 = vpop.eup %3707  ;;  %v2737_v16 = vmul.f32 %v6533_v13, %v2449_v5  ;;  %v1956_v13 = vpop.xlane.xlu2 %1955 }
 0x2a6   :  { %1799 = vst [vmem:[#allocation9 + $0x48] sm:$0xff] %v1703_v52  ;;  %v5848_v27 = vadd.f32 %v5811_v24, %v1703_v52  ;;  %v2770_v1 = vsub.f32 1.0, %v2450_v33  ;;  %v5850_v10 = vadd.f32 -1.1647458, %v1340_v41  ;;  %v941_v32 = vmul.f32 0.01, %v5836_v21  ;;  %v3710_v29 = vpop.eup %3709 }
 0x2a7   :  { %v2929_v37 = vmul.f32 %v6534_v12, %v2769_v26  ;;  %v2259_v17 = vadd.f32 1.0, %v2227_v55  ;;  %v2260_v2 = vadd.f32 1.0, %v2228_v30  ;;  %v3712_v39 = vpop.eup %3711  ;;  %v6535_v51 = vld [vmem:[#allocation78_spill] sm:$0xff]  ;;  %v2590_v52 = vmul.f32 0.6931472, %v3710_v29 }
 0x2a8   :  { %6532 = vst [vmem:[#allocation27_spill] sm:$0xff] %v5850_v10  ;;  %v2738_v19 = vmul.f32 %v6535_v51, %v2450_v33  ;;  %v2930_v56 = vmul.f32 %v6536_v61, %v2770_v1  ;;  %v1434_v24 = vmul.f32 1.442695, %v5850_v10  ;;  %v3714_v41 = vpop.eup %3713  ;;  %v2592_v54 = vmul.f32 0.6931472, %v3712_v39 }
 0x2a9   :  { %v2961_v40 = vadd.f32 %v2929_v37, %v2737_v16  ;;  %3719 = vlog2.f32 %v2259_v17  ;;  %v971_v45 = vadd.f32 1.0, %v939_v57  ;;  %v5858_v5 = vpop.eup %3715  ;;  %v2627_v55 = vmul.f32 -0.505, %v2590_v52 }
 0x2aa   :  { %6537 = vst [vmem:[#allocation71_spill] sm:$0xff] %v5858_v5  ;;  %v2962_v26 = vadd.f32 %v2930_v56, %v2738_v19  ;;  %3721 = vpow2.f32 %v1434_v24  ;;  %v1013_v30 = vmul.f32 0.6931472, %v3714_v41  ;;  %v3718_v33 = vpop.eup %3717  ;;  %v2628_v61 = vmul.f32 -0.505, %v2592_v54  ;;  %v446_v19 = vpop.xlane.xlu0 %445  ;;  %v6549_v5 = vld [vmem:[#allocation55_spill] sm:$0xff] }
 0x2ab   :  { %v2993_v12 = vsub.f32 0.0, %v2961_v40  ;;  %3723 = vlog2.f32 %v2260_v2  ;;  %v2149_v1 = vmul.f32 2.0, %v2018_v15  ;;  %v5860_v51 = vadd.f32 -1.1647458, %v2627_v55 }
 0x2ac   :  { %v2994_v29 = vsub.f32 0.0, %v2962_v26  ;;  %v1065_v16 = vmul.f32 -50.5, %v1013_v30  ;;  %v2150_v37 = vmul.f32 2.0, %v2083_v11  ;;  %v5863_v17 = vadd.f32 -1.1647458, %v2628_v61  ;;  %v6541_v30 = vld [vmem:[#allocation18_spill] sm:$0xff] }
 0x2ad   :  { %6538 = vst [vmem:[#allocation73_spill] sm:$0xff] %v5860_v51  ;;  %v3136_v57 = vadd.f32 %v5797_v0, %v2993_v12  ;;  %v2117_v56 = vadd.f32 %v1956_v13, %v4549_v35  ;;  %v2118_v39 = vadd.f32 %v1956_v13, %v4551_v38  ;;  %v2717_v15 = vmul.f32 1.442695, %v5860_v51  ;;  %v6542_v61 = vld [vmem:[#allocation80_spill] sm:$0xff] }
 0x2ae   :  { %3105 = vst [vmem:[#allocation9 + $0x140] sm:$0xff] %v2993_v12  ;;  %v3074_v40 = vsel %vm3042_vm1, 0.0, %v2994_v29  ;;  %v1108_v54 = vmul.f32 1.442695, %v1065_v16  ;;  %3725 = vlog2.f32 %v971_v45  ;;  %v2719_v0 = vmul.f32 1.442695, %v5863_v17 }
 0x2af   :  { %6539 = vst [vmem:[#allocation81_spill] sm:$0xff] %v5863_v17  ;;  %v3720_v2 = vpop.eup %3719  ;;  %v5871_v11 = vadd.f32 %v3136_v57, %v3074_v40  ;;  %v2181_v24 = vsub.f32 %v2117_v56, %v2149_v1  ;;  %v2182_v52 = vsub.f32 %v2118_v39, %v2150_v37  ;;  %3727 = vpow2.f32 %v2717_v15 }
 0x2b0   :  { %3106 = vst [vmem:[#allocation9 + $0x148] sm:$0xff] %v3074_v40  ;;  %v5874_v41 = vpop.eup %3721  ;;  %v2302_v26 = vmul.f32 0.6931472, %v3720_v2  ;;  %v471_v55 = vmul.f32 1e-05, %v446_v19  ;;  %v5878_v22 = vadd.f32 %v5434_v49, %v6541_v30  ;;  %3729 = vpow2.f32 %v2719_v0 }
 0x2b1   :  { %6540 = vst [vmem:[#allocation74_spill] sm:$0xff] %v5874_v41  ;;  %v3724_v13 = vpop.eup %3723  ;;  %v2213_v45 = vmax.f32 %v2181_v24, 0.0  ;;  %v2214_v12 = vmax.f32 %v2182_v52, 0.0  ;;  %v5882_v29 = vadd.f32 %v5434_v49, %v6542_v61  ;;  %3731 = vpow2.f32 %v1108_v54 }
 0x2b2   :  { %v2304_v1 = vmul.f32 0.6931472, %v3724_v13  ;;  %v2355_v16 = vmul.f32 -50.5, %v2302_v26  ;;  %v973_v37 = vadd.f32 1.0, %v941_v32  ;;  %v1891_v39 = vadd.f32 %v471_v55, %v6526_v60 }
 0x2b3   :  { %v2501_v57 = vmul.f32 100.0, %v2213_v45  ;;  %v2502_v56 = vmul.f32 100.0, %v2214_v12  ;;  %v1892_v19 = vadd.f32 %v5827_v18, %v471_v55  ;;  %v1309_v15 = vmul.f32 0.6931472, %v3718_v33 }
 0x2b4   :  { %v3726_v40 = vpop.eup %3725  ;;  %v2356_v2 = vmul.f32 -50.5, %v2304_v1  ;;  %v2397_v0 = vmul.f32 1.442695, %v2355_v16  ;;  %3733 = vlog2.f32 %v973_v37  ;;  %v2229_v31 = vmul.f32 0.01, %v1891_v39  ;;  %v2021_v39 = vpop.f32.mrf.mxu2 }
 0x2b5   :  { %v2533_v24 = vadd.f32 1.0, %v2501_v57  ;;  %v2534_v52 = vadd.f32 1.0, %v2502_v56  ;;  %v1017_v10 = vmul.f32 0.6931472, %v3726_v40  ;;  %v5886_v28 = vpop.eup %3727  ;;  %v2230_v32 = vmul.f32 0.01, %v1892_v19  ;;  %v2086_v19 = vpop.f32.mrf.mxu3 }
 0x2b6   :  { %3735 = vpow2.f32 %v2397_v0  ;;  %v2399_v54 = vmul.f32 1.442695, %v2356_v2  ;;  %v943_v26 = vmul.f32 0.01, %v5878_v22  ;;  %v5889_v13 = vpop.eup %3729  ;;  %v2261_v18 = vadd.f32 1.0, %v2229_v31  ;;  %v1958_v2 = vpop.xlane.xlu2 %1957 }
 0x2b7   :  { %3737 = vlog2.f32 %v2533_v24  ;;  %v1067_v60 = vmul.f32 -50.5, %v1017_v10  ;;  %v945_v33 = vmul.f32 0.01, %v5882_v29  ;;  %v3732_v55 = vpop.eup %3731  ;;  %v5892_v45 = vmul.f32 -0.505, %v1309_v15  ;;  %v6544_v24 = vld [vmem:[#allocation60_spill] sm:$0xff] }
 0x2b8   :  { %v1831_v12 = vadd.f32 %v5848_v27, %v5660_v6  ;;  %3739 = vpow2.f32 %v2399_v54  ;;  %v5897_v1 = vmul.f32 0.6931472, %v5514_v23  ;;  %v1161_v37 = vmul.f32 2.5003695, %v3732_v55  ;;  %v6546_v15 = vld [vmem:[#allocation29_spill] sm:$0xff] }
 0x2b9   :  { %6543 = vst [vmem:[#allocation46_spill] sm:$0xff] %v5892_v45  ;;  %3741 = vlog2.f32 %v2534_v52  ;;  %v1112_v57 = vmul.f32 1.442695, %v1067_v60  ;;  %v2262_v10 = vadd.f32 1.0, %v2230_v32  ;;  %v975_v40 = vadd.f32 1.0, %v943_v26  ;;  %v6545_v32 = vld [vmem:[#allocation77_spill] sm:$0xff] }
 0x2ba   :  { %v3734_v56 = vpop.eup %3733  ;;  %3743 = vlog2.f32 %v2261_v18  ;;  %v1481_v6 = vsub.f32 1.0, %v1161_v37  ;;  %v2151_v27 = vmul.f32 2.0, %v2021_v39  ;;  %v977_v23 = vadd.f32 1.0, %v945_v33 }
 0x2bb   :  { %v1449_v54 = vmul.f32 %v6544_v24, %v1161_v37  ;;  %v2152_v55 = vmul.f32 2.0, %v2086_v19  ;;  %v2119_v52 = vadd.f32 %v1958_v2, %v4549_v35  ;;  %v2120_v60 = vadd.f32 %v1958_v2, %v4551_v38  ;;  %v6547_v35 = vld [vmem:[#allocation79_spill] sm:$0xff] }
 0x2bc   :  { %v3736_v0 = vpop.eup %3735  ;;  %v1641_v18 = vmul.f32 %v6545_v32, %v1481_v6  ;;  %3745 = vpow2.f32 %v1112_v57  ;;  %v1021_v26 = vmul.f32 0.6931472, %v3734_v56  ;;  %vm3044_vm2 = vcmp.eq.s32.totalorder %v6474_v44, %v6546_v15  ;;  %v6548_v32 = vld [vmem:[#allocation15_spill] sm:$0xff] }
 0x2bd   :  { %v3738_v16 = vpop.eup %3737  ;;  %v2451_v31 = vmul.f32 2.5003695, %v3736_v0  ;;  %3747 = vlog2.f32 %v2262_v10  ;;  %v2183_v33 = vsub.f32 %v2119_v52, %v2151_v27  ;;  %v2184_v7 = vsub.f32 %v2120_v60, %v2152_v55 }
 0x2be   :  { %v3740_v41 = vpop.eup %3739  ;;  %v2594_v39 = vmul.f32 0.6931472, %v3738_v16  ;;  %v1673_v19 = vadd.f32 %v1641_v18, %v1449_v54  ;;  %3749 = vlog2.f32 %v975_v40  ;;  %v6554_v15 = vsub.f32 1.0, %v5889_v13  ;;  %v6555_v13 = vld [vmem:[#allocation42_spill] sm:$0xff] }
 0x2bf   :  { %v3742_v37 = vpop.eup %3741  ;;  %v2452_v24 = vmul.f32 2.5003695, %v3740_v41  ;;  %v2739_v63 = vmul.f32 %v6547_v35, %v2451_v31  ;;  %v2771_v38 = vsub.f32 1.0, %v2451_v31  ;;  %v2215_v0 = vmax.f32 %v2183_v33, 0.0  ;;  %v6550_v31 = vld [vmem:[#allocation22_spill] sm:$0xff] }
 0x2c0   :  { %v3744_v2 = vpop.eup %3743  ;;  %v2596_v17 = vmul.f32 0.6931472, %v3742_v37  ;;  %v2629_v6 = vmul.f32 -0.505, %v2594_v39  ;;  %v2216_v57 = vmax.f32 %v2184_v7, 0.0  ;;  %v1705_v56 = vsub.f32 0.0, %v1673_v19 }
 0x2c1   :  { %v2740_v45 = vmul.f32 %v6548_v32, %v2452_v24  ;;  %v2772_v51 = vsub.f32 1.0, %v2452_v24  ;;  %v2931_v16 = vmul.f32 %v6549_v5, %v2771_v38  ;;  %v2306_v55 = vmul.f32 0.6931472, %v3744_v2  ;;  %v3900_v19 = vld [vmem:[#allocation9 + $0x60] sm:$0xff] }
 0x2c2   :  { %v2630_v10 = vmul.f32 -0.505, %v2596_v17  ;;  %v5911_v27 = vadd.f32 -1.1647458, %v2629_v6  ;;  %v3746_v41 = vpop.eup %3745  ;;  %1801 = vst [vmem:[#allocation9 + $0x58] sm:$0xff] %v1705_v56  ;;  %v1832_v54 = vadd.f32 %v1831_v12, %v1705_v56  ;;  %v2503_v18 = vmul.f32 100.0, %v2215_v0 }
 0x2c3   :  { %v2932_v52 = vmul.f32 %v6550_v31, %v2772_v51  ;;  %v2963_v60 = vadd.f32 %v2931_v16, %v2739_v63  ;;  %v3748_v39 = vpop.eup %3747  ;;  %v1163_v37 = vmul.f32 2.5003695, %v3746_v41  ;;  %3751 = vlog2.f32 %v977_v23  ;;  %v6551_v12 = vld [vmem:[#allocation72_spill] sm:$0xff]  ;;  %v6552_v23 = vld [vmem:[#allocation45_spill] sm:$0xff] }
 0x2c4   :  { %v5914_v7 = vadd.f32 -1.1647458, %v2630_v10  ;;  %v2721_v33 = vmul.f32 1.442695, %v5911_v27  ;;  %v1833_v24 = vadd.f32 %v3900_v19, %v1832_v54  ;;  %v2308_v35 = vmul.f32 0.6931472, %v3748_v39  ;;  %v3750_v56 = vpop.eup %3749  ;;  %v448_v10 = vpop.xlane.xlu0 %447 }
 0x2c5   :  { %v2964_v5 = vadd.f32 %v2932_v52, %v2740_v45  ;;  %v2995_v17 = vsub.f32 0.0, %v2963_v60  ;;  %v1451_v38 = vmul.f32 %v6551_v12, %v1163_v37  ;;  %v1483_v51 = vsub.f32 1.0, %v1163_v37 }
 0x2c6   :  { %3753 = vpow2.f32 %v2721_v33  ;;  %v2723_v40 = vmul.f32 1.442695, %v5914_v7  ;;  %v2357_v6 = vmul.f32 -50.5, %v2306_v55  ;;  %v2358_v0 = vmul.f32 -50.5, %v2308_v35 }
 0x2c7   :  { %v2996_v63 = vsub.f32 0.0, %v2964_v5  ;;  %3107 = vst [vmem:[#allocation9 + $0x150] sm:$0xff] %v2995_v17  ;;  %v3138_v2 = vadd.f32 %v5871_v11, %v2995_v17  ;;  %v1643_v45 = vmul.f32 %v6552_v23, %v1483_v51  ;;  %v2504_v32 = vmul.f32 100.0, %v2216_v57 }
 0x2c8   :  { %3755 = vpow2.f32 %v2723_v40  ;;  %v2535_v16 = vadd.f32 1.0, %v2503_v18  ;;  %v2401_v54 = vmul.f32 1.442695, %v2357_v6  ;;  %v2403_v31 = vmul.f32 1.442695, %v2358_v0 }
 0x2c9   :  { %v3076_v41 = vsel %vm3044_vm2, 0.0, %v2996_v63  ;;  %v1069_v52 = vmul.f32 -50.5, %v1021_v26  ;;  %v3752_v60 = vpop.eup %3751  ;;  %v1675_v11 = vadd.f32 %v1643_v45, %v1451_v38  ;;  %v2536_v55 = vadd.f32 1.0, %v2504_v32 }
 0x2ca   :  { %3108 = vst [vmem:[#allocation9 + $0x158] sm:$0xff] %v3076_v41  ;;  %v5924_v39 = vadd.f32 %v3138_v2, %v3076_v41  ;;  %3757 = vlog2.f32 %v2535_v16  ;;  %v6553_v33 = vsub.f32 1.0, %v5886_v28  ;;  %v472_v57 = vmul.f32 1e-05, %v448_v10 }
 0x2cb   :  { %3759 = vpow2.f32 %v2401_v54  ;;  %v1116_v18 = vmul.f32 1.442695, %v1069_v52  ;;  %v2852_v17 = vadd.f32 1e-12, %v6554_v15  ;;  %v1707_v19 = vsub.f32 0.0, %v1675_v11  ;;  %v6556_v54 = vld [vmem:[#allocation30_spill] sm:$0xff] }
 0x2cc   :  { %v2851_v37 = vadd.f32 1e-12, %v6553_v33  ;;  %v3754_v5 = vpop.eup %3753  ;;  %3761 = vpow2.f32 %v2403_v31  ;;  %v1025_v26 = vmul.f32 0.6931472, %v3750_v56  ;;  %v1893_v40 = vadd.f32 %v472_v57, %v6529_v50  ;;  %v3901_v15 = vld [vmem:[#allocation9 + $0x70] sm:$0xff] }
 0x2cd   :  { %v2821_v35 = vsub.f32 1.0, %v3754_v5  ;;  %3763 = vlog2.f32 %v2536_v55  ;;  %v1894_v12 = vadd.f32 %v5836_v21, %v472_v57  ;;  %1803 = vst [vmem:[#allocation9 + $0x68] sm:$0xff] %v1707_v19  ;;  %v1834_v28 = vadd.f32 %v1833_v24, %v1707_v19 }
 0x2ce   :  { %v3756_v38 = vpop.eup %3755  ;;  %3765 = vpow2.f32 %v1116_v18  ;;  %v1071_v51 = vmul.f32 -50.5, %v1025_v26  ;;  %v1029_v63 = vmul.f32 0.6931472, %v3752_v60  ;;  %v2231_v0 = vmul.f32 0.01, %v1893_v40  ;;  %v450_v40 = vpop.xlane.xlu0 %449 }
 0x2cf   :  { %v2822_v2 = vsub.f32 1.0, %v3756_v38  ;;  %v2853_v6 = vadd.f32 1e-12, %v2821_v35  ;;  %v5934_v23 = vadd.f32 %v5434_v49, %v6555_v13  ;;  %3767 = vlog2.f32 %v2851_v37  ;;  %v6557_v37 = vld [vmem:[#allocation48_spill] sm:$0xff] }
 0x2d0   :  { %v3758_v56 = vpop.eup %3757  ;;  %v2232_v45 = vmul.f32 0.01, %v1894_v12  ;;  %v1120_v32 = vmul.f32 1.442695, %v1071_v51  ;;  %v1073_v50 = vmul.f32 -50.5, %v1029_v63  ;;  %3769 = vlog2.f32 %v2852_v17 }
 0x2d1   :  { %v3760_v16 = vpop.eup %3759  ;;  %v2854_v21 = vadd.f32 1e-12, %v2822_v2  ;;  %v2598_v10 = vmul.f32 0.6931472, %v3758_v56  ;;  %v2263_v24 = vadd.f32 1.0, %v2231_v0  ;;  %vm3046_vm3 = vcmp.eq.s32.totalorder %v6474_v44, %v6556_v54 }
 0x2d2   :  { %v3762_v41 = vpop.eup %3761  ;;  %v2453_v31 = vmul.f32 2.5003695, %v3760_v16  ;;  %v2264_v52 = vadd.f32 1.0, %v2232_v45  ;;  %v5939_v60 = vmul.f32 0.6931472, %v5577_v8  ;;  %3771 = vpow2.f32 %v1120_v32 }
 0x2d3   :  { %v3764_v11 = vpop.eup %3763  ;;  %3773 = vlog2.f32 %v2853_v6  ;;  %v2454_v55 = vmul.f32 2.5003695, %v3762_v41  ;;  %v2631_v33 = vmul.f32 -0.505, %v2598_v10  ;;  %v5943_v57 = vadd.f32 %v5434_v49, %v6557_v37  ;;  %v6558_v10 = vld [vmem:[#allocation52_spill] sm:$0xff] }
 0x2d4   :  { %v3766_v18 = vpop.eup %3765  ;;  %v2773_v5 = vsub.f32 1.0, %v2453_v31  ;;  %v1835_v17 = vadd.f32 %v3901_v15, %v1834_v28  ;;  %3775 = vlog2.f32 %v2263_v24  ;;  %v1124_v19 = vmul.f32 1.442695, %v1073_v50 }
 0x2d5   :  { %3777 = vlog2.f32 %v2854_v21  ;;  %v2741_v26 = vmul.f32 %v5407_v34, %v2453_v31  ;;  %v2774_v8 = vsub.f32 1.0, %v2454_v55  ;;  %v1165_v35 = vmul.f32 2.5003695, %v3766_v18  ;;  %v5946_v12 = vpop.eup %3767 }
 0x2d6   :  { %v2933_v38 = vmul.f32 %v5501_v62, %v2773_v5  ;;  %v2600_v51 = vmul.f32 0.6931472, %v3764_v11  ;;  %3779 = vlog2.f32 %v2264_v52  ;;  %v473_v63 = vmul.f32 1e-05, %v450_v40  ;;  %v5949_v2 = vpop.eup %3769 }
 0x2d7   :  { %v2742_v6 = vmul.f32 %v5399_v3, %v2454_v55  ;;  %v2934_v28 = vmul.f32 %v5832_v46, %v2774_v8  ;;  %v5953_v0 = vadd.f32 -1.1647458, %v2631_v33  ;;  %v1485_v56 = vsub.f32 1.0, %v1165_v35 }
 0x2d8   :  { %v3772_v34 = vpop.eup %3771  ;;  %v2965_v45 = vadd.f32 %v2933_v38, %v2741_v26  ;;  %v1895_v32 = vadd.f32 %v473_v63, %v6541_v30  ;;  %v1896_v50 = vadd.f32 %v5878_v22, %v473_v63  ;;  %v947_v62 = vmul.f32 0.01, %v5934_v23 }
 0x2d9   :  { %v5958_v16 = vpop.eup %3773  ;;  %v2966_v21 = vadd.f32 %v2934_v28, %v2742_v6  ;;  %v1453_v24 = vmul.f32 %v6558_v10, %v1165_v35  ;;  %v1645_v3 = vmul.f32 %v5423_v47, %v1485_v56  ;;  %v1167_v41 = vmul.f32 2.5003695, %v3772_v34  ;;  %v3902_v10 = vld [vmem:[#allocation9 + $0x80] sm:$0xff] }
 0x2da   :  { %v3776_v46 = vpop.eup %3775  ;;  %v2997_v31 = vsub.f32 0.0, %v2965_v45  ;;  %v2632_v52 = vmul.f32 -0.505, %v2600_v51  ;;  %v2233_v11 = vmul.f32 0.01, %v1895_v32  ;;  %3781 = vpow2.f32 %v1124_v19 }
 0x2db   :  { %v5962_v55 = vpop.eup %3777  ;;  %v2998_v30 = vsub.f32 0.0, %v2966_v21  ;;  %v2725_v22 = vmul.f32 1.442695, %v5953_v0  ;;  %v1677_v33 = vadd.f32 %v1645_v3, %v1453_v24  ;;  %v2310_v18 = vmul.f32 0.6931472, %v3776_v46  ;;  %v452_v3 = vpop.xlane.xlu0 %451 }
 0x2dc   :  { %v3780_v5 = vpop.eup %3779  ;;  %3109 = vst [vmem:[#allocation9 + $0x160] sm:$0xff] %v2997_v31  ;;  %v3140_v15 = vadd.f32 %v5924_v39, %v2997_v31  ;;  %v1455_v26 = vmul.f32 %v5395_v25, %v1167_v41  ;;  %v1487_v47 = vsub.f32 1.0, %v1167_v41  ;;  %v2234_v8 = vmul.f32 0.01, %v1896_v50 }
 0x2dd   :  { %v3078_v35 = vsel %vm3046_vm3, 0.0, %v2998_v30  ;;  %v1709_v19 = vsub.f32 0.0, %v1677_v33  ;;  %v2312_v40 = vmul.f32 0.6931472, %v3780_v5  ;;  %v2359_v38 = vmul.f32 -50.5, %v2310_v18 }
 0x2de   :  { %3110 = vst [vmem:[#allocation9 + $0x168] sm:$0xff] %v3078_v35  ;;  %v5970_v51 = vadd.f32 %v3140_v15, %v3078_v35  ;;  %v1647_v63 = vmul.f32 %v5492_v48, %v1487_v47  ;;  %v2265_v6 = vadd.f32 1.0, %v2233_v11  ;;  %v2266_v28 = vadd.f32 1.0, %v2234_v8  ;;  %v6559_v11 = vld [vmem:[#allocation16_spill] sm:$0xff] }
 0x2df   :  { %v5973_v56 = vadd.f32 -1.1647458, %v2632_v52  ;;  %1805 = vst [vmem:[#allocation9 + $0x78] sm:$0xff] %v1709_v19  ;;  %v1836_v25 = vadd.f32 %v1835_v17, %v1709_v19  ;;  %v2360_v39 = vmul.f32 -50.5, %v2312_v40  ;;  %v2405_v34 = vmul.f32 1.442695, %v2359_v38 }
 0x2e0   :  { %v3782_v45 = vpop.eup %3781  ;;  %v1679_v32 = vadd.f32 %v1647_v63, %v1455_v26  ;;  %3783 = vlog2.f32 %v2265_v6  ;;  %v979_v54 = vadd.f32 1.0, %v947_v62  ;;  %v953_v50 = vmul.f32 0.01, %v5943_v57  ;;  %v3903_v63 = vld [vmem:[#allocation9 + $0x90] sm:$0xff] }
 0x2e1   :  { %3785 = vpow2.f32 %v2405_v34  ;;  %v2407_v21 = vmul.f32 1.442695, %v2360_v39  ;;  %v1837_v24 = vadd.f32 %v3902_v10, %v1836_v25  ;;  %v1169_v48 = vmul.f32 2.5003695, %v3782_v45  ;;  %v6560_v39 = vld [vmem:[#allocation31_spill] sm:$0xff]  ;;  %v6561_v10 = vld [vmem:[#allocation21_spill] sm:$0xff] }
 0x2e2   :  { %v1711_v41 = vsub.f32 0.0, %v1679_v32  ;;  %3787 = vlog2.f32 %v2266_v28  ;;  %v474_v46 = vmul.f32 1e-05, %v452_v3  ;;  %v985_v31 = vadd.f32 1.0, %v953_v50 }
 0x2e3   :  { %v2727_v17 = vmul.f32 1.442695, %v5973_v56  ;;  %3789 = vpow2.f32 %v2407_v21  ;;  %v1489_v52 = vsub.f32 1.0, %v1169_v48  ;;  %v5979_v30 = vadd.f32 %v5434_v49, %v6559_v11  ;;  %v454_v21 = vpop.xlane.xlu0 %453 }
 0x2e4   :  { %1807 = vst [vmem:[#allocation9 + $0x88] sm:$0xff] %v1711_v41  ;;  %v1838_v62 = vadd.f32 %v1837_v24, %v1711_v41  ;;  %v1897_v33 = vadd.f32 %v474_v46, %v6542_v61  ;;  %v1898_v18 = vadd.f32 %v5882_v29, %v474_v46  ;;  %3791 = vlog2.f32 %v979_v54 }
 0x2e5   :  { %3793 = vpow2.f32 %v2725_v22  ;;  %v1457_v5 = vmul.f32 %v5427_v4, %v1169_v48  ;;  %v1649_v15 = vmul.f32 %v5516_v14, %v1489_v52  ;;  %v949_v26 = vmul.f32 0.01, %v5979_v30 }
 0x2e6   :  { %v3784_v47 = vpop.eup %3783  ;;  %v5987_v8 = vmul.f32 0.6931472, %v5673_v20  ;;  %v2235_v35 = vmul.f32 0.01, %v1897_v33  ;;  %v2236_v19 = vmul.f32 0.01, %v1898_v18  ;;  %3795 = vlog2.f32 %v985_v31 }
 0x2e7   :  { %v3786_v40 = vpop.eup %3785  ;;  %v2314_v38 = vmul.f32 0.6931472, %v3784_v47  ;;  %v1681_v61 = vadd.f32 %v1649_v15, %v1457_v5  ;;  %v1839_v29 = vadd.f32 %v3903_v63, %v1838_v62  ;;  %v981_v6 = vadd.f32 1.0, %v949_v26  ;;  %v6562_v18 = vld [vmem:[#allocation83_spill] sm:$0xff] }
 0x2e8   :  { %v3788_v22 = vpop.eup %3787  ;;  %3797 = vpow2.f32 %v2727_v17  ;;  %v2455_v4 = vmul.f32 2.5003695, %v3786_v40  ;;  %v2267_v28 = vadd.f32 1.0, %v2235_v35  ;;  %v2268_v14 = vadd.f32 1.0, %v2236_v19 }
 0x2e9   :  { %v3790_v25 = vpop.eup %3789  ;;  %vm3048_vm4 = vcmp.eq.s32.totalorder %v6474_v44, %v6560_v39  ;;  %v2316_v20 = vmul.f32 0.6931472, %v3788_v22  ;;  %v2361_v34 = vmul.f32 -50.5, %v2314_v38  ;;  %v1713_v45 = vsub.f32 0.0, %v1681_v61 }
 0x2ea   :  { %3799 = vlog2.f32 %v981_v6  ;;  %v3792_v32 = vpop.eup %3791  ;;  %v2456_v54 = vmul.f32 2.5003695, %v3790_v25  ;;  %v2775_v50 = vsub.f32 1.0, %v2455_v4  ;;  %v5993_v24 = vadd.f32 %v5434_v49, %v6561_v10 }
 0x2eb   :  { %3801 = vlog2.f32 %v2267_v28  ;;  %v5995_v3 = vpop.eup %3793  ;;  %v2362_v48 = vmul.f32 -50.5, %v2316_v20  ;;  %v2409_v41 = vmul.f32 1.442695, %v2361_v34  ;;  %1809 = vst [vmem:[#allocation9 + $0x98] sm:$0xff] %v1713_v45  ;;  %v1840_v46 = vadd.f32 %v1839_v29, %v1713_v45 }
 0x2ec   :  { %3803 = vlog2.f32 %v2268_v14  ;;  %v3796_v31 = vpop.eup %3795  ;;  %v2743_v17 = vmul.f32 %v5437_v9, %v2455_v4  ;;  %v2776_v52 = vsub.f32 1.0, %v2456_v54  ;;  %v2935_v62 = vmul.f32 %v5560_v43, %v2775_v50 }
 0x2ed   :  { %v475_v33 = vmul.f32 1e-05, %v454_v21  ;;  %v2744_v5 = vmul.f32 %v6562_v18, %v2456_v54  ;;  %3805 = vpow2.f32 %v2409_v41  ;;  %v2411_v15 = vmul.f32 1.442695, %v2362_v48 }
 0x2ee   :  { %v1033_v26 = vmul.f32 0.6931472, %v3792_v32  ;;  %v6000_v47 = vpop.eup %3797  ;;  %v2936_v35 = vmul.f32 %v5897_v1, %v2776_v52  ;;  %v2967_v19 = vadd.f32 %v2935_v62, %v2743_v17  ;;  %v6006_v9 = vmul.f32 0.6931472, %v5704_v42  ;;  %v6564_v62 = vld [vmem:[#allocation32_spill] sm:$0xff] }
 0x2ef   :  { %v1899_v40 = vadd.f32 %v475_v33, %v6555_v13  ;;  %v1900_v38 = vadd.f32 %v5934_v23, %v475_v33  ;;  %3807 = vpow2.f32 %v2411_v15  ;;  %v1045_v63 = vmul.f32 0.6931472, %v3796_v31  ;;  %v6563_v13 = vld [vmem:[#allocation19_spill] sm:$0xff] }
 0x2f0   :  { %v3800_v61 = vpop.eup %3799  ;;  %v1075_v43 = vmul.f32 -50.5, %v1033_v26  ;;  %v2968_v6 = vadd.f32 %v2936_v35, %v2744_v5  ;;  %v2999_v22 = vsub.f32 0.0, %v2967_v19  ;;  %v955_v20 = vmul.f32 0.01, %v5993_v24  ;;  %v3904_v35 = vld [vmem:[#allocation9 + $0xa0] sm:$0xff]  ;;  %v460_v19 = vpop.xlane.xlu1 %459 }
 0x2f1   :  { %v3802_v29 = vpop.eup %3801  ;;  %v2237_v4 = vmul.f32 0.01, %v1899_v40  ;;  %v2238_v28 = vmul.f32 0.01, %v1900_v38  ;;  %v6011_v23 = vadd.f32 %v5434_v49, %v6563_v13  ;;  %v1081_v48 = vmul.f32 -50.5, %v1045_v63  ;;  %v6565_v63 = vld [vmem:[#allocation86_spill] sm:$0xff] }
 0x2f2   :  { %v3804_v14 = vpop.eup %3803  ;;  %v2318_v25 = vmul.f32 0.6931472, %v3802_v29  ;;  %v1128_v1 = vmul.f32 1.442695, %v1075_v43  ;;  %v3000_v34 = vsub.f32 0.0, %v2968_v6  ;;  %3111 = vst [vmem:[#allocation9 + $0x170] sm:$0xff] %v2999_v22  ;;  %v3142_v42 = vadd.f32 %v5970_v51, %v2999_v22 }
 0x2f3   :  { %v2320_v45 = vmul.f32 0.6931472, %v3804_v14  ;;  %v2269_v32 = vadd.f32 1.0, %v2237_v4  ;;  %v3806_v54 = vpop.eup %3805  ;;  %v2270_v21 = vadd.f32 1.0, %v2238_v28  ;;  %vm3050_vm5 = vcmp.eq.s32.totalorder %v6474_v44, %v6564_v62 }
 0x2f4   :  { %v2363_v50 = vmul.f32 -50.5, %v2318_v25  ;;  %3809 = vpow2.f32 %v1128_v1  ;;  %v3080_v41 = vsel %vm3048_vm4, 0.0, %v3000_v34  ;;  %v2457_v31 = vmul.f32 2.5003695, %v3806_v54  ;;  %v6566_v34 = vld [vmem:[#allocation87_spill] sm:$0xff] }
 0x2f5   :  { %v2364_v17 = vmul.f32 -50.5, %v2320_v45  ;;  %3811 = vlog2.f32 %v2269_v32  ;;  %v3808_v52 = vpop.eup %3807  ;;  %3112 = vst [vmem:[#allocation9 + $0x178] sm:$0xff] %v3080_v41  ;;  %v3143_v51 = vadd.f32 %v3142_v42, %v3080_v41  ;;  %v6020_v18 = vmul.f32 0.01, %v6011_v23  ;;  %v6567_v41 = vld [vmem:[#allocation85_spill] sm:$0xff] }
 0x2f6   :  { %v2413_v33 = vmul.f32 1.442695, %v2363_v50  ;;  %3813 = vlog2.f32 %v2270_v21  ;;  %v2458_v5 = vmul.f32 2.5003695, %v3808_v52  ;;  %v2777_v15 = vsub.f32 1.0, %v2457_v31 }
 0x2f7   :  { %v2415_v26 = vmul.f32 1.442695, %v2364_v17  ;;  %v6022_v39 = vadd.f32 %v3904_v35, %v1840_v46  ;;  %v478_v40 = vmul.f32 1e-05, %v460_v19  ;;  %v1140_v38 = vmul.f32 1.442695, %v1081_v48 }
 0x2f8   :  { %3815 = vpow2.f32 %v2413_v33  ;;  %v987_v43 = vadd.f32 1.0, %v955_v20  ;;  %v2745_v29 = vmul.f32 %v6565_v63, %v2457_v31  ;;  %v2778_v6 = vsub.f32 1.0, %v2458_v5 }
 0x2f9   :  { %v2937_v22 = vmul.f32 %v5579_v36, %v2777_v15  ;;  %3817 = vpow2.f32 %v2415_v26  ;;  %v6027_v28 = vmul.f32 0.6931472, %v5946_v12  ;;  %v1905_v14 = vadd.f32 %v478_v40, %v6557_v37  ;;  %v6568_v15 = vld [vmem:[#allocation34_spill] sm:$0xff] }
 0x2fa   :  { %v3810_v4 = vpop.eup %3809  ;;  %v1906_v46 = vadd.f32 %v5943_v57, %v478_v40  ;;  %v1037_v25 = vmul.f32 0.6931472, %v3800_v61  ;;  %v2746_v42 = vmul.f32 %v6566_v34, %v2458_v5  ;;  %v2938_v20 = vmul.f32 %v5939_v60, %v2778_v6  ;;  %v6569_v34 = vld [vmem:[#allocation24_spill] sm:$0xff] }
 0x2fb   :  { %v3812_v1 = vpop.eup %3811  ;;  %v2969_v45 = vadd.f32 %v2937_v22, %v2745_v29  ;;  %v1171_v32 = vmul.f32 2.5003695, %v3810_v4  ;;  %v2243_v36 = vmul.f32 0.01, %v1905_v14  ;;  %3819 = vlog2.f32 %v987_v43  ;;  %v456_v4 = vpop.xlane.xlu0 %455 }
 0x2fc   :  { %v3814_v54 = vpop.eup %3813  ;;  %v2322_v50 = vmul.f32 0.6931472, %v3812_v1  ;;  %v2244_v21 = vmul.f32 0.01, %v1906_v46  ;;  %v2970_v48 = vadd.f32 %v2938_v20, %v2746_v42  ;;  %vm3052_vm6 = vcmp.eq.s32.totalorder %v6474_v44, %v6568_v15  ;;  %v6570_v42 = vld [vmem:[#allocation62_spill] sm:$0xff] }
 0x2fd   :  { %v3001_v12 = vsub.f32 0.0, %v2969_v45  ;;  %v1459_v31 = vmul.f32 %v6567_v41, %v1171_v32  ;;  %v1491_v37 = vsub.f32 1.0, %v1171_v32  ;;  %v2324_v57 = vmul.f32 0.6931472, %v3814_v54  ;;  %v6571_v54 = vld [vmem:[#allocation57_spill] sm:$0xff] }
 0x2fe   :  { %v3816_v17 = vpop.eup %3815  ;;  %v2365_v61 = vmul.f32 -50.5, %v2322_v50  ;;  %v2275_v52 = vadd.f32 1.0, %v2243_v36  ;;  %v2276_v33 = vadd.f32 1.0, %v2244_v21  ;;  %v3002_v60 = vsub.f32 0.0, %v2970_v48 }
 0x2ff   :  { %v3818_v5 = vpop.eup %3817  ;;  %3113 = vst [vmem:[#allocation9 + $0x180] sm:$0xff] %v3001_v12  ;;  %v3144_v26 = vadd.f32 %v3143_v51, %v3001_v12  ;;  %v2459_v35 = vmul.f32 2.5003695, %v3816_v17  ;;  %v1651_v19 = vmul.f32 %v5568_v58, %v1491_v37  ;;  %v2366_v43 = vmul.f32 -50.5, %v2324_v57 }
 0x300   :  { %v2460_v40 = vmul.f32 2.5003695, %v3818_v5  ;;  %v2417_v63 = vmul.f32 1.442695, %v2365_v61  ;;  %3821 = vlog2.f32 %v2275_v52  ;;  %v3082_v29 = vsel %vm3050_vm5, 0.0, %v3002_v60 }
 0x301   :  { %v2779_v6 = vsub.f32 1.0, %v2459_v35  ;;  %v1683_v22 = vadd.f32 %v1651_v19, %v1459_v31  ;;  %3823 = vpow2.f32 %v1140_v38  ;;  %v3820_v14 = vpop.eup %3819  ;;  %3114 = vst [vmem:[#allocation9 + $0x188] sm:$0xff] %v3082_v29  ;;  %v3145_v46 = vadd.f32 %v3144_v26, %v3082_v29 }
 0x302   :  { %v2780_v1 = vsub.f32 1.0, %v2460_v40  ;;  %3825 = vpow2.f32 %v2417_v63  ;;  %v1077_v51 = vmul.f32 -50.5, %v1037_v25  ;;  %v2747_v58 = vmul.f32 %v6569_v34, %v2459_v35  ;;  %v6575_v34 = vld [vmem:[#allocation50_spill] sm:$0xff] }
 0x303   :  { %v2939_v20 = vmul.f32 %v6570_v42, %v2779_v6  ;;  %v1715_v45 = vsub.f32 0.0, %v1683_v22  ;;  %v2419_v32 = vmul.f32 1.442695, %v2366_v43  ;;  %v2748_v50 = vmul.f32 %v6571_v54, %v2460_v40  ;;  %v6573_v6 = vld [vmem:[#allocation35_spill] sm:$0xff] }
 0x304   :  { %v2940_v62 = vmul.f32 %v5987_v8, %v2780_v1  ;;  %3827 = vlog2.f32 %v2276_v33  ;;  %v476_v36 = vmul.f32 1e-05, %v456_v4  ;;  %v1049_v48 = vmul.f32 0.6931472, %v3820_v14 }
 0x305   :  { %v2971_v38 = vadd.f32 %v2939_v20, %v2747_v58  ;;  %1811 = vst [vmem:[#allocation9 + $0xa8] sm:$0xff] %v1715_v45  ;;  %v6045_v21 = vadd.f32 %v6022_v39, %v1715_v45  ;;  %3829 = vpow2.f32 %v2419_v32  ;;  %v1132_v41 = vmul.f32 1.442695, %v1077_v51  ;;  %v6574_v51 = vld [vmem:[#allocation25_spill] sm:$0xff]  ;;  %v462_v20 = vpop.xlane.xlu2 %461 }
 0x306   :  { %v3822_v25 = vpop.eup %3821  ;;  %v2972_v12 = vadd.f32 %v2940_v62, %v2748_v50  ;;  %v1901_v31 = vadd.f32 %v476_v36, %v6559_v11  ;;  %v1902_v37 = vadd.f32 %v5979_v30, %v476_v36  ;;  %v6050_v8 = vmul.f32 0.6931472, %v5949_v2  ;;  %v6572_v11 = vld [vmem:[#allocation58_spill] sm:$0xff] }
 0x307   :  { %v3824_v17 = vpop.eup %3823  ;;  %v3003_v57 = vsub.f32 0.0, %v2971_v38  ;;  %v2334_v61 = vmul.f32 0.6931472, %v3822_v25  ;;  %v983_v52 = vadd.f32 1.0, %v6020_v18  ;;  %3831 = vpow2.f32 %v1132_v41  ;;  %v6576_v25 = vld [vmem:[#allocation56_spill] sm:$0xff] }
 0x308   :  { %v3826_v33 = vpop.eup %3825  ;;  %v3004_v39 = vsub.f32 0.0, %v2972_v12  ;;  %v2239_v5 = vmul.f32 0.01, %v1901_v31  ;;  %v2240_v60 = vmul.f32 0.01, %v1902_v37  ;;  %v6055_v30 = vadd.f32 %v5434_v49, %v6572_v11 }
 0x309   :  { %3115 = vst [vmem:[#allocation9 + $0x190] sm:$0xff] %v3003_v57  ;;  %v3146_v26 = vadd.f32 %v3145_v46, %v3003_v57  ;;  %v2461_v35 = vmul.f32 2.5003695, %v3826_v33  ;;  %v2371_v19 = vmul.f32 -50.5, %v2334_v61  ;;  %v1083_v63 = vmul.f32 -50.5, %v1049_v48 }
 0x30a   :  { %v3828_v40 = vpop.eup %3827  ;;  %v3084_v2 = vsel %vm3052_vm6, 0.0, %v3004_v39  ;;  %v2271_v43 = vadd.f32 1.0, %v2239_v5  ;;  %v2272_v18 = vadd.f32 1.0, %v2240_v60  ;;  %vm3054_vm7 = vcmp.eq.s32.totalorder %v6474_v44, %v6573_v6  ;;  %v6577_v5 = vld [vmem:[#allocation37_spill] sm:$0xff] }
 0x30b   :  { %v3830_v29 = vpop.eup %3829  ;;  %3116 = vst [vmem:[#allocation9 + $0x198] sm:$0xff] %v3084_v2  ;;  %v3147_v22 = vadd.f32 %v3146_v26, %v3084_v2  ;;  %v2781_v4 = vsub.f32 1.0, %v2461_v35  ;;  %v2336_v14 = vmul.f32 0.6931472, %v3828_v40  ;;  %3833 = vlog2.f32 %v983_v52  ;;  %v6578_v40 = vld [vmem:[#allocation63_spill] sm:$0xff] }
 0x30c   :  { %v2462_v46 = vmul.f32 2.5003695, %v3830_v29  ;;  %v6062_v49 = vmul.f32 2.5003695, %v3824_v17  ;;  %v2429_v1 = vmul.f32 1.442695, %v2371_v19  ;;  %3835 = vlog2.f32 %v2271_v43  ;;  %v458_v17 = vpop.xlane.xlu0 %457 }
 0x30d   :  { %v2749_v15 = vmul.f32 %v6574_v51, %v2461_v35  ;;  %v2941_v58 = vmul.f32 %v6575_v34, %v2781_v4  ;;  %v2372_v42 = vmul.f32 -50.5, %v2336_v14  ;;  %3837 = vlog2.f32 %v2272_v18  ;;  %v3832_v45 = vpop.eup %3831 }
 0x30e   :  { %v2782_v32 = vsub.f32 1.0, %v2462_v46  ;;  %3839 = vpow2.f32 %v2429_v1  ;;  %v6067_v54 = vmul.f32 0.6931472, %v5818_v53  ;;  %v479_v50 = vmul.f32 1e-05, %v462_v20 }
 0x30f   :  { %v2973_v62 = vadd.f32 %v2941_v58, %v2749_v15  ;;  %v2431_v36 = vmul.f32 1.442695, %v2372_v42  ;;  %v1173_v38 = vmul.f32 2.5003695, %v3832_v45  ;;  %v1144_v48 = vmul.f32 1.442695, %v1083_v63 }
 0x310   :  { %v2750_v12 = vmul.f32 %v6576_v25, %v2462_v46  ;;  %v2942_v41 = vmul.f32 %v6006_v9, %v2782_v32  ;;  %v1907_v31 = vadd.f32 %v479_v50, %v6561_v10  ;;  %v1908_v37 = vadd.f32 %v5993_v24, %v479_v50  ;;  %v6579_v32 = vld [vmem:[#allocation84_spill] sm:$0xff] }
 0x311   :  { %v3834_v57 = vpop.eup %3833  ;;  %v3005_v61 = vsub.f32 0.0, %v2973_v62  ;;  %3841 = vpow2.f32 %v2431_v36  ;;  %v1493_v52 = vsub.f32 1.0, %v1173_v38  ;;  %v957_v53 = vmul.f32 0.01, %v6055_v30 }
 0x312   :  { %v3836_v33 = vpop.eup %3835  ;;  %v2974_v39 = vadd.f32 %v2942_v41, %v2750_v12  ;;  %v1461_v60 = vmul.f32 %v6577_v5, %v1173_v38  ;;  %v2245_v26 = vmul.f32 0.01, %v1907_v31  ;;  %v2246_v35 = vmul.f32 0.01, %v1908_v37  ;;  %v6580_v37 = vld [vmem:[#allocation71_spill] sm:$0xff] }
 0x313   :  { %v3838_v19 = vpop.eup %3837  ;;  %3117 = vst [vmem:[#allocation9 + $0x1a0] sm:$0xff] %v3005_v61  ;;  %v3148_v9 = vadd.f32 %v3147_v22, %v3005_v61  ;;  %v1653_v10 = vmul.f32 %v6578_v40, %v1493_v52  ;;  %v2326_v2 = vmul.f32 0.6931472, %v3836_v33  ;;  %v477_v24 = vmul.f32 1e-05, %v458_v17 }
 0x314   :  { %v3840_v43 = vpop.eup %3839  ;;  %v3006_v18 = vsub.f32 0.0, %v2974_v39  ;;  %v2328_v63 = vmul.f32 0.6931472, %v3838_v19  ;;  %v2277_v29 = vadd.f32 1.0, %v2245_v26  ;;  %v2278_v4 = vadd.f32 1.0, %v2246_v35  ;;  %v464_v39 = vpop.xlane.xlu0 %463  ;;  %v6581_v35 = vld [vmem:[#allocation73_spill] sm:$0xff] }
 0x315   :  { %v2467_v14 = vmul.f32 2.5003695, %v3840_v43  ;;  %v6076_v46 = vadd.f32 %v1653_v10, %v1461_v60  ;;  %v2367_v1 = vmul.f32 -50.5, %v2326_v2  ;;  %v1041_v51 = vmul.f32 0.6931472, %v3834_v57 }
 0x316   :  { %v3086_v15 = vsel %vm3054_vm7, 0.0, %v3006_v18  ;;  %v2368_v34 = vmul.f32 -50.5, %v2328_v63  ;;  %3843 = vlog2.f32 %v2277_v29  ;;  %v1903_v22 = vadd.f32 %v477_v24, %v6563_v13  ;;  %v6583_v18 = vld [vmem:[#allocation81_spill] sm:$0xff] }
 0x317   :  { %v3842_v58 = vpop.eup %3841  ;;  %3118 = vst [vmem:[#allocation9 + $0x1a8] sm:$0xff] %v3086_v15  ;;  %v6082_v42 = vadd.f32 %v3148_v9, %v3086_v15  ;;  %v1497_v20 = vsub.f32 1.0, %v6062_v49  ;;  %v1717_v45 = vsub.f32 0.0, %v6076_v46  ;;  %v1084_v50 = vmul.f32 -50.5, %v6579_v32  ;;  %v6582_v9 = vld [vmem:[#allocation46_spill] sm:$0xff] }
 0x318   :  { %v2787_v62 = vsub.f32 1.0, %v2467_v14  ;;  %v2421_v36 = vmul.f32 1.442695, %v2367_v1  ;;  %v2423_v38 = vmul.f32 1.442695, %v2368_v34  ;;  %3845 = vlog2.f32 %v2278_v4 }
 0x319   :  { %1813 = vst [vmem:[#allocation9 + $0xb8] sm:$0xff] %v1717_v45  ;;  %3847 = vpow2.f32 %v1144_v48  ;;  %v1079_v6 = vmul.f32 -50.5, %v1041_v51  ;;  %v1904_v13 = vadd.f32 %v6011_v23, %v477_v24  ;;  %v2241_v25 = vmul.f32 0.01, %v1903_v22  ;;  %v6584_v51 = vld [vmem:[#allocation38_spill] sm:$0xff] }
 0x31a   :  { %v2468_v12 = vmul.f32 2.5003695, %v3842_v58  ;;  %3849 = vpow2.f32 %v2421_v36  ;;  %v6091_v41 = vmul.f32 0.6931472, %v5845_v59  ;;  %v989_v31 = vadd.f32 1.0, %v957_v53  ;;  %v6585_v36 = vld [vmem:[#allocation20_spill] sm:$0xff] }
 0x31b   :  { %3851 = vpow2.f32 %v2423_v38  ;;  %v6094_v17 = vmul.f32 0.6931472, %v6580_v37  ;;  %v1136_v57 = vmul.f32 1.442695, %v1079_v6  ;;  %v2242_v61 = vmul.f32 0.01, %v1904_v13 }
 0x31c   :  { %v3844_v52 = vpop.eup %3843  ;;  %v2947_v33 = vmul.f32 %v6027_v28, %v2787_v62  ;;  %v2273_v48 = vadd.f32 1.0, %v2241_v25  ;;  %3853 = vlog2.f32 %v989_v31  ;;  %v1146_v23 = vmul.f32 1.442695, %v1084_v50 }
 0x31d   :  { %v2338_v5 = vmul.f32 0.6931472, %v3844_v52  ;;  %3855 = vpow2.f32 %v1136_v57  ;;  %v2274_v60 = vadd.f32 1.0, %v2242_v61  ;;  %v480_v26 = vmul.f32 1e-05, %v464_v39  ;;  %v6586_v61 = vld [vmem:[#allocation68_spill] sm:$0xff] }
 0x31e   :  { %v3846_v59 = vpop.eup %3845  ;;  %v2755_v53 = vmul.f32 %v6581_v35, %v2467_v14  ;;  %v2788_v19 = vsub.f32 1.0, %v2468_v12  ;;  %3857 = vlog2.f32 %v2273_v48  ;;  %v6099_v40 = vadd.f32 -1.1647458, %v6582_v9  ;;  %v6587_v48 = vld [vmem:[#allocation61_spill] sm:$0xff] }
 0x31f   :  { %v3848_v10 = vpop.eup %3847  ;;  %v2340_v2 = vmul.f32 0.6931472, %v3846_v59  ;;  %v2373_v24 = vmul.f32 -50.5, %v2338_v5  ;;  %3859 = vlog2.f32 %v2274_v60  ;;  %v1909_v28 = vadd.f32 %v480_v26, %v6572_v11 }
 0x320   :  { %v3850_v43 = vpop.eup %3849  ;;  %v6103_v63 = vmul.f32 %v6583_v18, %v2468_v12  ;;  %v6105_v29 = vadd.f32 %v2947_v33, %v2755_v53  ;;  %v1910_v4 = vadd.f32 %v6055_v30, %v480_v26  ;;  %v1436_v14 = vmul.f32 1.442695, %v6099_v40  ;;  %v6590_v18 = vld [vmem:[#allocation49_spill] sm:$0xff] }
 0x321   :  { %v3852_v1 = vpop.eup %3851  ;;  %vm3056_vm8 = vcmp.eq.s32.totalorder %v6474_v44, %v6584_v51  ;;  %v2463_v15 = vmul.f32 2.5003695, %v3850_v43  ;;  %v2374_v34 = vmul.f32 -50.5, %v2340_v2  ;;  %v2433_v22 = vmul.f32 1.442695, %v2373_v24  ;;  %v6588_v2 = vld [vmem:[#allocation33_spill] sm:$0xff] }
 0x322   :  { %3861 = vpow2.f32 %v1146_v23  ;;  %v3854_v58 = vpop.eup %3853  ;;  %v6112_v11 = vmul.f32 %v6050_v8, %v2788_v19  ;;  %v2464_v32 = vmul.f32 2.5003695, %v3852_v1  ;;  %v2247_v50 = vmul.f32 0.01, %v1909_v28  ;;  %v6589_v24 = vld [vmem:[#allocation17_spill] sm:$0xff] }
 0x323   :  { %3863 = vpow2.f32 %v1436_v14  ;;  %v3856_v62 = vpop.eup %3855  ;;  %v2751_v30 = vmul.f32 %v6585_v36, %v2463_v15  ;;  %v2783_v38 = vsub.f32 1.0, %v2463_v15  ;;  %v2435_v6 = vmul.f32 1.442695, %v2374_v34 }
 0x324   :  { %v2248_v13 = vmul.f32 0.01, %v1910_v4  ;;  %v3858_v25 = vpop.eup %3857  ;;  %v2784_v12 = vsub.f32 1.0, %v2464_v32  ;;  %3865 = vpow2.f32 %v2433_v22  ;;  %v1175_v31 = vmul.f32 2.5003695, %v3856_v62  ;;  %v6591_v62 = vld [vmem:[#allocation64_spill] sm:$0xff] }
 0x325   :  { %v1053_v37 = vmul.f32 0.6931472, %v3854_v58  ;;  %v3860_v57 = vpop.eup %3859  ;;  %v2943_v52 = vmul.f32 %v6586_v61, %v2783_v38  ;;  %3867 = vpow2.f32 %v2435_v6  ;;  %v2330_v8 = vmul.f32 0.6931472, %v3858_v25 }
 0x326   :  { %v2279_v33 = vadd.f32 1.0, %v2247_v50  ;;  %v2752_v39 = vmul.f32 %v6587_v48, %v2464_v32  ;;  %v2944_v23 = vmul.f32 %v6067_v54, %v2784_v12  ;;  %v2332_v5 = vmul.f32 0.6931472, %v3860_v57 }
 0x327   :  { %v6118_v60 = vmul.f32 2.5003695, %v3848_v10  ;;  %v2975_v59 = vadd.f32 %v2943_v52, %v2751_v30  ;;  %v2369_v35 = vmul.f32 -50.5, %v2330_v8  ;;  %v1085_v53 = vmul.f32 -50.5, %v1053_v37  ;;  %v6592_v30 = vld [vmem:[#allocation65_spill] sm:$0xff]  ;;  %v6594_v37 = vld [vmem:[#allocation74_spill] sm:$0xff] }
 0x328   :  { %v3862_v26 = vpop.eup %3861  ;;  %v2280_v19 = vadd.f32 1.0, %v2248_v13  ;;  %vm1752_vm9 = vcmp.eq.s32.totalorder %v6589_v24, %v6588_v2  ;;  %v2976_v28 = vadd.f32 %v2944_v23, %v2752_v39  ;;  %v2370_v43 = vmul.f32 -50.5, %v2332_v5  ;;  %v6593_v13 = vld [vmem:[#allocation54_spill] sm:$0xff] }
 0x329   :  { %v3864_v9 = vpop.eup %3863  ;;  %3869 = vlog2.f32 %v2279_v33  ;;  %v1465_v4 = vmul.f32 %v6590_v18, %v6062_v49  ;;  %v3007_v14 = vsub.f32 0.0, %v2975_v59  ;;  %v1495_v54 = vsub.f32 1.0, %v1175_v31  ;;  %v6596_v39 = vld [vmem:[#allocation66_spill] sm:$0xff]  ;;  %v6597_v59 = vld [vmem:[#allocation51_spill] sm:$0xff] }
 0x32a   :  { %v2425_v1 = vmul.f32 1.442695, %v2369_v35  ;;  %3871 = vlog2.f32 %v2280_v19  ;;  %v3866_v10 = vpop.eup %3865  ;;  %v3008_v15 = vsub.f32 0.0, %v2976_v28  ;;  %v2427_v34 = vmul.f32 1.442695, %v2370_v43  ;;  %v6598_v35 = vld [vmem:[#allocation70_spill] sm:$0xff] }
 0x32b   :  { %v1148_v22 = vmul.f32 1.442695, %v1085_v53  ;;  %v1533_v58 = vsub.f32 1.0, %v3864_v9  ;;  %v3868_v32 = vpop.eup %3867  ;;  %3119 = vst [vmem:[#allocation9 + $0x1b0] sm:$0xff] %v3007_v14  ;;  %v3150_v50 = vadd.f32 %v6082_v42, %v3007_v14  ;;  %v1655_v36 = vmul.f32 %v6591_v62, %v1495_v54  ;;  %v6599_v28 = vld [vmem:[#allocation27_spill] sm:$0xff] }
 0x32c   :  { %3873 = vpow2.f32 %v2425_v1  ;;  %v6128_v38 = vmul.f32 %v6592_v30, %v6118_v60  ;;  %v3088_v6 = vsel %vm3056_vm8, 0.0, %v3008_v15  ;;  %v1463_v25 = vmul.f32 %v6593_v13, %v1175_v31  ;;  %v6602_v49 = vld [vmem:[#allocation59_spill] sm:$0xff]  ;;  %v3905_v13 = vld [vmem:[#allocation9 + $0xb0] sm:$0xff] }
 0x32d   :  { %v1499_v12 = vsub.f32 1.0, %v6118_v60  ;;  %v6595_v57 = vsub.f32 1.0, %v6594_v37  ;;  %3120 = vst [vmem:[#allocation9 + $0x1b8] sm:$0xff] %v3088_v6  ;;  %v6137_v42 = vadd.f32 %v3150_v50, %v3088_v6  ;;  %v6139_v52 = vmul.f32 2.5003695, %v3866_v10 }
 0x32e   :  { %3875 = vpow2.f32 %v2427_v34  ;;  %v1180_v8 = vmul.f32 2.5003695, %v3862_v26  ;;  %v6141_v48 = vmul.f32 2.5003695, %v3868_v32  ;;  %v1565_v51 = vadd.f32 1e-12, %v1533_v58 }
 0x32f   :  { %v1564_v61 = vadd.f32 1e-12, %v6595_v57  ;;  %v3870_v33 = vpop.eup %3869  ;;  %3877 = vpow2.f32 %v1148_v22  ;;  %v1623_v23 = vmul.f32 0.6931472, %v6596_v39  ;;  %v1657_v53 = vmul.f32 %v6598_v35, %v1497_v20  ;;  %v6600_v26 = vld [vmem:[#allocation23_spill] sm:$0xff] }
 0x330   :  { %v3872_v31 = vpop.eup %3871  ;;  %v2342_v5 = vmul.f32 0.6931472, %v3870_v33  ;;  %3879 = vlog2.f32 %v6597_v59  ;;  %v1687_v19 = vadd.f32 %v1655_v36, %v1463_v25  ;;  %v1468_v43 = vmul.f32 %v6599_v28, %v1180_v8  ;;  %v6603_v36 = vld [vmem:[#allocation41_spill] sm:$0xff] }
 0x331   :  { %v2344_v9 = vmul.f32 0.6931472, %v3872_v31  ;;  %3881 = vlog2.f32 %v1564_v61  ;;  %v6601_v18 = vsub.f32 1.0, %v6600_v26  ;;  %v6151_v10 = vadd.f32 %v1657_v53, %v1465_v4 }
 0x332   :  { %v3874_v54 = vpop.eup %3873  ;;  %v2375_v1 = vmul.f32 -50.5, %v2342_v5  ;;  %3883 = vlog2.f32 %v1565_v51  ;;  %v1719_v15 = vsub.f32 0.0, %v1687_v19  ;;  %v1500_v58 = vsub.f32 1.0, %v1180_v8  ;;  %v6605_v8 = vld [vmem:[#allocation39_spill] sm:$0xff]  ;;  %v6606_v51 = vld [vmem:[#allocation69_spill] sm:$0xff]  ;;  %v6607_v5 = vld [vmem:[#allocation26_spill] sm:$0xff] }
 0x333   :  { %v1658_v14 = vmul.f32 %v1623_v23, %v6601_v18  ;;  %v2465_v34 = vmul.f32 2.5003695, %v3874_v54  ;;  %v2376_v22 = vmul.f32 -50.5, %v2344_v9  ;;  %v1721_v62 = vsub.f32 0.0, %v6151_v10  ;;  %v6608_v18 = vld [vmem:[#allocation43_spill] sm:$0xff] }
 0x334   :  { %v3876_v20 = vpop.eup %3875  ;;  %v2437_v50 = vmul.f32 1.442695, %v2375_v1  ;;  %v6604_v30 = vsub.f32 0.0, %v6603_v36  ;;  %1815 = vst [vmem:[#allocation9 + $0xc8] sm:$0xff] %v1719_v15  ;;  %v1843_v4 = vadd.f32 %v3905_v13, %v6045_v21  ;;  %vm1754_vm10 = vcmp.eq.s32.totalorder %v6589_v24, %v6605_v8 }
 0x335   :  { %v1690_v32 = vadd.f32 %v1658_v14, %v6602_v49  ;;  %v3878_v25 = vpop.eup %3877  ;;  %v2466_v37 = vmul.f32 2.5003695, %v3876_v20  ;;  %v2785_v57 = vsub.f32 1.0, %v2465_v34  ;;  %v2439_v61 = vmul.f32 1.442695, %v2376_v22  ;;  %1817 = vst [vmem:[#allocation9 + $0xd8] sm:$0xff] %v1721_v62 }
 0x336   :  { %v1784_v6 = vsel %vm1752_vm9, 0.0, %v6604_v30  ;;  %v3880_v33 = vpop.eup %3879  ;;  %v2753_v39 = vmul.f32 %v6606_v51, %v2465_v34  ;;  %v1181_v23 = vmul.f32 2.5003695, %v3878_v25  ;;  %v1844_v2 = vadd.f32 %v1843_v4, %v1717_v45  ;;  %v3906_v22 = vld [vmem:[#allocation9 + $0xc0] sm:$0xff] }
 0x337   :  { %1816 = vst [vmem:[#allocation9 + $0xd0] sm:$0xff] %v1784_v6  ;;  %v1722_v31 = vsub.f32 0.0, %v1690_v32  ;;  %v3882_v21 = vpop.eup %3881  ;;  %v2754_v59 = vmul.f32 %v6607_v5, %v2466_v37  ;;  %v2786_v35 = vsub.f32 1.0, %v2466_v37  ;;  %v2945_v53 = vmul.f32 %v6091_v41, %v2785_v57 }
 0x338   :  { %3885 = vpow2.f32 %v2437_v50  ;;  %v3884_v19 = vpop.eup %3883  ;;  %v1501_v9 = vsub.f32 1.0, %v1181_v23  ;;  %v1625_v28 = vmul.f32 0.6931472, %v3880_v33  ;;  %v1627_v26 = vmul.f32 0.6931472, %v3882_v21 }
 0x339   :  { %3887 = vpow2.f32 %v2439_v61  ;;  %vm3058_vm11 = vcmp.eq.s32.totalorder %v6474_v44, %v6608_v18  ;;  %v2946_v14 = vmul.f32 %v6094_v17, %v2786_v35  ;;  %v6173_v54 = vadd.f32 %v2945_v53, %v2753_v39 }
 0x33a   :  { %v1629_v46 = vmul.f32 0.6931472, %v3884_v19  ;;  %v1786_v45 = vsel %vm1754_vm10, 0.0, %v1722_v31  ;;  %v1469_v41 = vmul.f32 %v6099_v40, %v1181_v23  ;;  %v1659_v1 = vmul.f32 %v1625_v28, %v1499_v12 }
 0x33b   :  { %v1660_v34 = vmul.f32 %v1627_v26, %v1500_v58  ;;  %1818 = vst [vmem:[#allocation9 + $0xe0] sm:$0xff] %v1786_v45  ;;  %v1845_v49 = vadd.f32 %v3906_v22, %v1844_v2  ;;  %v2978_v32 = vadd.f32 %v2946_v14, %v2754_v59  ;;  %v3009_v20 = vsub.f32 0.0, %v6173_v54  ;;  %v6609_v58 = vld [vmem:[#allocation44_spill] sm:$0xff]  ;;  %v6610_v59 = vld [vmem:[#allocation47_spill] sm:$0xff] }
 0x33c   :  { %v1661_v17 = vmul.f32 %v1629_v46, %v1501_v9  ;;  %v2823_v50 = vsub.f32 1.0, %v5995_v3  ;;  %v1691_v36 = vadd.f32 %v1659_v1, %v6128_v38  ;;  %v2824_v4 = vsub.f32 1.0, %v6000_v47 }
 0x33d   :  { %v1692_v30 = vadd.f32 %v1660_v34, %v1468_v43  ;;  %v1846_v13 = vadd.f32 %v1845_v49, %v1719_v15  ;;  %v2757_v60 = vmul.f32 %v5911_v27, %v6139_v52  ;;  %3121 = vst [vmem:[#allocation9 + $0x1c0] sm:$0xff] %v3009_v20  ;;  %vm1756_vm12 = vcmp.eq.s32.totalorder %v6589_v24, %v6609_v58 }
 0x33e   :  { %v3886_v40 = vpop.eup %3885  ;;  %v1693_v12 = vadd.f32 %v1661_v17, %v1469_v41  ;;  %v2855_v25 = vadd.f32 1e-12, %v2823_v50  ;;  %v2789_v57 = vsub.f32 1.0, %v6139_v52  ;;  %v1723_v3 = vsub.f32 0.0, %v1691_v36 }
 0x33f   :  { %v3888_v37 = vpop.eup %3887  ;;  %v1724_v61 = vsub.f32 0.0, %v1692_v30  ;;  %v1847_v38 = vadd.f32 %v1846_v13, %v1784_v6  ;;  %v2790_v43 = vsub.f32 1.0, %v6141_v48  ;;  %v2758_v47 = vmul.f32 %v5914_v7, %v6141_v48 }
 0x340   :  { %v1725_v15 = vsub.f32 0.0, %v1693_v12  ;;  %v2856_v33 = vadd.f32 1e-12, %v2824_v4  ;;  %v3010_v27 = vsub.f32 0.0, %v2978_v32  ;;  %v2471_v51 = vmul.f32 2.5003695, %v3886_v40 }
 0x341   :  { %v1788_v39 = vsel %vm1756_vm12, 0.0, %v1724_v61  ;;  %1819 = vst [vmem:[#allocation9 + $0xe8] sm:$0xff] %v1723_v3  ;;  %v1848_v24 = vadd.f32 %v1847_v38, %v1721_v62  ;;  %v2914_v52 = vmul.f32 0.6931472, %v5958_v16  ;;  %v2916_v23 = vmul.f32 0.6931472, %v5962_v55 }
 0x342   :  { %1820 = vst [vmem:[#allocation9 + $0xf0] sm:$0xff] %v1788_v39  ;;  %3889 = vlog2.f32 %v2855_v25  ;;  %v2980_v6 = vadd.f32 %v6112_v11, %v6103_v63  ;;  %v3011_v7 = vsub.f32 0.0, %v6105_v29  ;;  %v3031_v48 = vadd.s32 128, %v6605_v8 }
 0x343   :  { %1821 = vst [vmem:[#allocation9 + $0xf8] sm:$0xff] %v1725_v15  ;;  %v1849_v31 = vadd.f32 %v1848_v24, %v1786_v45  ;;  %3891 = vlog2.f32 %v2856_v33  ;;  %v2472_v2 = vmul.f32 2.5003695, %v3888_v37  ;;  %v2949_v21 = vmul.f32 %v2914_v52, %v2789_v57 }
 0x344   :  { %v2950_v10 = vmul.f32 %v2916_v23, %v2790_v43  ;;  %v3012_v62 = vsub.f32 0.0, %v2980_v6  ;;  %vm3060_vm13 = vcmp.eq.s32.totalorder %v6474_v44, %v6610_v59  ;;  %v3090_v16 = vsel %vm3058_vm11, 0.0, %v3010_v27  ;;  %3123 = vst [vmem:[#allocation9 + $0x1d0] sm:$0xff] %v3011_v7 }
 0x345   :  { %v1850_v5 = vadd.f32 %v1849_v31, %v1723_v3  ;;  %v2981_v55 = vadd.f32 %v2949_v21, %v2757_v60  ;;  %3122 = vst [vmem:[#allocation9 + $0x1c8] sm:$0xff] %v3090_v16  ;;  %v2791_v35 = vsub.f32 1.0, %v2471_v51  ;;  %vm3062_vm14 = vcmp.eq.s32.totalorder %v6474_v44, %v3031_v48 }
 0x346   :  { %v2982_v63 = vadd.f32 %v2950_v10, %v2758_v47  ;;  %v3092_v11 = vsel %vm3060_vm13, 0.0, %v3012_v62  ;;  %v3152_v8 = vadd.f32 %v6137_v42, %v3009_v20  ;;  %v2792_v19 = vsub.f32 1.0, %v2472_v2 }
 0x347   :  { %v1851_v29 = vadd.f32 %v1850_v5, %v1788_v39  ;;  %3124 = vst [vmem:[#allocation9 + $0x1d8] sm:$0xff] %v3092_v11  ;;  %v3013_v9 = vsub.f32 0.0, %v2981_v55  ;;  %v2759_v41 = vmul.f32 %v5953_v0, %v2471_v51  ;;  %v3032_v34 = vadd.s32 128, %v6609_v58 }
 0x348   :  { %v3890_v53 = vpop.eup %3889  ;;  %v3014_v28 = vsub.f32 0.0, %v2982_v63  ;;  %v3153_v54 = vadd.f32 %v3152_v8, %v3090_v16  ;;  %v2760_v42 = vmul.f32 %v5973_v56, %v2472_v2 }
 0x349   :  { %v3892_v26 = vpop.eup %3891  ;;  %v1852_v14 = vadd.f32 %v1851_v29, %v1725_v15  ;;  %v2918_v18 = vmul.f32 0.6931472, %v3890_v53  ;;  %3125 = vst [vmem:[#allocation9 + $0x1e0] sm:$0xff] %v3013_v9  ;;  %vm3064_vm15 = vcmp.eq.s32.totalorder %v6474_v44, %v3032_v34 }
 0x34a   :  { %v2920_v46 = vmul.f32 0.6931472, %v3892_v26  ;;  %v3094_v45 = vsel %vm3062_vm14, 0.0, %v3014_v28  ;;  %v3154_v22 = vadd.f32 %v3153_v54, %v3011_v7 }
 0x34b   :  { %1853 = vadd.xlane.f32.xlu1 %v1852_v14  ;;  %v2951_v1 = vmul.f32 %v2918_v18, %v2791_v35  ;;  %3126 = vst [vmem:[#allocation9 + $0x1e8] sm:$0xff] %v3094_v45 }
 0x34c   :  { %v2952_v49 = vmul.f32 %v2920_v46, %v2792_v19  ;;  %v3155_v20 = vadd.f32 %v3154_v22, %v3092_v11 }
 0x34d   :  { %v2983_v32 = vadd.f32 %v2951_v1, %v2759_v41 }
 0x34e   :  { %v2984_v17 = vadd.f32 %v2952_v49, %v2760_v42  ;;  %v3156_v36 = vadd.f32 %v3155_v20, %v3013_v9 }
 0x34f   :  { %v3015_v50 = vsub.f32 0.0, %v2983_v32 }
 0x350   :  { %v3016_v30 = vsub.f32 0.0, %v2984_v17  ;;  %v3157_v13 = vadd.f32 %v3156_v36, %v3094_v45 }
 0x351   :  { %3127 = vst [vmem:[#allocation9 + $0x1f0] sm:$0xff] %v3015_v50 }
 0x352   :  { %v3096_v4 = vsel %vm3064_vm15, 0.0, %v3016_v30  ;;  %v3158_v0 = vadd.f32 %v3157_v13, %v3015_v50 }
 0x353   :  { %3128 = vst [vmem:[#allocation9 + $0x1f8] sm:$0xff] %v3096_v4 }
 0x354   :  { %v3159_v40 = vadd.f32 %v3158_v0, %v3096_v4  ;;  %3184 = dma.vmem_to_hbm [thread:$0]  %s3177_s9, 8192, %s3179_s7, [#allocation4], %s4027_s27, %s4027_s27, %s4028_s28  }
 0x356   :  { %3160 = vadd.xlane.f32.xlu2 %v3159_v40 }
 0x3be   :  { %v1854_v44 = vpop.xlane.xlu1 %1853 }
 0x3bf   :  { %v1855_v56 = vrot.slane %v1854_v44, 4 }
 0x3c1   :  { %v1856_v60 = vadd.f32 %v1855_v56, %v1854_v44 }
 0x3c3   :  { %v1857_v12 = vrot.slane %v1856_v60, 2 }
 0x3c5   :  { %v1858_v58 = vadd.f32 %v1857_v12, %v1856_v60 }
 0x3c7   :  { %v1859_v25 = vrot.slane %v1858_v58, 1 }
 0x3c9   :  { %v1860_v37 = vadd.f32 %v1859_v25, %v1858_v58  ;;  %v3161_v57 = vpop.xlane.xlu2 %3160 }
 0x3ca   :  { %v3162_v3 = vrot.slane %v3161_v57, 4 }
 0x3cb   :  { %3239 = vpush %v1860_v37 }
 0x3cc   :  { %v3163_v61 = vadd.f32 %v3162_v3, %v3161_v57 }
 0x3ce   :  { %v3164_v38 = vrot.slane %v3163_v61, 2 }
 0x3d0   :  { %v3165_v43 = vadd.f32 %v3164_v38, %v3163_v61 }
 0x3d2   :  { %v3166_v15 = vrot.slane %v3165_v43, 1 }
 0x3d4   :  { %v3167_v47 = vadd.f32 %v3166_v15, %v3165_v43 }
 0x3d6   :  { %3241 = vpush %v3167_v47 }
 0x3fc   :  { %s3240_s12 = spop %3239 }
 0x407   :  { %s3242_s13 = spop %3241 }
 0x408   :  { %s3169_s14 = sadd.f32 %s3242_s13, %s3240_s12 }
 0x40a   :  { %3171 = sst [smem:[#allocation10]] %s3169_s14 }
 0x40b   :  { %3193 = dma.smem_to_hbm %s4032_s15, 16, %s3191_s11, [#allocation5]  }
 0x40c   :  { %4019 = dma.done.wait [#allocation4], 8192  }
 0x40d   :  { %4020 = vsyncadd [#allocation4], 4294959104 }
 0x40e   :  { %4021 = dma.done.wait [#allocation5], 16  }
 0x40f   :  { %4022 = vsyncadd [#allocation5], 4294967280 }
 0x410   :  { %3202 = sfence }
 0x411   :  { %3203 = vsyncpa [#allocation3], 1 }
 0x412   :  { %3204 = vsyncpa [#allocation7], 1 }
 0x413   :  { %3205 = vsyncpa [#allocation4], 1 }
 0x414   :  { %3206 = vsyncpa [#allocation5], 1 }

</bundles_post_ra>
